<compile_context>
chip_gen: v6e
topology: v6e:2x2x1
jax: 0.10.0
libtpu: 0.0.40
codegen_flags: <defaults>
</compile_context>

<pallas_src>
import jax
import jax.numpy as jnp
from jax.experimental import pallas as pl
from jax.experimental.pallas import tpu as pltpu


# --------------------------- VMEM budget helper ----------------------------- #

def _vmem_budget_bytes():
    """Per-TensorCore VMEM budget with headroom (v7x: ~48 MiB, v6e/v5e: ~96)."""
    try:
        cap = int(pltpu.get_tpu_info().vmem_capacity_bytes)
    except Exception:
        cap = 64 * 1024 * 1024  # conservative: v7x per-TC physical VMEM
    # Leave ~25% headroom for internal scratch / semaphores / double buffers.
    return min((cap * 3) // 4, 112 * 1024 * 1024)


# ----------------------- resident-weight Pallas kernel ---------------------- #

def moe_resident_kernel(x_ref, w1_ref, b1_ref, w2_ref, b2_ref, mask_ref, o_ref):
    """Grid = (token tiles,).  All expert weights resident in VMEM.

    x_ref    : (TN, H)    bf16   token tile
    w1_ref   : (E, H, F)  bf16   resident (constant index_map -> single DMA)
    b1_ref   : (E, 1, F)  f32    resident
    w2_ref   : (E, F, H)  bf16   resident
    b2_ref   : (E, 1, H)  f32    resident
    mask_ref : (E, TN, 1) f32    hard routing mask for this token tile
    o_ref    : (TN, H)    f32
    """
    num_experts = w1_ref.shape[0]
    x = x_ref[...]
    acc = jnp.zeros(o_ref.shape, jnp.float32)
    for e in range(num_experts):  # static -> fully unrolled
        h = jnp.dot(x, w1_ref[e], preferred_element_type=jnp.float32)
        h = jnp.maximum(h + b1_ref[e], 0.0).astype(jnp.bfloat16)
        y = jnp.dot(h, w2_ref[e], preferred_element_type=jnp.float32) + b2_ref[e]
        acc = acc + mask_ref[e] * y
    o_ref[...] = acc


# ------------------- streaming (large-expert) Pallas kernel ----------------- #

def moe_stream_kernel(x_ref, w1_ref, b1_ref, w2_ref, b2_ref, mask_ref, o_ref,
                      yacc_ref):
    """Grid = (token tiles, experts, F tiles); F innermost.

    Used only when the expert weights do not fit the VMEM budget.
    """
    e = pl.program_id(1)
    f = pl.program_id(2)
    f_last = pl.num_programs(2) - 1

    @pl.when((e == 0) & (f == 0))
    def _():
        o_ref[...] = jnp.zeros_like(o_ref)

    @pl.when(f == 0)
    def _():
        yacc_ref[...] = jnp.zeros_like(yacc_ref)

    h = jnp.dot(x_ref[...], w1_ref[0], preferred_element_type=jnp.float32)
    h = jnp.maximum(h + b1_ref[0], 0.0).astype(jnp.bfloat16)
    yacc_ref[...] += jnp.dot(h, w2_ref[0], preferred_element_type=jnp.float32)

    @pl.when(f == f_last)
    def _():
        y = yacc_ref[...] + b2_ref[0]
        o_ref[...] += mask_ref[0] * y


# ------------------------------ JAX wrapper --------------------------------- #

def switch_moe_forward(x, params, top_k, *, tn=None, tf=None):
    """Forward pass matching SwitchMoE (hard top-k routing, per-expert MLP)."""
    B, S, H = x.shape
    N = B * S
    xf = x.reshape(N, H)  # f32 view, no extra copy

    wg, bg = params["wg"], params["bg"]
    w1, b1, w2, b2 = params["w1"], params["b1"], params["w2"], params["b2"]
    E = wg.shape[1]
    F = w1.shape[-1]

    # ---- gate + routing glue: tiny, lane-sparse (E small) -> plain XLA -----
    gate = jax.nn.softmax(xf @ wg + bg, axis=-1)              # (N, E)
    _, idx = jax.lax.top_k(gate, top_k)                       # (N, top_k)
    one_hot = jax.nn.one_hot(idx, E, dtype=jnp.float32)       # (N, top_k, E)
    # Hard, unweighted routing mask: matches the PyTorch forward, which does
    # `output[mask] += expert_output` with no gate-probability scaling.
    mask = (one_hot.sum(axis=1) > 0).astype(jnp.float32)      # (N, E)

    # ---- token tiling -------------------------------------------------------
    # 128 matches the v5e MXU; 256 fills the v6e/v7x 256x256 MXU once N is
    # large enough to amortize the bigger tile.
    if tn is None:
        tn = 256 if N >= 512 else 128
    assert tn % 8 == 0
    n_tiles = (N + tn - 1) // tn
    # Even (>= 2) token-tile count so the "parallel" axis shards evenly across
    # v7x's two TensorCores (cheap at small N, negligible at large N).
    if n_tiles % 2 == 1:
        n_tiles += 1
    n_pad = n_tiles * tn

    # Pad directly in bf16 (no f32 staging copy); padded rows have mask 0 and
    # their (row-independent) outputs are sliced off after the kernel.
    x_p = jnp.zeros((n_pad, H), jnp.bfloat16).at[:N].set(xf.astype(jnp.bfloat16))
    mask_p = jnp.zeros((E, n_pad, 1), jnp.float32).at[:, :N, 0].set(mask.T)

    w1_b = w1.astype(jnp.bfloat16)
    w2_b = w2.astype(jnp.bfloat16)
    b1_r = b1.reshape(E, 1, F).astype(jnp.float32)
    b2_r = b2.reshape(E, 1, H).astype(jnp.float32)

    vmem_budget = _vmem_budget_bytes()

    # ---- resident-weight fit check (conservative: double-buffered inputs) --
    weight_bytes = 2 * (E * H * F * 2)                    # W1 + W2, bf16
    bias_bytes = 2 * (E * F * 4 + E * H * 4)
    resident_bytes = (
        2 * (weight_bytes + bias_bytes                    # weights/biases x2 bufs
             + tn * H * 2 + tn * H * 4 + E * tn * 4)      # x / o / mask tiles x2
        + tn * F * 4 + 2 * tn * H * 4                     # ReLU intermediate + acc
    )
    use_resident = resident_bytes <= (vmem_budget * 3) // 4

    if use_resident:
        out = pl.pallas_call(
            moe_resident_kernel,
            out_shape=jax.ShapeDtypeStruct((n_pad, H), jnp.float32),
            grid_spec=pltpu.PrefetchScalarGridSpec(
                num_scalar_prefetch=0,
                grid=(n_tiles,),
                in_specs=[
                    pl.BlockSpec((tn, H), lambda n: (n, 0)),        # x tile
                    pl.BlockSpec((E, H, F), lambda n: (0, 0, 0)),   # W1 resident
                    pl.BlockSpec((E, 1, F), lambda n: (0, 0, 0)),   # b1 resident
                    pl.BlockSpec((E, F, H), lambda n: (0, 0, 0)),   # W2 resident
                    pl.BlockSpec((E, 1, H), lambda n: (0, 0, 0)),   # b2 resident
                    pl.BlockSpec((E, tn, 1), lambda n: (0, n, 0)),  # mask tile
                ],
                out_specs=pl.BlockSpec((tn, H), lambda n: (n, 0)),
            ),
            compiler_params=pltpu.CompilerParams(
                dimension_semantics=("parallel",),
                vmem_limit_bytes=vmem_budget,
            ),
        )(x_p, w1_b, b1_r, w2_b, b2_r, mask_p)
    else:
        # Streaming fallback for experts too large to hold resident.
        # TODO(synk): when weight_bytes * n_tiles dominates activation traffic,
        # make the weights stationary (emit_pipeline over token tiles inside
        # the kernel) instead of re-streaming them per token tile.
        if tf is None:
            tf = 512
        assert H % 128 == 0, "hidden dim must be lane-aligned"
        assert F % tf == 0 and tf % 128 == 0

        out = pl.pallas_call(
            moe_stream_kernel,
            out_shape=jax.ShapeDtypeStruct((n_pad, H), jnp.float32),
            grid_spec=pltpu.PrefetchScalarGridSpec(
                num_scalar_prefetch=0,
                grid=(n_tiles, E, F // tf),
                in_specs=[
                    pl.BlockSpec((tn, H), lambda n, e, f: (n, 0)),
                    pl.BlockSpec((1, H, tf), lambda n, e, f: (e, 0, f)),
                    pl.BlockSpec((1, 1, tf), lambda n, e, f: (e, 0, f)),
                    pl.BlockSpec((1, tf, H), lambda n, e, f: (e, f, 0)),
                    pl.BlockSpec((1, 1, H), lambda n, e, f: (e, 0, 0)),
                    pl.BlockSpec((1, tn, 1), lambda n, e, f: (e, n, 0)),
                ],
                out_specs=pl.BlockSpec((tn, H), lambda n, e, f: (n, 0)),
                scratch_shapes=[pltpu.VMEM((tn, H), jnp.float32)],
            ),
            compiler_params=pltpu.CompilerParams(
                dimension_semantics=("parallel", "arbitrary", "arbitrary"),
                vmem_limit_bytes=vmem_budget,
            ),
        )(x_p, w1_b, b1_r, w2_b, b2_r, mask_p)

    return out[:N].reshape(B, S, H)


# --------------------------- pure-JAX reference ------------------------------ #

def reference(x, params, top_k):
    # Mirrors the PyTorch forward.  Matmul operands are cast to bf16 with fp32
    # accumulation so the reference uses the same MXU precision as the kernel.
    B, S, H = x.shape
    xf = x.reshape(B * S, H).astype(jnp.float32)
    logits = xf @ params["wg"] + params["bg"]
    gate = jax.nn.softmax(logits, axis=-1)
    _, idx = jax.lax.top_k(gate, top_k)
    E = params["wg"].shape[1]
    mask = (jax.nn.one_hot(idx, E).sum(axis=1) > 0).astype(jnp.float32)
    xb = xf.astype(jnp.bfloat16)
    out = jnp.zeros_like(xf)
    for e in range(E):
        h = jnp.dot(xb, params["w1"][e].astype(jnp.bfloat16),
                    preferred_element_type=jnp.float32) + params["b1"][e]
        h = jnp.maximum(h, 0.0).astype(jnp.bfloat16)
        y = jnp.dot(h, params["w2"][e].astype(jnp.bfloat16),
                    preferred_element_type=jnp.float32) + params["b2"][e]
        out = out + mask[:, e:e + 1] * y
    return out.reshape(B, S, H)


# ---------------------------------- main ------------------------------------- #

if __name__ == "__main__":
    B, S, H = 1, 2, 128          # matches the module's batch/seq/hidden
    E, TOP_K = 4, 2              # config['num_experts'][index], top_experts_num
    F = 4 * H

    key = jax.random.PRNGKey(0)
    ks = jax.random.split(key, 7)
    x = jax.random.normal(ks[0], (B, S, H), jnp.float32)
    params = dict(
        wg=jax.random.normal(ks[1], (H, E), jnp.float32) * 0.1,
        bg=jax.random.normal(ks[2], (E,), jnp.float32) * 0.01,
        w1=jax.random.normal(ks[3], (E, H, F), jnp.float32) / jnp.sqrt(H),
        b1=jax.random.normal(ks[4], (E, F), jnp.float32) * 0.01,
        w2=jax.random.normal(ks[5], (E, F, H), jnp.float32) / jnp.sqrt(F),
        b2=jax.random.normal(ks[6], (E, H), jnp.float32) * 0.01,
    )

    out = switch_moe_forward(x, params, TOP_K)
    jax.block_until_ready(out)

    ref = reference(x, params, TOP_K)
    assert out.shape == (B, S, H)
    err = float(jnp.max(jnp.abs(out - ref)))
    assert jnp.allclose(out, ref, rtol=2e-2, atol=2e-2), err
    print("KERNEL_OK")
</pallas_src>

<mosaic_0001>
module attributes {stable_mosaic.version = 11 : i64} {
  func.func @moe_resident_kernel(%arg0: i32, %arg1: memref<128x128xbf16, #tpu.memory_space<vmem>>, %arg2: memref<4x128x512xbf16, #tpu.memory_space<vmem>>, %arg3: memref<4x1x512xf32, #tpu.memory_space<vmem>>, %arg4: memref<4x512x128xbf16, #tpu.memory_space<vmem>>, %arg5: memref<4x1x128xf32, #tpu.memory_space<vmem>>, %arg6: memref<4x128x1xf32, #tpu.memory_space<vmem>>, %arg7: memref<128x128xf32, #tpu.memory_space<vmem>>) attributes {dimension_semantics = [#tpu.dimension_semantics<parallel>], iteration_bounds = array<i64: 2>, scalar_prefetch = 0 : i64, scratch_operands = 0 : i64, tpu.core_type = #tpu.core_type<tc>, window_params = [{transform_indices = @transform_0, window_bounds = array<i64: 128, 128>}, {pipeline_mode = #tpu.pipeline_mode<synchronous>, transform_indices = @transform_1, window_bounds = array<i64: 4, 128, 512>}, {pipeline_mode = #tpu.pipeline_mode<synchronous>, transform_indices = @transform_2, window_bounds = array<i64: 4, 1, 512>}, {pipeline_mode = #tpu.pipeline_mode<synchronous>, transform_indices = @transform_3, window_bounds = array<i64: 4, 512, 128>}, {pipeline_mode = #tpu.pipeline_mode<synchronous>, transform_indices = @transform_4, window_bounds = array<i64: 4, 1, 128>}, {transform_indices = @transform_5, window_bounds = array<i64: 4, 128, 1>}, {transform_indices = @transform_6, window_bounds = array<i64: 128, 128>}]} {
    %c0 = arith.constant 0 : index
    %c0_0 = arith.constant 0 : index
    %0 = vector.load %arg1[%c0, %c0_0] : memref<128x128xbf16, #tpu.memory_space<vmem>>, vector<128x128xbf16>
    %cst = arith.constant 0.000000e+00 : f32
    %1 = vector.broadcast %cst : f32 to vector<128x128xf32>
    %c0_1 = arith.constant 0 : index
    %c0_2 = arith.constant 0 : index
    %c0_3 = arith.constant 0 : index
    %2 = vector.load %arg2[%c0_1, %c0_2, %c0_3] : memref<4x128x512xbf16, #tpu.memory_space<vmem>>, vector<1x128x512xbf16>
    %3 = vector.shape_cast %2 : vector<1x128x512xbf16> to vector<128x512xbf16>
    %cst_4 = arith.constant dense<0.000000e+00> : vector<128x512xf32>
    %4 = tpu.matmul %0, %3, %cst_4 {dimension_numbers = #tpu.dot_dimension_numbers<[1], [0], [0], [1], [0, 0, 1, 1], [], []>} : vector<128x128xbf16>, vector<128x512xbf16>, vector<128x512xf32> -> vector<128x512xf32>
    %c0_5 = arith.constant 0 : index
    %c0_6 = arith.constant 0 : index
    %c0_7 = arith.constant 0 : index
    %5 = vector.load %arg3[%c0_5, %c0_6, %c0_7] : memref<4x1x512xf32, #tpu.memory_space<vmem>>, vector<1x1x512xf32>
    %6 = vector.shape_cast %5 : vector<1x1x512xf32> to vector<1x512xf32>
    %7 = vector.broadcast %6 : vector<1x512xf32> to vector<128x512xf32>
    %8 = arith.addf %4, %7 : vector<128x512xf32>
    %cst_8 = arith.constant 0.000000e+00 : f32
    %9 = vector.broadcast %cst_8 : f32 to vector<128x512xf32>
    %10 = arith.maximumf %8, %9 : vector<128x512xf32>
    %11 = arith.truncf %10 : vector<128x512xf32> to vector<128x512xbf16>
    %c0_9 = arith.constant 0 : index
    %c0_10 = arith.constant 0 : index
    %c0_11 = arith.constant 0 : index
    %12 = vector.load %arg4[%c0_9, %c0_10, %c0_11] : memref<4x512x128xbf16, #tpu.memory_space<vmem>>, vector<1x512x128xbf16>
    %13 = vector.shape_cast %12 : vector<1x512x128xbf16> to vector<512x128xbf16>
    %cst_12 = arith.constant dense<0.000000e+00> : vector<128x128xf32>
    %14 = tpu.matmul %11, %13, %cst_12 {dimension_numbers = #tpu.dot_dimension_numbers<[1], [0], [0], [1], [0, 0, 1, 1], [], []>} : vector<128x512xbf16>, vector<512x128xbf16>, vector<128x128xf32> -> vector<128x128xf32>
    %c0_13 = arith.constant 0 : index
    %c0_14 = arith.constant 0 : index
    %c0_15 = arith.constant 0 : index
    %15 = vector.load %arg5[%c0_13, %c0_14, %c0_15] : memref<4x1x128xf32, #tpu.memory_space<vmem>>, vector<1x1x128xf32>
    %16 = vector.shape_cast %15 : vector<1x1x128xf32> to vector<1x128xf32>
    %17 = vector.broadcast %16 : vector<1x128xf32> to vector<128x128xf32>
    %18 = arith.addf %14, %17 : vector<128x128xf32>
    %c0_16 = arith.constant 0 : index
    %c0_17 = arith.constant 0 : index
    %c0_18 = arith.constant 0 : index
    %19 = vector.load %arg6[%c0_16, %c0_17, %c0_18] : memref<4x128x1xf32, #tpu.memory_space<vmem>>, vector<1x128x1xf32>
    %20 = vector.shape_cast %19 : vector<1x128x1xf32> to vector<128x1xf32>
    %21 = vector.broadcast %20 : vector<128x1xf32> to vector<128x128xf32>
    %22 = arith.mulf %21, %18 : vector<128x128xf32>
    %23 = arith.addf %1, %22 : vector<128x128xf32>
    %c1 = arith.constant 1 : index
    %c0_19 = arith.constant 0 : index
    %c0_20 = arith.constant 0 : index
    %24 = vector.load %arg2[%c1, %c0_19, %c0_20] : memref<4x128x512xbf16, #tpu.memory_space<vmem>>, vector<1x128x512xbf16>
    %25 = vector.shape_cast %24 : vector<1x128x512xbf16> to vector<128x512xbf16>
    %cst_21 = arith.constant dense<0.000000e+00> : vector<128x512xf32>
    %26 = tpu.matmul %0, %25, %cst_21 {dimension_numbers = #tpu.dot_dimension_numbers<[1], [0], [0], [1], [0, 0, 1, 1], [], []>} : vector<128x128xbf16>, vector<128x512xbf16>, vector<128x512xf32> -> vector<128x512xf32>
    %c1_22 = arith.constant 1 : index
    %c0_23 = arith.constant 0 : index
    %c0_24 = arith.constant 0 : index
    %27 = vector.load %arg3[%c1_22, %c0_23, %c0_24] : memref<4x1x512xf32, #tpu.memory_space<vmem>>, vector<1x1x512xf32>
    %28 = vector.shape_cast %27 : vector<1x1x512xf32> to vector<1x512xf32>
    %29 = vector.broadcast %28 : vector<1x512xf32> to vector<128x512xf32>
    %30 = arith.addf %26, %29 : vector<128x512xf32>
    %cst_25 = arith.constant 0.000000e+00 : f32
    %31 = vector.broadcast %cst_25 : f32 to vector<128x512xf32>
    %32 = arith.maximumf %30, %31 : vector<128x512xf32>
    %33 = arith.truncf %32 : vector<128x512xf32> to vector<128x512xbf16>
    %c1_26 = arith.constant 1 : index
    %c0_27 = arith.constant 0 : index
    %c0_28 = arith.constant 0 : index
    %34 = vector.load %arg4[%c1_26, %c0_27, %c0_28] : memref<4x512x128xbf16, #tpu.memory_space<vmem>>, vector<1x512x128xbf16>
    %35 = vector.shape_cast %34 : vector<1x512x128xbf16> to vector<512x128xbf16>
    %cst_29 = arith.constant dense<0.000000e+00> : vector<128x128xf32>
    %36 = tpu.matmul %33, %35, %cst_29 {dimension_numbers = #tpu.dot_dimension_numbers<[1], [0], [0], [1], [0, 0, 1, 1], [], []>} : vector<128x512xbf16>, vector<512x128xbf16>, vector<128x128xf32> -> vector<128x128xf32>
    %c1_30 = arith.constant 1 : index
    %c0_31 = arith.constant 0 : index
    %c0_32 = arith.constant 0 : index
    %37 = vector.load %arg5[%c1_30, %c0_31, %c0_32] : memref<4x1x128xf32, #tpu.memory_space<vmem>>, vector<1x1x128xf32>
    %38 = vector.shape_cast %37 : vector<1x1x128xf32> to vector<1x128xf32>
    %39 = vector.broadcast %38 : vector<1x128xf32> to vector<128x128xf32>
    %40 = arith.addf %36, %39 : vector<128x128xf32>
    %c1_33 = arith.constant 1 : index
    %c0_34 = arith.constant 0 : index
    %c0_35 = arith.constant 0 : index
    %41 = vector.load %arg6[%c1_33, %c0_34, %c0_35] : memref<4x128x1xf32, #tpu.memory_space<vmem>>, vector<1x128x1xf32>
    %42 = vector.shape_cast %41 : vector<1x128x1xf32> to vector<128x1xf32>
    %43 = vector.broadcast %42 : vector<128x1xf32> to vector<128x128xf32>
    %44 = arith.mulf %43, %40 : vector<128x128xf32>
    %45 = arith.addf %23, %44 : vector<128x128xf32>
    %c2 = arith.constant 2 : index
    %c0_36 = arith.constant 0 : index
    %c0_37 = arith.constant 0 : index
    %46 = vector.load %arg2[%c2, %c0_36, %c0_37] : memref<4x128x512xbf16, #tpu.memory_space<vmem>>, vector<1x128x512xbf16>
    %47 = vector.shape_cast %46 : vector<1x128x512xbf16> to vector<128x512xbf16>
    %cst_38 = arith.constant dense<0.000000e+00> : vector<128x512xf32>
    %48 = tpu.matmul %0, %47, %cst_38 {dimension_numbers = #tpu.dot_dimension_numbers<[1], [0], [0], [1], [0, 0, 1, 1], [], []>} : vector<128x128xbf16>, vector<128x512xbf16>, vector<128x512xf32> -> vector<128x512xf32>
    %c2_39 = arith.constant 2 : index
    %c0_40 = arith.constant 0 : index
    %c0_41 = arith.constant 0 : index
    %49 = vector.load %arg3[%c2_39, %c0_40, %c0_41] : memref<4x1x512xf32, #tpu.memory_space<vmem>>, vector<1x1x512xf32>
    %50 = vector.shape_cast %49 : vector<1x1x512xf32> to vector<1x512xf32>
    %51 = vector.broadcast %50 : vector<1x512xf32> to vector<128x512xf32>
    %52 = arith.addf %48, %51 : vector<128x512xf32>
    %cst_42 = arith.constant 0.000000e+00 : f32
    %53 = vector.broadcast %cst_42 : f32 to vector<128x512xf32>
    %54 = arith.maximumf %52, %53 : vector<128x512xf32>
    %55 = arith.truncf %54 : vector<128x512xf32> to vector<128x512xbf16>
    %c2_43 = arith.constant 2 : index
    %c0_44 = arith.constant 0 : index
    %c0_45 = arith.constant 0 : index
    %56 = vector.load %arg4[%c2_43, %c0_44, %c0_45] : memref<4x512x128xbf16, #tpu.memory_space<vmem>>, vector<1x512x128xbf16>
    %57 = vector.shape_cast %56 : vector<1x512x128xbf16> to vector<512x128xbf16>
    %cst_46 = arith.constant dense<0.000000e+00> : vector<128x128xf32>
    %58 = tpu.matmul %55, %57, %cst_46 {dimension_numbers = #tpu.dot_dimension_numbers<[1], [0], [0], [1], [0, 0, 1, 1], [], []>} : vector<128x512xbf16>, vector<512x128xbf16>, vector<128x128xf32> -> vector<128x128xf32>
    %c2_47 = arith.constant 2 : index
    %c0_48 = arith.constant 0 : index
    %c0_49 = arith.constant 0 : index
    %59 = vector.load %arg5[%c2_47, %c0_48, %c0_49] : memref<4x1x128xf32, #tpu.memory_space<vmem>>, vector<1x1x128xf32>
    %60 = vector.shape_cast %59 : vector<1x1x128xf32> to vector<1x128xf32>
    %61 = vector.broadcast %60 : vector<1x128xf32> to vector<128x128xf32>
    %62 = arith.addf %58, %61 : vector<128x128xf32>
    %c2_50 = arith.constant 2 : index
    %c0_51 = arith.constant 0 : index
    %c0_52 = arith.constant 0 : index
    %63 = vector.load %arg6[%c2_50, %c0_51, %c0_52] : memref<4x128x1xf32, #tpu.memory_space<vmem>>, vector<1x128x1xf32>
    %64 = vector.shape_cast %63 : vector<1x128x1xf32> to vector<128x1xf32>
    %65 = vector.broadcast %64 : vector<128x1xf32> to vector<128x128xf32>
    %66 = arith.mulf %65, %62 : vector<128x128xf32>
    %67 = arith.addf %45, %66 : vector<128x128xf32>
    %c3 = arith.constant 3 : index
    %c0_53 = arith.constant 0 : index
    %c0_54 = arith.constant 0 : index
    %68 = vector.load %arg2[%c3, %c0_53, %c0_54] : memref<4x128x512xbf16, #tpu.memory_space<vmem>>, vector<1x128x512xbf16>
    %69 = vector.shape_cast %68 : vector<1x128x512xbf16> to vector<128x512xbf16>
    %cst_55 = arith.constant dense<0.000000e+00> : vector<128x512xf32>
    %70 = tpu.matmul %0, %69, %cst_55 {dimension_numbers = #tpu.dot_dimension_numbers<[1], [0], [0], [1], [0, 0, 1, 1], [], []>} : vector<128x128xbf16>, vector<128x512xbf16>, vector<128x512xf32> -> vector<128x512xf32>
    %c3_56 = arith.constant 3 : index
    %c0_57 = arith.constant 0 : index
    %c0_58 = arith.constant 0 : index
    %71 = vector.load %arg3[%c3_56, %c0_57, %c0_58] : memref<4x1x512xf32, #tpu.memory_space<vmem>>, vector<1x1x512xf32>
    %72 = vector.shape_cast %71 : vector<1x1x512xf32> to vector<1x512xf32>
    %73 = vector.broadcast %72 : vector<1x512xf32> to vector<128x512xf32>
    %74 = arith.addf %70, %73 : vector<128x512xf32>
    %cst_59 = arith.constant 0.000000e+00 : f32
    %75 = vector.broadcast %cst_59 : f32 to vector<128x512xf32>
    %76 = arith.maximumf %74, %75 : vector<128x512xf32>
    %77 = arith.truncf %76 : vector<128x512xf32> to vector<128x512xbf16>
    %c3_60 = arith.constant 3 : index
    %c0_61 = arith.constant 0 : index
    %c0_62 = arith.constant 0 : index
    %78 = vector.load %arg4[%c3_60, %c0_61, %c0_62] : memref<4x512x128xbf16, #tpu.memory_space<vmem>>, vector<1x512x128xbf16>
    %79 = vector.shape_cast %78 : vector<1x512x128xbf16> to vector<512x128xbf16>
    %cst_63 = arith.constant dense<0.000000e+00> : vector<128x128xf32>
    %80 = tpu.matmul %77, %79, %cst_63 {dimension_numbers = #tpu.dot_dimension_numbers<[1], [0], [0], [1], [0, 0, 1, 1], [], []>} : vector<128x512xbf16>, vector<512x128xbf16>, vector<128x128xf32> -> vector<128x128xf32>
    %c3_64 = arith.constant 3 : index
    %c0_65 = arith.constant 0 : index
    %c0_66 = arith.constant 0 : index
    %81 = vector.load %arg5[%c3_64, %c0_65, %c0_66] : memref<4x1x128xf32, #tpu.memory_space<vmem>>, vector<1x1x128xf32>
    %82 = vector.shape_cast %81 : vector<1x1x128xf32> to vector<1x128xf32>
    %83 = vector.broadcast %82 : vector<1x128xf32> to vector<128x128xf32>
    %84 = arith.addf %80, %83 : vector<128x128xf32>
    %c3_67 = arith.constant 3 : index
    %c0_68 = arith.constant 0 : index
    %c0_69 = arith.constant 0 : index
    %85 = vector.load %arg6[%c3_67, %c0_68, %c0_69] : memref<4x128x1xf32, #tpu.memory_space<vmem>>, vector<1x128x1xf32>
    %86 = vector.shape_cast %85 : vector<1x128x1xf32> to vector<128x1xf32>
    %87 = vector.broadcast %86 : vector<128x1xf32> to vector<128x128xf32>
    %88 = arith.mulf %87, %84 : vector<128x128xf32>
    %89 = arith.addf %67, %88 : vector<128x128xf32>
    %c0_70 = arith.constant 0 : index
    %c0_71 = arith.constant 0 : index
    %90 = vector.load %arg7[%c0_70, %c0_71] : memref<128x128xf32, #tpu.memory_space<vmem>>, vector<128x128xf32>
    tpu.vector_store %arg7[%c0_70, %c0_71], %89 {strides = array<i32>} : memref<128x128xf32, #tpu.memory_space<vmem>>, vector<128x128xf32>,
    return
  }
  func.func @transform_0(%arg0: i32) -> (i32, i32) {
    %c0_i32 = arith.constant 0 : i32
    %c0_i32_0 = arith.constant 0 : i32
    return %arg0, %c0_i32 : i32, i32
  }
  func.func @transform_1(%arg0: i32) -> (i32, i32, i32) {
    %c0_i32 = arith.constant 0 : i32
    %c0_i32_0 = arith.constant 0 : i32
    %c0_i32_1 = arith.constant 0 : i32
    %c0_i32_2 = arith.constant 0 : i32
    return %c0_i32, %c0_i32_0, %c0_i32_1 : i32, i32, i32
  }
  func.func @transform_2(%arg0: i32) -> (i32, i32, i32) {
    %c0_i32 = arith.constant 0 : i32
    %c0_i32_0 = arith.constant 0 : i32
    %c0_i32_1 = arith.constant 0 : i32
    %c0_i32_2 = arith.constant 0 : i32
    return %c0_i32, %c0_i32_0, %c0_i32_1 : i32, i32, i32
  }
  func.func @transform_3(%arg0: i32) -> (i32, i32, i32) {
    %c0_i32 = arith.constant 0 : i32
    %c0_i32_0 = arith.constant 0 : i32
    %c0_i32_1 = arith.constant 0 : i32
    %c0_i32_2 = arith.constant 0 : i32
    return %c0_i32, %c0_i32_0, %c0_i32_1 : i32, i32, i32
  }
  func.func @transform_4(%arg0: i32) -> (i32, i32, i32) {
    %c0_i32 = arith.constant 0 : i32
    %c0_i32_0 = arith.constant 0 : i32
    %c0_i32_1 = arith.constant 0 : i32
    %c0_i32_2 = arith.constant 0 : i32
    return %c0_i32, %c0_i32_0, %c0_i32_1 : i32, i32, i32
  }
  func.func @transform_5(%arg0: i32) -> (i32, i32, i32) {
    %c0_i32 = arith.constant 0 : i32
    %c0_i32_0 = arith.constant 0 : i32
    %c0_i32_1 = arith.constant 0 : i32
    return %c0_i32, %arg0, %c0_i32_0 : i32, i32, i32
  }
  func.func @transform_6(%arg0: i32) -> (i32, i32) {
    %c0_i32 = arith.constant 0 : i32
    %c0_i32_0 = arith.constant 0 : i32
    return %arg0, %c0_i32 : i32, i32
  }
}

</mosaic_0001>

<bundles_post_ra>
// kernel: tpu_custom_call.1
= control target key start
LH: loop header
LB: loop body
LE: loop exit
PB: predicated region body
PF: predicated region fallthrough
CT: control target
= control target key end

     0   :  { %s8364_s0 = inlined_call_operand.hbm [shape: bf16[256,128], index: 0, kind: input, shape index: {}]   ;;  %s8365_s1 = inlined_call_operand.vmem [shape: bf16[4,128,512], index: 1, kind: input, shape index: {}]   ;;  %s8366_s2 = inlined_call_operand.hbm [shape: f32[4,1,512], index: 2, kind: input, shape index: {}]   ;;  %s8367_s3 = inlined_call_operand.hbm [shape: bf16[4,512,128], index: 3, kind: input, shape index: {}]   ;;  %s8368_s4 = inlined_call_operand.vmem [shape: f32[4,1,128], index: 4, kind: input, shape index: {}]   ;;  %s8369_s5 = inlined_call_operand.vmem [shape: f32[4,256,1], index: 5, kind: input, shape index: {}]   ;;  %s8370_s6 = inlined_call_operand.hbm [shape: f32[256,128], index: 6, kind: output, shape index: {}]  }
   0x1   :  { %8375 = sst [smem:[#allocation13_spill]] %s8366_s2 }
   0x2   :  { %11 = vsyncpa [#allocation3], 0 }
   0x3   :  { %13 = vsyncpa [#allocation3 + $0x1], 0 }
   0x4   :  { %14 = vsyncpa [#allocation6], 0 }
   0x5   :  { %15 = vsyncpa [#allocation4], 0 }
   0x6   :  { %17 = vsyncpa [#allocation4 + $0x1], 0  ;;  %s6883_s21 = smov 0   ;;  %s6885_s22 = smov 0  }
   0x7   :  { %s6887_s23 = smov 0   ;;  %s6889_s24 = smov 0  }
   0x8 LB: > { %s6904_s25 = sadd.s32 4294967295, %s6835_s24   ;;  %s5314_s26 = sadd.s32 4294967294, %s6835_s24   ;;  %s6835_s24 = sphi %s6889_s24, %s8392_s24   ;;  %s6831_s23 = sphi %s6887_s23, %s8391_s23   ;;  %s6827_s22 = sphi %s6885_s22, %s8390_s22   ;;  %s6823_s21 = sphi %s6883_s21, %s8389_s21  }
   0x9   : > { %s6908_s27 = sadd.s32 1, %s6835_s24   ;;  %s30_s28 = sadd.s32 1, %s6831_s23 }
   0xa   : > { %s27_s29 = ssub.s32 %s6835_s24, %s6908_s27  ;;  %p37_p0 = scmp.ne.s32.totalorder %s6831_s23, %s6827_s22 }
   0xb   : > { %p28_p1 = scmp.eq.s32.totalorder %s27_s29, 0  ;;  %p38_p2 = scmp.eq.s32.totalorder %s6835_s24, 0 }
   0xc   : > { %p43_p3 = scmp.ne.s32.totalorder %s6827_s22, %s6823_s21  ;;  %p8371_p4 = scmp.eq.s32.totalorder %s6904_s25, 0 }
   0xd   : > { %s6920_s30 = scalar_select %p28_p1, %s6831_s23, %s30_s28  }
   0xe   : > { %p6922_p5 = por %p38_p2, %p37_p0  ;;  %p6928_p6 = por %p8371_p4, %p43_p3 }
   0xf   : > { %p177_p7 = scmp.eq.s32.totalorder %s6904_s25, 1  ;;  %p183_p8 = scmp.eq.s32.totalorder %s5314_s26, 1 }
  0x10   : > { %s8377_s8 = scalar_select %p6928_p6, 1, 0 }
  0x11   : > { %p5315_p9 = scmp.ge.s32.totalorder %s6835_s24, 1  ;;  %p190_p10 = scmp.lt.s32.totalorder %s6835_s24, 3 }
  0x12   : > { %p6935_p11 = por %p177_p7, %p37_p0  ;;  %p6939_p12 = por %p183_p8, %p43_p3 }
  0x13   : > { %p6943_p13 = pnand %p5315_p9, %p190_p10  ;;  %s6837_s12 = smov [#allocation5]  }
  0x14   : > { %s8378_s9 = scalar_select %p6935_p11, 1, 0 }
  0x15   : > { %s8379_s10 = scalar_select %p6939_p12, 1, 0 }
  0x16   : > { %p6278_p1 = pneg %p6943_p13  ;;  %s205_s13 = sshll.u32 %s6837_s12, 4  ;;  %s206_s13 = int_to_ptr.vmem [resolvable:$true] %s205_s13 }
  0x17   : > { %s6838_s15 = smov [#allocation7]   ;;  %s6700_s17 = scalar_lea.vmem %s206_s13, 256 }
  0x18   : > { %p6951_p2 = pnand %p6278_p1, %p8371_p4  ;;  %s218_s16 = sshll.u32 %s6838_s15, 4  ;;  %s219_s16 = int_to_ptr.vmem [resolvable:$true] %s218_s16 }
  0x19   : > { %p6701_p3 = scmp.ne.s32.totalorder %s206_s13, %s6700_s17  ;;  %p6708_p9 = scmp.lt.s32.totalorder %s206_s13, %s206_s13 }
  0x1a   : > { %p6691_p0 = pneg %p6951_p2  ;;  %p6709_p10 = scmp.lt.s32.totalorder %s6700_s17, %s6700_s17 }
  0x1c   : > { %p6703_p7 = pnand %p6701_p3, %p6691_p0  ;;  %p6710_p12 = por %p6709_p10, %p6708_p9 }
  0x1e   : > { %p6704_p8 = pneg %p6703_p7 }
  0x20   : > { %p6711_p1 = pnand %p6710_p12, %p6704_p8 }
  0x22   : > { %6714 = shalt.err (!%p6711_p1)
}
  0x23   : > { %s6839_s18 = smov 64   ;;  %s6840_s19 = smov 4  }
  0x24   : > { %s8382_s2 = sld [smem:[#allocation13_spill]]  ;;  %s6726_s28 = scalar_lea.vmem %s219_s16, 16384 }
  0x25   : > { %p6727_p4 = scmp.ne.s32.totalorder %s219_s16, %s6726_s28  ;;  %p6734_p11 = scmp.lt.s32.totalorder %s219_s16, %s219_s16 }
  0x26   : > { %p6735_p6 = scmp.lt.s32.totalorder %s6726_s28, %s6726_s28 }
  0x27   : > { %p6729_p3 = pnand %p6727_p4, %p6691_p0 }
  0x28   : > { %p6736_p9 = por %p6735_p6, %p6734_p11 }
  0x29   : > { %p6730_p7 = pneg %p6729_p3 }
  0x2a   : > { %6281 = dma.hbm_to_vmem [thread:$0]  (!%p6951_p2), %s8382_s2, 256, %s206_s13, [#allocation6], %s6839_s18, %s6839_s18, %s6840_s19  }
  0x2b   : > { %p6737_p12 = pnand %p6736_p9, %p6730_p7 }
  0x2d   : > { %6740 = shalt.err (!%p6737_p12)
}
  0x2e   : > { %6284 = dma.hbm_to_vmem [thread:$0]  (!%p6951_p2), %s8367_s3, 16384, %s219_s16, [#allocation6], %s6839_s18, %s6839_s18, %s6840_s19  }
  0x2f   : > { %p8374_p8 = scmp.ge.s32.totalorder %s6835_s24, 2 }
  0x30   : > { %s6977_s13 = sand.u32 (!%p8374_p8), 1, %s6831_s23   ;;  %s5751_s15 = sshll.u32 (!%p8374_p8), %s6835_s24, 10 }
  0x31   : > { %231 = sbr.rel (%p8374_p8) target bundleno = 110 (0x6e), region = 32  ;;  %s5319_s17 = sshll.u32 (!%p8374_p8), %s6977_s13, 6 }
  0x32   : > { %s6984_s26 = scalar_lea.hbm (!%p8374_p8), %s8364_s0, %s5751_s15  ;;  %s239_s16 = scalar_lea.vmem (!%p8374_p8), [#allocation2], %s5319_s17 }
  0x33   : > { %s246_s18 = sshll.u32 (!%p8374_p8), %s239_s16, 4  ;;  %s236_s19 = scalar_lea.sflag (!%p8374_p8), [#allocation3], %s6977_s13  ;;  %s6986_s18 = int_to_ptr.vmem [resolvable:$true] %s246_s18 }
  0x34   : > { %s6741_s28 = scalar_lea.hbm (!%p8374_p8), %s6984_s26, 1024  ;;  %s6745_s2 = scalar_lea.hbm (!%p8374_p8), %s8364_s0, 2048 }
  0x35   : > { %p6742_p4 = scmp.ne.s32.totalorder (!%p8374_p8), %s6984_s26, %s6741_s28  ;;  %p6746_p2 = scmp.lt.s32.totalorder (!%p8374_p8), %s6984_s26, %s8364_s0 }
  0x36   : > { %p6747_p0 = scmp.lt.s32.totalorder %s6745_s2, %s6741_s28 }
  0x37   : > { %p6743_p6 = pnand %p6742_p4, %p6922_p5 }
  0x38   : > { %p6748_p10 = por %p6747_p0, %p6746_p2 }
  0x39   : > { %p6744_p11 = pneg %p6743_p6 }
  0x3b   : > { %p6749_p1 = pnand %p6748_p10, %p6744_p11 }
  0x3d   : > { %6752 = shalt.err (!%p6749_p1)
}
  0x3e   : > { %s6753_s17 = scalar_lea.vmem %s6986_s18, 1024  ;;  %s6841_s14 = smov [#allocation2]  }
  0x3f   : > { %p6754_p3 = scmp.ne.s32.totalorder %s6986_s18, %s6753_s17  ;;  %s6757_s16 = sshll.u32 %s6841_s14, 4  ;;  %s6758_s16 = int_to_ptr.vmem [resolvable:$false] %s6757_s16 }
  0x40   : > { %s6759_s29 = scalar_lea.vmem %s6758_s16, 2048  ;;  %p6760_p12 = scmp.lt.s32.totalorder %s6986_s18, %s6758_s16 }
  0x41   : > { %p6755_p7 = pnand %p6754_p3, %p6922_p5  ;;  %p6761_p4 = scmp.lt.s32.totalorder %s6759_s29, %s6753_s17 }
  0x43   : > { %p6756_p9 = pneg %p6755_p7  ;;  %p6762_p6 = por %p6761_p4, %p6760_p12 }
  0x45   : > { %p6763_p8 = pnand %p6762_p6, %p6756_p9 }
  0x47   : > { %6766 = shalt.err (!%p6763_p8)
}
  0x48   : > { %s6842_s2 = smov 64   ;;  %s6843_s28 = smov 4  }
  0x49   : > { %6270 = dma.hbm_to_vmem [thread:$0]  (%p6922_p5), %s6984_s26, 1024, %s6986_s18, %s236_s19, %s6842_s2, %s6842_s2, %s6843_s28  }
  0x4a   : > { %255 = sbr.rel (!%p6922_p5) target bundleno = 110 (0x6e), region = 40  ;;  %s5322_s12 = sshll.u32 (%p6922_p5), %s6977_s13, 9 }
  0x4b   : > { %s5752_s20 = sshll.u32 (%p6922_p5), %s6835_s24, 7  ;;  %s7023_s7 = scalar_lea.vmem (%p6922_p5), [#allocation8], %s5322_s12 }
  0x4c   : > { %s7018_s14 = scalar_lea.vmem (%p6922_p5), %s8369_s5, %s5752_s20 }
  0x4d   : > { %v417_v0 = vld [vmem:[%s7018_s14] sm:$0xff] (%p6922_p5)  ;;  %v419_v1 = vld [vmem:[%s7018_s14 + $0x8] sm:$0xff] (%p6922_p5)  ;;  %v421_v2 = vld [vmem:[%s7018_s14 + $0x10] sm:$0xff] (%p6922_p5) }
  0x4e   : > { %418 = vst [vmem:[%s7023_s7] sm:$0xff] (%p6922_p5), %v417_v0  ;;  %420 = vst [vmem:[%s7023_s7 + $0x8] sm:$0xff] (%p6922_p5), %v419_v1  ;;  %v423_v3 = vld [vmem:[%s7018_s14 + $0x18] sm:$0xff] (%p6922_p5)  ;;  %v425_v4 = vld [vmem:[%s7018_s14 + $0x20] sm:$0xff] (%p6922_p5) }
  0x4f   : > { %422 = vst [vmem:[%s7023_s7 + $0x10] sm:$0xff] %v421_v2  ;;  %v427_v5 = vld [vmem:[%s7018_s14 + $0x28] sm:$0xff]  ;;  %424 = vst [vmem:[%s7023_s7 + $0x18] sm:$0xff] %v423_v3  ;;  %v429_v6 = vld [vmem:[%s7018_s14 + $0x30] sm:$0xff] }
  0x50   : > { %426 = vst [vmem:[%s7023_s7 + $0x20] sm:$0xff] %v425_v4  ;;  %428 = vst [vmem:[%s7023_s7 + $0x28] sm:$0xff] %v427_v5  ;;  %v431_v7 = vld [vmem:[%s7018_s14 + $0x38] sm:$0xff]  ;;  %v433_v8 = vld [vmem:[%s7018_s14 + $0x40] sm:$0xff] }
  0x51   : > { %430 = vst [vmem:[%s7023_s7 + $0x30] sm:$0xff] %v429_v6  ;;  %432 = vst [vmem:[%s7023_s7 + $0x38] sm:$0xff] %v431_v7  ;;  %v435_v9 = vld [vmem:[%s7018_s14 + $0x48] sm:$0xff]  ;;  %v437_v10 = vld [vmem:[%s7018_s14 + $0x50] sm:$0xff] }
  0x52   : > { %434 = vst [vmem:[%s7023_s7 + $0x40] sm:$0xff] %v433_v8  ;;  %v439_v11 = vld [vmem:[%s7018_s14 + $0x58] sm:$0xff]  ;;  %436 = vst [vmem:[%s7023_s7 + $0x48] sm:$0xff] %v435_v9  ;;  %v441_v12 = vld [vmem:[%s7018_s14 + $0x60] sm:$0xff] }
  0x53   : > { %438 = vst [vmem:[%s7023_s7 + $0x50] sm:$0xff] %v437_v10  ;;  %440 = vst [vmem:[%s7023_s7 + $0x58] sm:$0xff] %v439_v11  ;;  %v443_v13 = vld [vmem:[%s7018_s14 + $0x68] sm:$0xff]  ;;  %v445_v14 = vld [vmem:[%s7018_s14 + $0x70] sm:$0xff] }
  0x54   : > { %442 = vst [vmem:[%s7023_s7 + $0x60] sm:$0xff] %v441_v12  ;;  %444 = vst [vmem:[%s7023_s7 + $0x68] sm:$0xff] %v443_v13  ;;  %v447_v15 = vld [vmem:[%s7018_s14 + $0x78] sm:$0xff]  ;;  %v449_v16 = vld [vmem:[%s7018_s14 + $0x100] sm:$0xff] }
  0x55   : > { %446 = vst [vmem:[%s7023_s7 + $0x70] sm:$0xff] %v445_v14  ;;  %v451_v17 = vld [vmem:[%s7018_s14 + $0x108] sm:$0xff]  ;;  %448 = vst [vmem:[%s7023_s7 + $0x78] sm:$0xff] %v447_v15  ;;  %v453_v18 = vld [vmem:[%s7018_s14 + $0x110] sm:$0xff] }
  0x56   : > { %450 = vst [vmem:[%s7023_s7 + $0x80] sm:$0xff] %v449_v16  ;;  %452 = vst [vmem:[%s7023_s7 + $0x88] sm:$0xff] %v451_v17  ;;  %v455_v19 = vld [vmem:[%s7018_s14 + $0x118] sm:$0xff]  ;;  %v457_v20 = vld [vmem:[%s7018_s14 + $0x120] sm:$0xff] }
  0x57   : > { %454 = vst [vmem:[%s7023_s7 + $0x90] sm:$0xff] %v453_v18  ;;  %456 = vst [vmem:[%s7023_s7 + $0x98] sm:$0xff] %v455_v19  ;;  %v459_v21 = vld [vmem:[%s7018_s14 + $0x128] sm:$0xff]  ;;  %v461_v22 = vld [vmem:[%s7018_s14 + $0x130] sm:$0xff] }
  0x58   : > { %458 = vst [vmem:[%s7023_s7 + $0xa0] sm:$0xff] %v457_v20  ;;  %v463_v23 = vld [vmem:[%s7018_s14 + $0x138] sm:$0xff]  ;;  %460 = vst [vmem:[%s7023_s7 + $0xa8] sm:$0xff] %v459_v21  ;;  %v465_v24 = vld [vmem:[%s7018_s14 + $0x140] sm:$0xff] }
  0x59   : > { %462 = vst [vmem:[%s7023_s7 + $0xb0] sm:$0xff] %v461_v22  ;;  %464 = vst [vmem:[%s7023_s7 + $0xb8] sm:$0xff] %v463_v23  ;;  %v467_v25 = vld [vmem:[%s7018_s14 + $0x148] sm:$0xff]  ;;  %v469_v26 = vld [vmem:[%s7018_s14 + $0x150] sm:$0xff] }
  0x5a   : > { %466 = vst [vmem:[%s7023_s7 + $0xc0] sm:$0xff] %v465_v24  ;;  %468 = vst [vmem:[%s7023_s7 + $0xc8] sm:$0xff] %v467_v25  ;;  %v471_v27 = vld [vmem:[%s7018_s14 + $0x158] sm:$0xff]  ;;  %v473_v28 = vld [vmem:[%s7018_s14 + $0x160] sm:$0xff] }
  0x5b   : > { %470 = vst [vmem:[%s7023_s7 + $0xd0] sm:$0xff] %v469_v26  ;;  %v475_v29 = vld [vmem:[%s7018_s14 + $0x168] sm:$0xff]  ;;  %472 = vst [vmem:[%s7023_s7 + $0xd8] sm:$0xff] %v471_v27  ;;  %v477_v30 = vld [vmem:[%s7018_s14 + $0x170] sm:$0xff] }
  0x5c   : > { %474 = vst [vmem:[%s7023_s7 + $0xe0] sm:$0xff] %v473_v28  ;;  %476 = vst [vmem:[%s7023_s7 + $0xe8] sm:$0xff] %v475_v29  ;;  %v479_v31 = vld [vmem:[%s7018_s14 + $0x178] sm:$0xff]  ;;  %v481_v32 = vld [vmem:[%s7018_s14 + $0x200] sm:$0xff] }
  0x5d   : > { %478 = vst [vmem:[%s7023_s7 + $0xf0] sm:$0xff] %v477_v30  ;;  %480 = vst [vmem:[%s7023_s7 + $0xf8] sm:$0xff] %v479_v31  ;;  %v483_v33 = vld [vmem:[%s7018_s14 + $0x208] sm:$0xff]  ;;  %v485_v34 = vld [vmem:[%s7018_s14 + $0x210] sm:$0xff] }
  0x5e   : > { %482 = vst [vmem:[%s7023_s7 + $0x100] sm:$0xff] %v481_v32  ;;  %v487_v35 = vld [vmem:[%s7018_s14 + $0x218] sm:$0xff]  ;;  %484 = vst [vmem:[%s7023_s7 + $0x108] sm:$0xff] %v483_v33  ;;  %v489_v36 = vld [vmem:[%s7018_s14 + $0x220] sm:$0xff] }
  0x5f   : > { %486 = vst [vmem:[%s7023_s7 + $0x110] sm:$0xff] %v485_v34  ;;  %488 = vst [vmem:[%s7023_s7 + $0x118] sm:$0xff] %v487_v35  ;;  %v491_v37 = vld [vmem:[%s7018_s14 + $0x228] sm:$0xff]  ;;  %v493_v38 = vld [vmem:[%s7018_s14 + $0x230] sm:$0xff] }
  0x60   : > { %490 = vst [vmem:[%s7023_s7 + $0x120] sm:$0xff] %v489_v36  ;;  %492 = vst [vmem:[%s7023_s7 + $0x128] sm:$0xff] %v491_v37  ;;  %v495_v39 = vld [vmem:[%s7018_s14 + $0x238] sm:$0xff]  ;;  %v497_v40 = vld [vmem:[%s7018_s14 + $0x240] sm:$0xff] }
  0x61   : > { %494 = vst [vmem:[%s7023_s7 + $0x130] sm:$0xff] %v493_v38  ;;  %v499_v41 = vld [vmem:[%s7018_s14 + $0x248] sm:$0xff]  ;;  %496 = vst [vmem:[%s7023_s7 + $0x138] sm:$0xff] %v495_v39  ;;  %v501_v42 = vld [vmem:[%s7018_s14 + $0x250] sm:$0xff] }
  0x62   : > { %498 = vst [vmem:[%s7023_s7 + $0x140] sm:$0xff] %v497_v40  ;;  %500 = vst [vmem:[%s7023_s7 + $0x148] sm:$0xff] %v499_v41  ;;  %v503_v43 = vld [vmem:[%s7018_s14 + $0x258] sm:$0xff]  ;;  %v505_v44 = vld [vmem:[%s7018_s14 + $0x260] sm:$0xff] }
  0x63   : > { %502 = vst [vmem:[%s7023_s7 + $0x150] sm:$0xff] %v501_v42  ;;  %504 = vst [vmem:[%s7023_s7 + $0x158] sm:$0xff] %v503_v43  ;;  %v507_v45 = vld [vmem:[%s7018_s14 + $0x268] sm:$0xff]  ;;  %v509_v46 = vld [vmem:[%s7018_s14 + $0x270] sm:$0xff] }
  0x64   : > { %506 = vst [vmem:[%s7023_s7 + $0x160] sm:$0xff] %v505_v44  ;;  %v511_v47 = vld [vmem:[%s7018_s14 + $0x278] sm:$0xff]  ;;  %508 = vst [vmem:[%s7023_s7 + $0x168] sm:$0xff] %v507_v45  ;;  %v513_v48 = vld [vmem:[%s7018_s14 + $0x300] sm:$0xff] }
  0x65   : > { %510 = vst [vmem:[%s7023_s7 + $0x170] sm:$0xff] %v509_v46  ;;  %512 = vst [vmem:[%s7023_s7 + $0x178] sm:$0xff] %v511_v47  ;;  %v515_v49 = vld [vmem:[%s7018_s14 + $0x308] sm:$0xff]  ;;  %v517_v50 = vld [vmem:[%s7018_s14 + $0x310] sm:$0xff] }
  0x66   : > { %514 = vst [vmem:[%s7023_s7 + $0x180] sm:$0xff] %v513_v48  ;;  %516 = vst [vmem:[%s7023_s7 + $0x188] sm:$0xff] %v515_v49  ;;  %v519_v51 = vld [vmem:[%s7018_s14 + $0x318] sm:$0xff]  ;;  %v521_v52 = vld [vmem:[%s7018_s14 + $0x320] sm:$0xff] }
  0x67   : > { %518 = vst [vmem:[%s7023_s7 + $0x190] sm:$0xff] %v517_v50  ;;  %v523_v53 = vld [vmem:[%s7018_s14 + $0x328] sm:$0xff]  ;;  %520 = vst [vmem:[%s7023_s7 + $0x198] sm:$0xff] %v519_v51  ;;  %v525_v54 = vld [vmem:[%s7018_s14 + $0x330] sm:$0xff] }
  0x68   : > { %522 = vst [vmem:[%s7023_s7 + $0x1a0] sm:$0xff] %v521_v52  ;;  %524 = vst [vmem:[%s7023_s7 + $0x1a8] sm:$0xff] %v523_v53  ;;  %v527_v55 = vld [vmem:[%s7018_s14 + $0x338] sm:$0xff]  ;;  %v529_v56 = vld [vmem:[%s7018_s14 + $0x340] sm:$0xff] }
  0x69   : > { %526 = vst [vmem:[%s7023_s7 + $0x1b0] sm:$0xff] %v525_v54  ;;  %528 = vst [vmem:[%s7023_s7 + $0x1b8] sm:$0xff] %v527_v55  ;;  %v531_v57 = vld [vmem:[%s7018_s14 + $0x348] sm:$0xff]  ;;  %v533_v58 = vld [vmem:[%s7018_s14 + $0x350] sm:$0xff] }
  0x6a   : > { %530 = vst [vmem:[%s7023_s7 + $0x1c0] sm:$0xff] %v529_v56  ;;  %v535_v59 = vld [vmem:[%s7018_s14 + $0x358] sm:$0xff]  ;;  %532 = vst [vmem:[%s7023_s7 + $0x1c8] sm:$0xff] %v531_v57  ;;  %v537_v60 = vld [vmem:[%s7018_s14 + $0x360] sm:$0xff] }
  0x6b   : > { %534 = vst [vmem:[%s7023_s7 + $0x1d0] sm:$0xff] %v533_v58  ;;  %536 = vst [vmem:[%s7023_s7 + $0x1d8] sm:$0xff] %v535_v59  ;;  %v539_v61 = vld [vmem:[%s7018_s14 + $0x368] sm:$0xff]  ;;  %v541_v62 = vld [vmem:[%s7018_s14 + $0x370] sm:$0xff] }
  0x6c   : > { %538 = vst [vmem:[%s7023_s7 + $0x1e0] sm:$0xff] %v537_v60  ;;  %540 = vst [vmem:[%s7023_s7 + $0x1e8] sm:$0xff] %v539_v61  ;;  %v543_v63 = vld [vmem:[%s7018_s14 + $0x378] sm:$0xff] }
  0x6d   : > { %542 = vst [vmem:[%s7023_s7 + $0x1f0] sm:$0xff] %v541_v62  ;;  %544 = vst [vmem:[%s7023_s7 + $0x1f8] sm:$0xff] %v543_v63 }
  0x6e PF: > { %553 = sbr.rel (%p6943_p13) target bundleno = 1449 (0x5a9), region = 78  ;;  %s7153_s13 = sand.u32 (!%p6943_p13), 1, %s6827_s22  }
  0x6f   : > { %s5326_s26 = sshll.u32 (!%p6943_p13), %s7153_s13, 6  ;;  %s556_s18 = scalar_lea.sflag (!%p6943_p13), [#allocation3], %s7153_s13 }
  0x70   : > { %s7157_s19 = scalar_lea.vmem (!%p6943_p13), [#allocation2], %s5326_s26  ;;  %p8383_p5 = scmp.ne.s32.totalorder (!%p6943_p13), %s8377_s8, 0 }
  0x73   : > { %6810 = dma.done.wait (%p8383_p5), %s556_s18, 1024  }
  0x74   : > { %6812 = vsyncadd (%p8383_p5), %s556_s18, 4294966272  ;;  %p8384_p8 = scmp.eq.s32.totalorder %s6904_s25, 0 }
  0x76   : > { %6814 = dma.done.wait (%p8384_p8), [#allocation6], 16640   ;;  %p8385_p13 = pmov %p8384_p8 }
  0x77   : > { %v6844_v0 = vmov 0   ;;  %v6337_v1 = vld [vmem:[%s8365_s1 + $0xe4] ss:$16 sps:$4 sm:$0xff]   ;;  %v6339_v2 = vld [vmem:[%s8365_s1 + $0xec] ss:$16 sps:$4 sm:$0xff]   ;;  %s5329_s26 = sshll.u32 %s7153_s13, 9 }
  0x78   : > { %6816 = vsyncadd (%p8385_p13), [#allocation6], 4294950656  ;;  %921 = vmatprep.mubr.bf16.mxu0 %v6844_v0  ;;  %1034 = vmatprep.mubr.bf16.mxu1 %v6844_v0  ;;  %v6341_v3 = vld [vmem:[%s8365_s1 + $0xe0] ss:$16 sps:$4 sm:$0xff]   ;;  %v6342_v4 = vld [vmem:[%s8365_s1 + $0xe8] ss:$16 sps:$4 sm:$0xff]  }
  0x79   : > { %6335 = vset.pattern.permute.xlu0 %v6844_v0  ;;  %6336 = vset.pattern.permute.xlu1 %v6844_v0  ;;  %v6343_v5 = vld [vmem:[%s8365_s1 + $0xc4] ss:$16 sps:$4 sm:$0xff]   ;;  %v6345_v6 = vld [vmem:[%s8365_s1 + $0xcc] ss:$16 sps:$4 sm:$0xff]   ;;  %v6347_v7 = vld [vmem:[%s8365_s1 + $0xc0] ss:$16 sps:$4 sm:$0xff]  }
  0x7a   : > { %889 = vmatprep.subr.bf16.mxu0 %v6337_v1  ;;  %1002 = vmatprep.subr.bf16.mxu1 %v6339_v2  ;;  %v6348_v8 = vld [vmem:[%s8365_s1 + $0xc8] ss:$16 sps:$4 sm:$0xff]   ;;  %v6349_v9 = vld [vmem:[%s8365_s1 + $0xa4] ss:$16 sps:$4 sm:$0xff]   ;;  %v6351_v10 = vld [vmem:[%s8365_s1 + $0xac] ss:$16 sps:$4 sm:$0xff]  }
  0x7b   : > { %890 = vmatpush1.bf16.msra.mxu0 %v6341_v3  ;;  %1003 = vmatpush1.bf16.msra.mxu1 %v6342_v4  ;;  %v6353_v11 = vld [vmem:[%s8365_s1 + $0xa0] ss:$16 sps:$4 sm:$0xff]   ;;  %v6354_v12 = vld [vmem:[%s8365_s1 + $0xa8] ss:$16 sps:$4 sm:$0xff]   ;;  %v6355_v13 = vld [vmem:[%s8365_s1 + $0x84] ss:$16 sps:$4 sm:$0xff]  }
  0x7c   : > { %891 = vmatprep.subr.bf16.mxu0 %v6343_v5  ;;  %1004 = vmatprep.subr.bf16.mxu1 %v6345_v6  ;;  %v6357_v14 = vld [vmem:[%s8365_s1 + $0x8c] ss:$16 sps:$4 sm:$0xff]   ;;  %v6359_v15 = vld [vmem:[%s8365_s1 + $0x80] ss:$16 sps:$4 sm:$0xff]   ;;  %v6360_v16 = vld [vmem:[%s8365_s1 + $0x88] ss:$16 sps:$4 sm:$0xff]  }
  0x7d   : > { %v6361_v17 = vld [vmem:[%s8365_s1 + $0x64] ss:$16 sps:$4 sm:$0xff]   ;;  %v6363_v18 = vld [vmem:[%s8365_s1 + $0x6c] ss:$16 sps:$4 sm:$0xff]   ;;  %v6365_v19 = vld [vmem:[%s8365_s1 + $0x60] ss:$16 sps:$4 sm:$0xff]  }
  0x7e   : > { %v6366_v20 = vld [vmem:[%s8365_s1 + $0x68] ss:$16 sps:$4 sm:$0xff]   ;;  %v6367_v21 = vld [vmem:[%s8365_s1 + $0x44] ss:$16 sps:$4 sm:$0xff]   ;;  %v6369_v22 = vld [vmem:[%s8365_s1 + $0x4c] ss:$16 sps:$4 sm:$0xff]  }
  0x7f   : > { %892 = vmatpush1.bf16.msra.mxu0 %v6347_v7  ;;  %1005 = vmatpush1.bf16.msra.mxu1 %v6348_v8  ;;  %v6371_v23 = vld [vmem:[%s8365_s1 + $0x40] ss:$16 sps:$4 sm:$0xff]   ;;  %v6372_v24 = vld [vmem:[%s8365_s1 + $0x48] ss:$16 sps:$4 sm:$0xff]   ;;  %v6373_v25 = vld [vmem:[%s8365_s1 + $0x24] ss:$16 sps:$4 sm:$0xff]  }
  0x80   : > { %893 = vmatprep.subr.bf16.mxu0 %v6349_v9  ;;  %1006 = vmatprep.subr.bf16.mxu1 %v6351_v10  ;;  %v6375_v26 = vld [vmem:[%s8365_s1 + $0x2c] ss:$16 sps:$4 sm:$0xff]   ;;  %v6377_v27 = vld [vmem:[%s8365_s1 + $0x20] ss:$16 sps:$4 sm:$0xff]   ;;  %v6378_v28 = vld [vmem:[%s8365_s1 + $0x28] ss:$16 sps:$4 sm:$0xff]  }
  0x81   : > { %v6379_v29 = vld [vmem:[%s8365_s1 + $0x4] ss:$16 sps:$4 sm:$0xff]   ;;  %v6381_v30 = vld [vmem:[%s8365_s1 + $0xc] ss:$16 sps:$4 sm:$0xff]   ;;  %v6383_v31 = vld [vmem:[%s8365_s1] ss:$16 sps:$4 sm:$0xff]  }
  0x82   : > { %v6384_v32 = vld [vmem:[%s8365_s1 + $0x8] ss:$16 sps:$4 sm:$0xff]   ;;  %v6385_v33 = vld [vmem:[%s7157_s19] sm:$0xff]   ;;  %v6405_v47 = vld [vmem:[#allocation7 + $0x60] sm:$0xff]   ;;  %s7296_s18 = scalar_lea.vmem [#allocation8], %s5329_s26  ;;  %s5330_s26 = sshll.u32 %s7153_s13, 7 }
  0x83   : > { %894 = vmatpush1.bf16.msra.mxu0 %v6353_v11  ;;  %1007 = vmatpush1.bf16.msra.mxu1 %v6354_v12  ;;  %v6393_v34 = vld [vmem:[#allocation7 + $0x78] sm:$0xff]   ;;  %v6397_v38 = vld [vmem:[#allocation7 + $0x70] sm:$0xff]   ;;  %v6401_v43 = vld [vmem:[#allocation7 + $0x68] sm:$0xff]   ;;  %s8267_s11 = scalar_lea.vmem [#allocation9], %s5330_s26  ;;  %s5753_s16 = sshll.u32 %s6904_s25, 11 }
  0x84   : > { %895 = vmatprep.subr.bf16.mxu0 %v6355_v13  ;;  %1008 = vmatprep.subr.bf16.mxu1 %v6357_v14  ;;  %v6394_v35 = vld [vmem:[#allocation7 + $0x38] sm:$0xff]   ;;  %v6398_v39 = vld [vmem:[#allocation7 + $0x30] sm:$0xff]   ;;  %v6402_v44 = vld [vmem:[#allocation7 + $0x28] sm:$0xff]   ;;  %s5204_s8 = sshll.u32 %s8267_s11, 4  ;;  %s8317_s28 = scalar_lea.hbm %s8370_s6, %s5753_s16  ;;  %s8319_s8 = int_to_ptr.vmem [resolvable:$true] %s5204_s8 }
  0x85   : > { %v6395_v36 = vld [vmem:[#allocation7 + $0xf8] sm:$0xff]   ;;  %v6399_v40 = vld [vmem:[#allocation7 + $0xf0] sm:$0xff]   ;;  %v6403_v45 = vld [vmem:[#allocation7 + $0xe8] sm:$0xff]   ;;  %s5191_s12 = scalar_lea.sflag [#allocation4], %s7153_s13  ;;  %s6767_s20 = scalar_lea.vmem %s8319_s8, 2048 }
  0x86   : > { %v6396_v37 = vld [vmem:[#allocation7 + $0xb8] sm:$0xff]   ;;  %v6400_v42 = vld [vmem:[#allocation7 + $0xb0] sm:$0xff]   ;;  %v6404_v46 = vld [vmem:[#allocation7 + $0xa8] sm:$0xff]   ;;  %p6768_p11 = scmp.ne.s32.totalorder %s8319_s8, %s6767_s20  ;;  %p8386_p2 = scmp.ne.s32.totalorder %s8378_s9, 0 }
  0x87   : > { %896 = vmatpush1.bf16.msra.mxu0 %v6359_v15  ;;  %1009 = vmatpush1.bf16.msra.mxu1 %v6360_v16  ;;  %v6386_v41 = vld [vmem:[%s7157_s19 + $0x8] sm:$0xff]   ;;  %v6406_v48 = vld [vmem:[#allocation7 + $0x20] sm:$0xff]   ;;  %v6413_v56 = vld [vmem:[#allocation7 + $0x50] sm:$0xff]   ;;  %s6845_s25 = smov [#allocation9]  }
  0x88   : > { %897 = vmatprep.subr.bf16.mxu0 %v6361_v17  ;;  %1010 = vmatprep.subr.bf16.mxu1 %v6363_v18  ;;  %v6407_v49 = vld [vmem:[#allocation7 + $0xe0] sm:$0xff]   ;;  %v6409_v52 = vld [vmem:[#allocation7 + $0x58] sm:$0xff]   ;;  %v6414_v57 = vld [vmem:[#allocation7 + $0x10] sm:$0xff]   ;;  %p6769_p0 = pnand %p6768_p11, %p8386_p2  ;;  %s6771_s15 = sshll.u32 %s6845_s25, 4  ;;  %s6772_s15 = int_to_ptr.vmem [resolvable:$false] %s6771_s15 }
  0x89   : > { %v6387_v50 = vld [vmem:[%s7157_s19 + $0x10] sm:$0xff]   ;;  %v6410_v53 = vld [vmem:[#allocation7 + $0x18] sm:$0xff]   ;;  %v6415_v58 = vld [vmem:[#allocation7 + $0xd0] sm:$0xff]   ;;  %s6773_s17 = scalar_lea.vmem %s6772_s15, 4096  ;;  %p6774_p1 = scmp.lt.s32.totalorder %s8319_s8, %s6772_s15 }
  0x8a   : > { %v6408_v51 = vld [vmem:[#allocation7 + $0xa0] sm:$0xff]   ;;  %v6411_v54 = vld [vmem:[#allocation7 + $0xd8] sm:$0xff]   ;;  %v6416_v59 = vld [vmem:[#allocation7 + $0x90] sm:$0xff]   ;;  %p6770_p10 = pneg %p6769_p0  ;;  %p6775_p3 = scmp.lt.s32.totalorder %s6773_s17, %s6767_s20 }
  0x8b   : > { %898 = vmatpush1.bf16.msra.mxu0 %v6365_v19  ;;  %1011 = vmatpush1.bf16.msra.mxu1 %v6366_v20  ;;  %v6412_v55 = vld [vmem:[#allocation7 + $0x98] sm:$0xff]   ;;  %v6417_v60 = vld [vmem:[#allocation7 + $0x48] sm:$0xff]   ;;  %v6389_v1 = vld [vmem:[%s7157_s19 + $0x20] sm:$0xff]   ;;  %v661_v19 = vlaneseq }
  0x8c   : > { %899 = vmatprep.subr.bf16.mxu0 %v6367_v21  ;;  %1012 = vmatprep.subr.bf16.mxu1 %v6369_v22  ;;  %v6388_v61 = vld [vmem:[%s7157_s19 + $0x18] sm:$0xff]   ;;  %v6390_v2 = vld [vmem:[%s7157_s19 + $0x28] sm:$0xff]   ;;  %v6391_v3 = vld [vmem:[%s7157_s19 + $0x30] sm:$0xff]   ;;  %p6776_p7 = por %p6775_p3, %p6774_p1 }
  0x8d   : > { %v6418_v62 = vld [vmem:[#allocation7 + $0x8] sm:$0xff]   ;;  %v6421_v6 = vld [vmem:[#allocation7 + $0x40] sm:$0xff]   ;;  %v1670_v14 = vld [vmem:[%s7296_s18 + $0x10] sm:$0xff]  ;;  %v662_v22 = vshrl.u32 %v661_v19, 7 }
  0x8e   : > { %v6419_v63 = vld [vmem:[#allocation7 + $0xc8] sm:$0xff]   ;;  %v6423_v7 = vld [vmem:[#allocation7 + $0xc0] sm:$0xff]   ;;  %1696 = vperm.xlu1 %6336, %v1670_v14   ;;  %v1671_v15 = vld [vmem:[%s7296_s18 + $0x18] sm:$0xff]  ;;  %p6777_p9 = pnand %p6776_p7, %p6770_p10 }
  0x8f   : > { %900 = vmatpush1.bf16.msra.mxu0 %v6371_v23  ;;  %1013 = vmatpush1.bf16.msra.mxu1 %v6372_v24  ;;  %v6392_v4 = vld [vmem:[%s7157_s19 + $0x38] sm:$0xff]   ;;  %v6422_v8 = vld [vmem:[#allocation7] sm:$0xff]   ;;  %v1674_v18 = vld [vmem:[%s7296_s18 + $0x30] sm:$0xff]  ;;  %v7307_v23 = vsub.s32 1, %v662_v22  ;;  %v7309_v24 = vsub.s32 3, %v662_v22 }
  0x90   : > { %901 = vmatprep.subr.bf16.mxu0 %v6373_v25  ;;  %1014 = vmatprep.subr.bf16.mxu1 %v6375_v26  ;;  %v6420_v5 = vld [vmem:[#allocation7 + $0x88] sm:$0xff]   ;;  %v6424_v9 = vld [vmem:[#allocation7 + $0x80] sm:$0xff]   ;;  %v1675_v20 = vld [vmem:[%s7296_s18 + $0x38] sm:$0xff]  ;;  %v7311_v25 = vsub.s32 0, %v662_v22  ;;  %v7313_v26 = vsub.s32 2, %v662_v22 }
  0x91   : > { %v6427_v10 = vld [vmem:[%s8365_s1 + $0x1e4] ss:$16 sps:$4 sm:$0xff]   ;;  %v6430_v11 = vld [vmem:[%s8365_s1 + $0x1ec] ss:$16 sps:$4 sm:$0xff]  }
  0x92   : > { %v1668_v12 = vld [vmem:[%s7296_s18] sm:$0xff]  ;;  %v1669_v13 = vld [vmem:[%s7296_s18 + $0x8] sm:$0xff]  ;;  %1701 = vperm.xlu1 %6336, %v1671_v15  }
  0x93   : > { %902 = vmatpush1.bf16.msra.mxu0 %v6377_v27  ;;  %1015 = vmatpush1.bf16.msra.mxu1 %v6378_v28  ;;  %v1672_v16 = vld [vmem:[%s7296_s18 + $0x20] sm:$0xff]  ;;  %v1673_v17 = vld [vmem:[%s7296_s18 + $0x28] sm:$0xff]  ;;  %v1678_v28 = vld [vmem:[%s7296_s18 + $0x50] sm:$0xff] }
  0x94   : > { %903 = vmatprep.subr.bf16.mxu0 %v6379_v29  ;;  %1016 = vmatprep.subr.bf16.mxu1 %v6381_v30  ;;  %v1676_v21 = vld [vmem:[%s7296_s18 + $0x40] sm:$0xff]  ;;  %v1677_v27 = vld [vmem:[%s7296_s18 + $0x48] sm:$0xff]  ;;  %v659_v29 = vld [vmem:[#allocation5] sm:$0xf] }
  0x95   : > { %1686 = vperm.xlu0 %6335, %v1668_v12   ;;  %v6433_v12 = vld [vmem:[%s8365_s1 + $0x1c4] ss:$16 sps:$4 sm:$0xff]  }
  0x96   : > { %1711 = vperm.xlu1 %6336, %v1673_v17  }
  0x97   : > { %904 = vmatpush1.bf16.msra.mxu0 %v6383_v31  ;;  %1017 = vmatpush1.bf16.msra.mxu1 %v6384_v32  ;;  %v7318_v32 = vrot.slane %v659_v29, %v7307_v23 }
  0x98   : > { %5754 = vmatprep.subr.bf16.mxu0 %v6393_v34  ;;  %5818 = vmatprep.subr.bf16.mxu1 %v6395_v36  ;;  %v7324_v34 = vrot.slane %v659_v29, %v7311_v25 }
  0x99   : > { %1691 = vperm.xlu0 %6335, %v1669_v13   ;;  %v6436_v13 = vld [vmem:[%s8365_s1 + $0x1cc] ss:$16 sps:$4 sm:$0xff]  }
  0x9a   : > { %922 = vmatmul.mubr.bf16.vlgmr.msra.gmra.mxu0 %v6385_v33  ;;  %1035 = vmatmul.mubr.bf16.vlgmr.msra.gmra.mxu1 %v6385_v33  ;;  %v7321_v33 = vrot.slane %v659_v29, %v7309_v24 }
  0x9b   : > { %931 = vmatprep.mubr.bf16.mxu0 %v6844_v0  ;;  %1044 = vmatprep.mubr.bf16.mxu1 %v6844_v0 }
  0x9c   : > { %5755 = vmatpush3.bf16.msra.mxu0 %v6394_v35  ;;  %5819 = vmatpush3.bf16.msra.mxu1 %v6396_v37  ;;  %v7327_v35 = vrot.slane %v659_v29, %v7313_v26 }
  0x9d   : > { %5756 = vmatprep.subr.bf16.mxu0 %v6397_v38  ;;  %5820 = vmatprep.subr.bf16.mxu1 %v6399_v40 }
  0x9e   : > { %1706 = vperm.xlu0 %6335, %v1672_v16   ;;  %1721 = vperm.xlu1 %6336, %v1675_v20  }
  0xa0   : > { %5757 = vmatpush3.bf16.msra.mxu0 %v6398_v39  ;;  %5821 = vmatpush3.bf16.msra.mxu1 %v6400_v42 }
  0xa1   : > { %5758 = vmatprep.subr.bf16.mxu0 %v6401_v43  ;;  %5822 = vmatprep.subr.bf16.mxu1 %v6403_v45 }
  0xa2   : > { %932 = vmatmul.mubr.bf16.gmra.mxu0 %v6386_v41  ;;  %1045 = vmatmul.mubr.bf16.gmra.mxu1 %v6386_v41 }
  0xa3   : > { %941 = vmatprep.mubr.bf16.mxu0 %v6844_v0  ;;  %1054 = vmatprep.mubr.bf16.mxu1 %v6844_v0 }
  0xa4   : > { %5759 = vmatpush3.bf16.msra.mxu0 %v6402_v44  ;;  %5823 = vmatpush3.bf16.msra.mxu1 %v6404_v46 }
  0xa5   : > { %5760 = vmatprep.subr.bf16.mxu0 %v6405_v47  ;;  %5824 = vmatprep.subr.bf16.mxu1 %v6407_v49  ;;  %v1680_v49 = vld [vmem:[%s7296_s18 + $0x60] sm:$0xff] }
  0xa6   : > { %1716 = vperm.xlu0 %6335, %v1674_v18   ;;  %1731 = vperm.xlu1 %6336, %v1677_v27  }
  0xa8   : > { %5761 = vmatpush3.bf16.msra.mxu0 %v6406_v48  ;;  %5825 = vmatpush3.bf16.msra.mxu1 %v6408_v51  ;;  %v1679_v48 = vld [vmem:[%s7296_s18 + $0x58] sm:$0xff] }
  0xa9   : > { %5762 = vmatprep.subr.bf16.mxu0 %v6409_v52  ;;  %5826 = vmatprep.subr.bf16.mxu1 %v6411_v54 }
  0xaa   : > { %942 = vmatmul.mubr.bf16.gmra.mxu0 %v6387_v50  ;;  %1055 = vmatmul.mubr.bf16.gmra.mxu1 %v6387_v50 }
  0xab   : > { %951 = vmatprep.mubr.bf16.mxu0 %v6844_v0  ;;  %1064 = vmatprep.mubr.bf16.mxu1 %v6844_v0 }
  0xac   : > { %5763 = vmatpush3.bf16.msra.mxu0 %v6410_v53  ;;  %5827 = vmatpush3.bf16.msra.mxu1 %v6412_v55 }
  0xad   : > { %5764 = vmatprep.subr.bf16.mxu0 %v6413_v56  ;;  %5828 = vmatprep.subr.bf16.mxu1 %v6415_v58  ;;  %v1681_v56 = vld [vmem:[%s7296_s18 + $0x68] sm:$0xff] }
  0xae   : > { %1726 = vperm.xlu0 %6335, %v1676_v21   ;;  %1741 = vperm.xlu1 %6336, %v1679_v48   ;;  %v1683_v21 = vld [vmem:[%s7296_s18 + $0x78] sm:$0xff] }
  0xb0   : > { %5765 = vmatpush3.bf16.msra.mxu0 %v6414_v57  ;;  %5829 = vmatpush3.bf16.msra.mxu1 %v6416_v59 }
  0xb1   : > { %5766 = vmatprep.subr.bf16.mxu0 %v6417_v60  ;;  %5830 = vmatprep.subr.bf16.mxu1 %v6419_v63 }
  0xb2   : > { %952 = vmatmul.mubr.bf16.gmra.mxu0 %v6388_v61  ;;  %1065 = vmatmul.mubr.bf16.gmra.mxu1 %v6388_v61  ;;  %v1682_v61 = vld [vmem:[%s7296_s18 + $0x70] sm:$0xff] }
  0xb3   : > { %961 = vmatprep.mubr.bf16.mxu0 %v6844_v0  ;;  %1074 = vmatprep.mubr.bf16.mxu1 %v6844_v0 }
  0xb4   : > { %5767 = vmatpush3.bf16.msra.mxu0 %v6418_v62  ;;  %5831 = vmatpush3.bf16.msra.mxu1 %v6420_v5  ;;  %v6425_v5 = vld [vmem:[%s8365_s1 + $0x1e0] ss:$16 sps:$4 sm:$0xff]  }
  0xb5   : > { %5768 = vmatprep.subr.bf16.mxu0 %v6421_v6  ;;  %5832 = vmatprep.subr.bf16.mxu1 %v6423_v7  ;;  %v6428_v6 = vld [vmem:[%s8365_s1 + $0x1e8] ss:$16 sps:$4 sm:$0xff]  }
  0xb6   : > { %1736 = vperm.xlu0 %6335, %v1678_v28   ;;  %1751 = vperm.xlu1 %6336, %v1681_v56   ;;  %v6431_v28 = vld [vmem:[%s8365_s1 + $0x1c0] ss:$16 sps:$4 sm:$0xff]   ;;  %v6440_v56 = vld [vmem:[%s8365_s1 + $0x1a8] ss:$16 sps:$4 sm:$0xff]  }
  0xb8   : > { %5769 = vmatpush3.bf16.msra.mxu0 %v6422_v8  ;;  %5833 = vmatpush3.bf16.msra.mxu1 %v6424_v9 }
  0xb9   : > { %2012 = vmatprep.subr.bf16.mxu0 %v6427_v10  ;;  %2125 = vmatprep.subr.bf16.mxu1 %v6430_v11 }
  0xba   : > { %962 = vmatmul.mubr.bf16.gmra.mxu0 %v6389_v1  ;;  %1075 = vmatmul.mubr.bf16.gmra.mxu1 %v6389_v1 }
  0xbb   : > { %971 = vmatprep.mubr.bf16.mxu0 %v6844_v0  ;;  %1084 = vmatprep.mubr.bf16.mxu1 %v6844_v0 }
  0xbc   : > { %1746 = vperm.xlu0 %6335, %v1680_v49   ;;  %1761 = vperm.xlu1 %6336, %v1683_v21   ;;  %v6437_v49 = vld [vmem:[%s8365_s1 + $0x1a0] ss:$16 sps:$4 sm:$0xff]  }
  0xc0   : > { %1756 = vperm.xlu0 %6335, %v1682_v61   ;;  %v6448_v61 = vld [vmem:[%s8365_s1 + $0x18c] ss:$16 sps:$4 sm:$0xff]  }
  0xc2   : > { %972 = vmatmul.mubr.bf16.gmra.mxu0 %v6390_v2  ;;  %1085 = vmatmul.mubr.bf16.gmra.mxu1 %v6390_v2 }
  0xc3   : > { %981 = vmatprep.mubr.bf16.mxu0 %v6844_v0  ;;  %1094 = vmatprep.mubr.bf16.mxu1 %v6844_v0 }
  0xca   : > { %982 = vmatmul.mubr.bf16.gmra.mxu0 %v6391_v3  ;;  %1095 = vmatmul.mubr.bf16.gmra.mxu1 %v6391_v3 }
  0xcb   : > { %991 = vmatprep.mubr.bf16.mxu0 %v6844_v0  ;;  %1104 = vmatprep.mubr.bf16.mxu1 %v6844_v0 }
  0xd2   : > { %992 = vmatmul.mubr.bf16.gmra.mxu0 %v6392_v4  ;;  %1105 = vmatmul.mubr.bf16.gmra.mxu1 %v6392_v4 }
 0x15a   : > { %v923_v30 = vpop.f32.mrf.mxu0  ;;  %v1036_v31 = vpop.f32.mrf.mxu1 }
 0x15b   : > { %v924_v44 = vadd.f32 %v923_v30, %v7324_v34  ;;  %v1037_v45 = vadd.f32 %v1036_v31, %v7327_v35 }
 0x15c   : > { %v925_v36 = vpop.f32.mrf.mxu0  ;;  %v1038_v37 = vpop.f32.mrf.mxu1 }
 0x15d   : > { %v926_v40 = vadd.f32 %v925_v36, %v7318_v32  ;;  %v1039_v41 = vadd.f32 %v1038_v37, %v7321_v33  ;;  %v1115_v62 = vmax.f32 %v924_v44, 0.0  ;;  %v1117_v63 = vmax.f32 %v1037_v45, 0.0  ;;  %v6434_v37 = vld [vmem:[%s8365_s1 + $0x1c8] ss:$16 sps:$4 sm:$0xff]  }
 0x15e   : > { %v927_v38 = vpop.f32.mrf.mxu0  ;;  %v1040_v39 = vpop.f32.mrf.mxu1 }
 0x15f   : > { %v928_v42 = vadd.f32 %v927_v38, %v7324_v34  ;;  %v1041_v43 = vadd.f32 %v1040_v39, %v7327_v35  ;;  %v1116_v57 = vmax.f32 %v926_v40, 0.0  ;;  %v1118_v58 = vmax.f32 %v1039_v41, 0.0  ;;  %v6439_v38 = vld [vmem:[%s8365_s1 + $0x1a4] ss:$16 sps:$4 sm:$0xff]  }
 0x160   : > { %v929_v46 = vpop.f32.mrf.mxu0  ;;  %v1042_v47 = vpop.f32.mrf.mxu1 }
 0x161   : > { %v930_v50 = vadd.f32 %v929_v46, %v7318_v32  ;;  %v1043_v51 = vadd.f32 %v1042_v47, %v7321_v33  ;;  %v1119_v52 = vmax.f32 %v928_v42, 0.0  ;;  %v1121_v53 = vmax.f32 %v1041_v43, 0.0 }
 0x162   : > { %v933_v54 = vpop.f32.mrf.mxu0  ;;  %v1046_v55 = vpop.f32.mrf.mxu1 }
 0x163   : > { %v1120_v59 = vmax.f32 %v930_v50, 0.0  ;;  %v1122_v60 = vmax.f32 %v1043_v51, 0.0  ;;  %v1179_v7 = vpack.c.bf16 %v1119_v52, %v1115_v62  ;;  %v1181_v8 = vpack.c.bf16 %v1121_v53, %v1117_v63  ;;  %v6442_v50 = vld [vmem:[%s8365_s1 + $0x1ac] ss:$16 sps:$4 sm:$0xff]  }
 0x164   : > { %v935_v1 = vpop.f32.mrf.mxu0  ;;  %v1048_v2 = vpop.f32.mrf.mxu1  ;;  %v934_v17 = vadd.f32 %v933_v54, %v7324_v34  ;;  %v1047_v18 = vadd.f32 %v1046_v55, %v7327_v35 }
 0x165   : > { %v1180_v3 = vpack.c.bf16 %v1120_v59, %v1116_v57  ;;  %v1182_v4 = vpack.c.bf16 %v1122_v60, %v1118_v58  ;;  %v936_v9 = vadd.f32 %v935_v1, %v7318_v32  ;;  %v1049_v14 = vadd.f32 %v1048_v2, %v7321_v33  ;;  %v6445_v57 = vld [vmem:[%s8365_s1 + $0x184] ss:$16 sps:$4 sm:$0xff]  }
 0x166   : > { %v937_v10 = vpop.f32.mrf.mxu0  ;;  %v1050_v11 = vpop.f32.mrf.mxu1  ;;  %v1123_v43 = vmax.f32 %v934_v17, 0.0  ;;  %v1125_v44 = vmax.f32 %v1047_v18, 0.0 }
 0x167   : > { %v938_v15 = vadd.f32 %v937_v10, %v7324_v34  ;;  %v1051_v16 = vadd.f32 %v1050_v11, %v7327_v35  ;;  %1506 = vmatprep.mubr.bf16.mxu0 %v1180_v3  ;;  %1603 = vmatprep.mubr.bf16.mxu1 %v1182_v4  ;;  %v1124_v39 = vmax.f32 %v936_v9, 0.0  ;;  %v1126_v40 = vmax.f32 %v1049_v14, 0.0  ;;  %v6446_v10 = vld [vmem:[%s8365_s1 + $0x188] ss:$16 sps:$4 sm:$0xff]   ;;  %v6451_v11 = vld [vmem:[%s8365_s1 + $0x164] ss:$16 sps:$4 sm:$0xff]  }
 0x168   : > { %v939_v19 = vpop.f32.mrf.mxu0  ;;  %v1052_v20 = vpop.f32.mrf.mxu1  ;;  %1507 = vmatmul.mubr.bf16.vlgmr.msra.gmra.mxu0 %v1179_v7  ;;  %1604 = vmatmul.mubr.bf16.vlgmr.msra.gmra.mxu1 %v1181_v8 }
 0x169   : > { %v940_v22 = vadd.f32 %v939_v19, %v7318_v32  ;;  %v1053_v27 = vadd.f32 %v1052_v20, %v7321_v33  ;;  %2013 = vmatpush1.bf16.msra.mxu0 %v6425_v5  ;;  %2126 = vmatpush1.bf16.msra.mxu1 %v6428_v6  ;;  %v1127_v29 = vmax.f32 %v938_v15, 0.0  ;;  %v1129_v30 = vmax.f32 %v1051_v16, 0.0  ;;  %v6443_v5 = vld [vmem:[%s8365_s1 + $0x180] ss:$16 sps:$4 sm:$0xff]  }
 0x16a   : > { %v943_v31 = vpop.f32.mrf.mxu0  ;;  %v1056_v36 = vpop.f32.mrf.mxu1  ;;  %2014 = vmatprep.subr.bf16.mxu0 %v6433_v12  ;;  %2127 = vmatprep.subr.bf16.mxu1 %v6436_v13 }
 0x16b   : > { %v1128_v41 = vmax.f32 %v940_v22, 0.0  ;;  %v1130_v42 = vmax.f32 %v1053_v27, 0.0  ;;  %v1183_v51 = vpack.c.bf16 %v1127_v29, %v1123_v43  ;;  %v1185_v52 = vpack.c.bf16 %v1129_v30, %v1125_v44  ;;  %v6449_v22 = vld [vmem:[%s8365_s1 + $0x160] ss:$16 sps:$4 sm:$0xff]   ;;  %v6454_v27 = vld [vmem:[%s8365_s1 + $0x16c] ss:$16 sps:$4 sm:$0xff]  }
 0x16c   : > { %v945_v45 = vpop.f32.mrf.mxu0  ;;  %v1058_v46 = vpop.f32.mrf.mxu1  ;;  %v944_v62 = vadd.f32 %v943_v31, %v7324_v34  ;;  %v1057_v63 = vadd.f32 %v1056_v36, %v7327_v35 }
 0x16d   : > { %v1184_v47 = vpack.c.bf16 %v1128_v41, %v1124_v39  ;;  %v1186_v48 = vpack.c.bf16 %v1130_v42, %v1126_v40  ;;  %2015 = vmatpush1.bf16.msra.mxu0 %v6431_v28  ;;  %v946_v53 = vadd.f32 %v945_v45, %v7318_v32  ;;  %2128 = vmatpush1.bf16.msra.mxu1 %v6434_v37  ;;  %v6452_v37 = vld [vmem:[%s8365_s1 + $0x168] ss:$16 sps:$4 sm:$0xff]   ;;  %v6460_v42 = vld [vmem:[%s8365_s1 + $0x14c] ss:$16 sps:$4 sm:$0xff]  }
 0x16e   : > { %v947_v54 = vpop.f32.mrf.mxu0  ;;  %v1060_v55 = vpop.f32.mrf.mxu1  ;;  %2016 = vmatprep.subr.bf16.mxu0 %v6439_v38  ;;  %v1059_v58 = vadd.f32 %v1058_v46, %v7321_v33  ;;  %2129 = vmatprep.subr.bf16.mxu1 %v6442_v50  ;;  %v1131_v16 = vmax.f32 %v944_v62, 0.0  ;;  %v1133_v17 = vmax.f32 %v1057_v63, 0.0  ;;  %v6457_v38 = vld [vmem:[%s8365_s1 + $0x144] ss:$16 sps:$4 sm:$0xff]  }
 0x16f   : > { %v948_v59 = vadd.f32 %v947_v54, %v7324_v34  ;;  %v1061_v60 = vadd.f32 %v1060_v55, %v7327_v35  ;;  %1514 = vmatprep.mubr.bf16.mxu0 %v1184_v47  ;;  %1611 = vmatprep.mubr.bf16.mxu1 %v1186_v48  ;;  %v1132_v12 = vmax.f32 %v946_v53, 0.0  ;;  %v6458_v54 = vld [vmem:[%s8365_s1 + $0x148] ss:$16 sps:$4 sm:$0xff]   ;;  %v6463_v55 = vld [vmem:[%s8365_s1 + $0x124] ss:$16 sps:$4 sm:$0xff]  }
 0x170   : > { %v949_v1 = vpop.f32.mrf.mxu0  ;;  %v1062_v2 = vpop.f32.mrf.mxu1  ;;  %1515 = vmatmul.mubr.bf16.gmra.mxu0 %v1183_v51  ;;  %1612 = vmatmul.mubr.bf16.gmra.mxu1 %v1185_v52  ;;  %v1134_v13 = vmax.f32 %v1059_v58, 0.0 }
 0x171   : > { %v950_v3 = vadd.f32 %v949_v1, %v7318_v32  ;;  %v1063_v4 = vadd.f32 %v1062_v2, %v7321_v33  ;;  %2017 = vmatpush1.bf16.msra.mxu0 %v6437_v49  ;;  %v1135_v6 = vmax.f32 %v948_v59, 0.0  ;;  %v1137_v7 = vmax.f32 %v1061_v60, 0.0  ;;  %2130 = vmatpush1.bf16.msra.mxu1 %v6440_v56  ;;  %v6455_v49 = vld [vmem:[%s8365_s1 + $0x140] ss:$16 sps:$4 sm:$0xff]  }
 0x172   : > { %v953_v8 = vpop.f32.mrf.mxu0  ;;  %v1066_v9 = vpop.f32.mrf.mxu1  ;;  %2018 = vmatprep.subr.bf16.mxu0 %v6445_v57  ;;  %2131 = vmatprep.subr.bf16.mxu1 %v6448_v61 }
 0x173   : > { %v1136_v14 = vmax.f32 %v950_v3, 0.0  ;;  %v1138_v15 = vmax.f32 %v1063_v4, 0.0  ;;  %v1187_v28 = vpack.c.bf16 %v1135_v6, %v1131_v16  ;;  %v1189_v29 = vpack.c.bf16 %v1137_v7, %v1133_v17  ;;  %v6461_v3 = vld [vmem:[%s8365_s1 + $0x120] ss:$16 sps:$4 sm:$0xff]   ;;  %v6466_v4 = vld [vmem:[%s8365_s1 + $0x12c] ss:$16 sps:$4 sm:$0xff]  }
 0x174   : > { %v955_v18 = vpop.f32.mrf.mxu0  ;;  %v1068_v19 = vpop.f32.mrf.mxu1  ;;  %v954_v43 = vadd.f32 %v953_v8, %v7324_v34  ;;  %v1067_v44 = vadd.f32 %v1066_v9, %v7327_v35 }
 0x175   : > { %v1188_v20 = vpack.c.bf16 %v1136_v14, %v1132_v12  ;;  %v1190_v21 = vpack.c.bf16 %v1138_v15, %v1134_v13  ;;  %2019 = vmatpush1.bf16.msra.mxu0 %v6443_v5  ;;  %v956_v30 = vadd.f32 %v955_v18, %v7318_v32  ;;  %2132 = vmatpush1.bf16.msra.mxu1 %v6446_v10  ;;  %v6464_v10 = vld [vmem:[%s8365_s1 + $0x128] ss:$16 sps:$4 sm:$0xff]   ;;  %v6472_v15 = vld [vmem:[%s8365_s1 + $0x10c] ss:$16 sps:$4 sm:$0xff]  }
 0x176   : > { %v957_v31 = vpop.f32.mrf.mxu0  ;;  %v1070_v36 = vpop.f32.mrf.mxu1  ;;  %2020 = vmatprep.subr.bf16.mxu0 %v6451_v11  ;;  %v1069_v39 = vadd.f32 %v1068_v19, %v7321_v33  ;;  %2133 = vmatprep.subr.bf16.mxu1 %v6454_v27  ;;  %v1139_v60 = vmax.f32 %v954_v43, 0.0  ;;  %v1141_v61 = vmax.f32 %v1067_v44, 0.0  ;;  %v6469_v11 = vld [vmem:[%s8365_s1 + $0x104] ss:$16 sps:$4 sm:$0xff]  }
 0x177   : > { %v958_v40 = vadd.f32 %v957_v31, %v7324_v34  ;;  %v1071_v41 = vadd.f32 %v1070_v36, %v7327_v35  ;;  %1522 = vmatprep.mubr.bf16.mxu0 %v1188_v20  ;;  %1619 = vmatprep.mubr.bf16.mxu1 %v1190_v21  ;;  %v1140_v56 = vmax.f32 %v956_v30, 0.0  ;;  %v6470_v31 = vld [vmem:[%s8365_s1 + $0x108] ss:$16 sps:$4 sm:$0xff]  }
 0x178   : > { %v959_v45 = vpop.f32.mrf.mxu0  ;;  %v1072_v46 = vpop.f32.mrf.mxu1  ;;  %1523 = vmatmul.mubr.bf16.gmra.mxu0 %v1187_v28  ;;  %1620 = vmatmul.mubr.bf16.gmra.mxu1 %v1189_v29  ;;  %v1142_v57 = vmax.f32 %v1069_v39, 0.0 }
 0x179   : > { %v960_v47 = vadd.f32 %v959_v45, %v7318_v32  ;;  %v1073_v48 = vadd.f32 %v1072_v46, %v7321_v33  ;;  %2021 = vmatpush1.bf16.msra.mxu0 %v6449_v22  ;;  %v1143_v50 = vmax.f32 %v958_v40, 0.0  ;;  %v1145_v51 = vmax.f32 %v1071_v41, 0.0  ;;  %2134 = vmatpush1.bf16.msra.mxu1 %v6452_v37  ;;  %v6467_v22 = vld [vmem:[%s8365_s1 + $0x100] ss:$16 sps:$4 sm:$0xff]  }
 0x17a   : > { %v963_v52 = vpop.f32.mrf.mxu0  ;;  %v1076_v53 = vpop.f32.mrf.mxu1  ;;  %2022 = vmatprep.subr.bf16.mxu0 %v6457_v38  ;;  %2135 = vmatprep.subr.bf16.mxu1 %v6460_v42 }
 0x17b   : > { %v1144_v58 = vmax.f32 %v960_v47, 0.0  ;;  %v1146_v59 = vmax.f32 %v1073_v48, 0.0  ;;  %v1191_v5 = vpack.c.bf16 %v1143_v50, %v1139_v60  ;;  %v1193_v6 = vpack.c.bf16 %v1145_v51, %v1141_v61 }
 0x17c   : > { %v965_v62 = vpop.f32.mrf.mxu0  ;;  %v1078_v63 = vpop.f32.mrf.mxu1  ;;  %v964_v16 = vadd.f32 %v963_v52, %v7324_v34  ;;  %v1077_v17 = vadd.f32 %v1076_v53, %v7327_v35 }
 0x17d   : > { %v1192_v1 = vpack.c.bf16 %v1144_v58, %v1140_v56  ;;  %v1194_v2 = vpack.c.bf16 %v1146_v59, %v1142_v57  ;;  %2023 = vmatpush1.bf16.msra.mxu0 %v6455_v49  ;;  %v966_v7 = vadd.f32 %v965_v62, %v7318_v32  ;;  %2136 = vmatpush1.bf16.msra.mxu1 %v6458_v54 }
 0x17e   : > { %v967_v8 = vpop.f32.mrf.mxu0  ;;  %v1080_v9 = vpop.f32.mrf.mxu1  ;;  %2024 = vmatprep.subr.bf16.mxu0 %v6463_v55  ;;  %v1079_v12 = vadd.f32 %v1078_v63, %v7321_v33  ;;  %2137 = vmatprep.subr.bf16.mxu1 %v6466_v4  ;;  %v1147_v40 = vmax.f32 %v964_v16, 0.0  ;;  %v1149_v41 = vmax.f32 %v1077_v17, 0.0 }
 0x17f   : > { %v968_v13 = vadd.f32 %v967_v8, %v7324_v34  ;;  %v1081_v14 = vadd.f32 %v1080_v9, %v7327_v35  ;;  %1530 = vmatprep.mubr.bf16.mxu0 %v1192_v1  ;;  %1627 = vmatprep.mubr.bf16.mxu1 %v1194_v2  ;;  %v1148_v36 = vmax.f32 %v966_v7, 0.0 }
 0x180   : > { %v969_v18 = vpop.f32.mrf.mxu0  ;;  %v1082_v19 = vpop.f32.mrf.mxu1  ;;  %1531 = vmatmul.mubr.bf16.gmra.mxu0 %v1191_v5  ;;  %1628 = vmatmul.mubr.bf16.gmra.mxu1 %v1193_v6  ;;  %v1150_v37 = vmax.f32 %v1079_v12, 0.0 }
 0x181   : > { %v970_v20 = vadd.f32 %v969_v18, %v7318_v32  ;;  %v1083_v21 = vadd.f32 %v1082_v19, %v7321_v33  ;;  %2025 = vmatpush1.bf16.msra.mxu0 %v6461_v3  ;;  %v1151_v27 = vmax.f32 %v968_v13, 0.0  ;;  %v1153_v28 = vmax.f32 %v1081_v14, 0.0  ;;  %2138 = vmatpush1.bf16.msra.mxu1 %v6464_v10 }
 0x182   : > { %v973_v29 = vpop.f32.mrf.mxu0  ;;  %v1086_v30 = vpop.f32.mrf.mxu1  ;;  %2026 = vmatprep.subr.bf16.mxu0 %v6469_v11  ;;  %2139 = vmatprep.subr.bf16.mxu1 %v6472_v15 }
 0x183   : > { %v1152_v38 = vmax.f32 %v970_v20, 0.0  ;;  %v1154_v39 = vmax.f32 %v1083_v21, 0.0  ;;  %v1195_v46 = vpack.c.bf16 %v1151_v27, %v1147_v40  ;;  %v1197_v47 = vpack.c.bf16 %v1153_v28, %v1149_v41 }
 0x184   : > { %v975_v42 = vpop.f32.mrf.mxu0  ;;  %v1088_v43 = vpop.f32.mrf.mxu1  ;;  %v974_v54 = vadd.f32 %v973_v29, %v7324_v34  ;;  %v1087_v55 = vadd.f32 %v1086_v30, %v7327_v35 }
 0x185   : > { %v1196_v44 = vpack.c.bf16 %v1152_v38, %v1148_v36  ;;  %v1198_v45 = vpack.c.bf16 %v1154_v39, %v1150_v37  ;;  %2027 = vmatpush1.bf16.msra.mxu0 %v6467_v22  ;;  %v976_v48 = vadd.f32 %v975_v42, %v7318_v32  ;;  %2140 = vmatpush1.bf16.msra.mxu1 %v6470_v31 }
 0x186   : > { %v977_v49 = vpop.f32.mrf.mxu0  ;;  %v1090_v50 = vpop.f32.mrf.mxu1  ;;  %v1089_v51 = vadd.f32 %v1088_v43, %v7321_v33  ;;  %v1155_v5 = vmax.f32 %v974_v54, 0.0  ;;  %v1157_v6 = vmax.f32 %v1087_v55, 0.0 }
 0x187   : > { %v978_v52 = vadd.f32 %v977_v49, %v7324_v34  ;;  %v1091_v53 = vadd.f32 %v1090_v50, %v7327_v35  ;;  %1538 = vmatprep.mubr.bf16.mxu0 %v1196_v44  ;;  %1635 = vmatprep.mubr.bf16.mxu1 %v1198_v45  ;;  %v1156_v1 = vmax.f32 %v976_v48, 0.0 }
 0x188   : > { %v979_v56 = vpop.f32.mrf.mxu0  ;;  %v1092_v57 = vpop.f32.mrf.mxu1  ;;  %1539 = vmatmul.mubr.bf16.gmra.mxu0 %v1195_v46  ;;  %1636 = vmatmul.mubr.bf16.gmra.mxu1 %v1197_v47  ;;  %v1158_v2 = vmax.f32 %v1089_v51, 0.0 }
 0x189   : > { %v980_v58 = vadd.f32 %v979_v56, %v7318_v32  ;;  %v1093_v59 = vadd.f32 %v1092_v57, %v7321_v33  ;;  %v1159_v60 = vmax.f32 %v978_v52, 0.0  ;;  %v1161_v61 = vmax.f32 %v1091_v53, 0.0 }
 0x18a   : > { %v983_v62 = vpop.f32.mrf.mxu0  ;;  %v1096_v63 = vpop.f32.mrf.mxu1 }
 0x18b   : > { %v1160_v3 = vmax.f32 %v980_v58, 0.0  ;;  %v1162_v4 = vmax.f32 %v1093_v59, 0.0  ;;  %v1199_v11 = vpack.c.bf16 %v1159_v60, %v1155_v5  ;;  %v1201_v12 = vpack.c.bf16 %v1161_v61, %v1157_v6 }
 0x18c   : > { %v985_v7 = vpop.f32.mrf.mxu0  ;;  %v1098_v8 = vpop.f32.mrf.mxu1  ;;  %v984_v19 = vadd.f32 %v983_v62, %v7324_v34  ;;  %v1097_v20 = vadd.f32 %v1096_v63, %v7327_v35 }
 0x18d   : > { %v1200_v9 = vpack.c.bf16 %v1160_v3, %v1156_v1  ;;  %v1202_v10 = vpack.c.bf16 %v1162_v4, %v1158_v2  ;;  %v986_v13 = vadd.f32 %v985_v7, %v7318_v32  ;;  %v1099_v16 = vadd.f32 %v1098_v8, %v7321_v33  ;;  %v6473_v8 = vld [vmem:[#allocation7 + $0x178] sm:$0xff]  }
 0x18e   : > { %v987_v14 = vpop.f32.mrf.mxu0  ;;  %v1100_v15 = vpop.f32.mrf.mxu1  ;;  %v1163_v41 = vmax.f32 %v984_v19, 0.0  ;;  %v1165_v42 = vmax.f32 %v1097_v20, 0.0  ;;  %5882 = vmatprep.subr.bf16.mxu0 %v6473_v8  ;;  %v6669_v19 = vld [vmem:[%s7157_s19 + $0x20] sm:$0xff]   ;;  %v6482_v20 = vld [vmem:[#allocation7 + $0x128] sm:$0xff]  }
 0x18f   : > { %v988_v17 = vadd.f32 %v987_v14, %v7324_v34  ;;  %v1101_v18 = vadd.f32 %v1100_v15, %v7327_v35  ;;  %1546 = vmatprep.mubr.bf16.mxu0 %v1200_v9  ;;  %1643 = vmatprep.mubr.bf16.mxu1 %v1202_v10  ;;  %v1164_v37 = vmax.f32 %v986_v13, 0.0  ;;  %v1166_v38 = vmax.f32 %v1099_v16, 0.0  ;;  %v6667_v9 = vld [vmem:[%s7157_s19 + $0x10] sm:$0xff]   ;;  %v6474_v10 = vld [vmem:[#allocation7 + $0x138] sm:$0xff]   ;;  %v6477_v13 = vld [vmem:[#allocation7 + $0x170] sm:$0xff]  }
 0x190   : > { %v989_v21 = vpop.f32.mrf.mxu0  ;;  %v1102_v22 = vpop.f32.mrf.mxu1  ;;  %1547 = vmatmul.mubr.bf16.gmra.mxu0 %v1199_v11  ;;  %1644 = vmatmul.mubr.bf16.gmra.mxu1 %v1201_v12  ;;  %v6475_v11 = vld [vmem:[#allocation7 + $0x1f8] sm:$0xff]   ;;  %v6668_v14 = vld [vmem:[%s7157_s19 + $0x18] sm:$0xff]   ;;  %v6478_v15 = vld [vmem:[#allocation7 + $0x130] sm:$0xff]  }
 0x191   : > { %v990_v27 = vadd.f32 %v989_v21, %v7318_v32  ;;  %v1103_v28 = vadd.f32 %v1102_v22, %v7321_v33  ;;  %v1167_v29 = vmax.f32 %v988_v17, 0.0  ;;  %v1169_v30 = vmax.f32 %v1101_v18, 0.0  ;;  %v6476_v12 = vld [vmem:[#allocation7 + $0x1b8] sm:$0xff]   ;;  %5946 = vmatprep.subr.bf16.mxu1 %v6475_v11  ;;  %v6479_v16 = vld [vmem:[#allocation7 + $0x1f0] sm:$0xff]   ;;  %v6481_v18 = vld [vmem:[#allocation7 + $0x168] sm:$0xff]  }
 0x192   : > { %v993_v31 = vpop.f32.mrf.mxu0  ;;  %v1106_v36 = vpop.f32.mrf.mxu1  ;;  %v6480_v17 = vld [vmem:[#allocation7 + $0x1b0] sm:$0xff]   ;;  %v6483_v21 = vld [vmem:[#allocation7 + $0x1e8] sm:$0xff]  }
 0x193   : > { %v1168_v39 = vmax.f32 %v990_v27, 0.0  ;;  %v1170_v40 = vmax.f32 %v1103_v28, 0.0  ;;  %v1203_v47 = vpack.c.bf16 %v1167_v29, %v1163_v41  ;;  %v1205_v48 = vpack.c.bf16 %v1169_v30, %v1165_v42  ;;  %v6484_v22 = vld [vmem:[#allocation7 + $0x1a8] sm:$0xff]   ;;  %v6485_v27 = vld [vmem:[#allocation7 + $0x160] sm:$0xff]   ;;  %v6670_v28 = vld [vmem:[%s7157_s19 + $0x28] sm:$0xff]  }
 0x194   : > { %v995_v43 = vpop.f32.mrf.mxu0  ;;  %v1108_v44 = vpop.f32.mrf.mxu1  ;;  %v994_v55 = vadd.f32 %v993_v31, %v7324_v34  ;;  %v1107_v56 = vadd.f32 %v1106_v36, %v7327_v35  ;;  %v6486_v29 = vld [vmem:[#allocation7 + $0x120] sm:$0xff]   ;;  %v6489_v36 = vld [vmem:[#allocation7 + $0x158] sm:$0xff]   ;;  %v6493_v41 = vld [vmem:[#allocation7 + $0x150] sm:$0xff]  }
 0x195   : > { %v1204_v45 = vpack.c.bf16 %v1168_v39, %v1164_v37  ;;  %v1206_v46 = vpack.c.bf16 %v1170_v40, %v1166_v38  ;;  %v996_v49 = vadd.f32 %v995_v43, %v7318_v32  ;;  %v1109_v52 = vadd.f32 %v1108_v44, %v7321_v33  ;;  %v6487_v30 = vld [vmem:[#allocation7 + $0x1e0] sm:$0xff]   ;;  %v6490_v38 = vld [vmem:[#allocation7 + $0x118] sm:$0xff]   ;;  %v6672_v42 = vld [vmem:[%s7157_s19 + $0x38] sm:$0xff]  }
 0x196   : > { %v997_v50 = vpop.f32.mrf.mxu0  ;;  %v1110_v51 = vpop.f32.mrf.mxu1  ;;  %v1171_v4 = vmax.f32 %v994_v55, 0.0  ;;  %v1173_v5 = vmax.f32 %v1107_v56, 0.0  ;;  %v6488_v31 = vld [vmem:[#allocation7 + $0x1a0] sm:$0xff]   ;;  %v6491_v39 = vld [vmem:[#allocation7 + $0x1d8] sm:$0xff]   ;;  %v6494_v43 = vld [vmem:[#allocation7 + $0x110] sm:$0xff]  }
 0x197   : > { %v998_v53 = vadd.f32 %v997_v50, %v7324_v34  ;;  %v1111_v54 = vadd.f32 %v1110_v51, %v7327_v35  ;;  %1554 = vmatprep.mubr.bf16.mxu0 %v1204_v45  ;;  %1651 = vmatprep.mubr.bf16.mxu1 %v1206_v46  ;;  %v1172_v63 = vmax.f32 %v996_v49, 0.0  ;;  %v1174_v1 = vmax.f32 %v1109_v52, 0.0  ;;  %v6671_v37 = vld [vmem:[%s7157_s19 + $0x30] sm:$0xff]   ;;  %v6492_v40 = vld [vmem:[#allocation7 + $0x198] sm:$0xff]   ;;  %v6495_v44 = vld [vmem:[#allocation7 + $0x1d0] sm:$0xff]  }
 0x198   : > { %v999_v57 = vpop.f32.mrf.mxu0  ;;  %v1112_v58 = vpop.f32.mrf.mxu1  ;;  %1555 = vmatmul.mubr.bf16.gmra.mxu0 %v1203_v47  ;;  %1652 = vmatmul.mubr.bf16.gmra.mxu1 %v1205_v48  ;;  %v6496_v45 = vld [vmem:[#allocation7 + $0x190] sm:$0xff]   ;;  %v6497_v46 = vld [vmem:[#allocation7 + $0x148] sm:$0xff]   ;;  %v6501_v50 = vld [vmem:[#allocation7 + $0x140] sm:$0xff]  }
 0x199   : > { %v1000_v59 = vadd.f32 %v999_v57, %v7318_v32  ;;  %v1113_v60 = vadd.f32 %v1112_v58, %v7321_v33  ;;  %v1175_v61 = vmax.f32 %v998_v53, 0.0  ;;  %v1177_v62 = vmax.f32 %v1111_v54, 0.0  ;;  %v6665_v32 = vld [vmem:[%s7157_s19] sm:$0xff]   ;;  %v6666_v33 = vld [vmem:[%s7157_s19 + $0x8] sm:$0xff]   ;;  %v6498_v47 = vld [vmem:[#allocation7 + $0x108] sm:$0xff]  }
 0x19a   : > { %v6499_v48 = vld [vmem:[#allocation7 + $0x1c8] sm:$0xff]   ;;  %v6502_v51 = vld [vmem:[#allocation7 + $0x100] sm:$0xff]   ;;  %v7521_v58 = vld [vmem:[%s8368_s4] ss:$0 sm:$0xff] }
 0x19b   : > { %v1176_v2 = vmax.f32 %v1000_v59, 0.0  ;;  %v1178_v3 = vmax.f32 %v1113_v60, 0.0  ;;  %v1207_v6 = vpack.c.bf16 %v1175_v61, %v1171_v4  ;;  %v1209_v7 = vpack.c.bf16 %v1177_v62, %v1173_v5  ;;  %v6500_v49 = vld [vmem:[#allocation7 + $0x188] sm:$0xff]   ;;  %v6503_v52 = vld [vmem:[#allocation7 + $0x1c0] sm:$0xff]  }
 0x19c   : > { %v6504_v53 = vld [vmem:[#allocation7 + $0x180] sm:$0xff]   ;;  %v6510_v55 = vld [vmem:[%s8365_s1 + $0x2ec] ss:$16 sps:$4 sm:$0xff]  }
 0x19d   : > { %v1208_v34 = vpack.c.bf16 %v1176_v2, %v1172_v63  ;;  %v1210_v35 = vpack.c.bf16 %v1178_v3, %v1174_v1  ;;  %v6507_v54 = vld [vmem:[%s8365_s1 + $0x2e4] ss:$16 sps:$4 sm:$0xff]  }
 0x19f   : > { %1562 = vmatprep.mubr.bf16.mxu0 %v1208_v34  ;;  %1659 = vmatprep.mubr.bf16.mxu1 %v1210_v35 }
 0x1a0   : > { %1563 = vmatmul.mubr.bf16.gmra.mxu0 %v1207_v6  ;;  %1660 = vmatmul.mubr.bf16.gmra.mxu1 %v1209_v7 }
 0x1a1   : > { %2044 = vmatprep.mubr.bf16.mxu0 %v6844_v0  ;;  %2157 = vmatprep.mubr.bf16.mxu1 %v6844_v0 }
 0x1a8   : > { %2045 = vmatmul.mubr.bf16.vlgmr.msra.gmra.mxu0 %v6665_v32  ;;  %2158 = vmatmul.mubr.bf16.vlgmr.msra.gmra.mxu1 %v6665_v32 }
 0x1a9   : > { %2054 = vmatprep.mubr.bf16.mxu0 %v6844_v0  ;;  %2167 = vmatprep.mubr.bf16.mxu1 %v6844_v0 }
 0x1aa   : > { %5883 = vmatpush3.bf16.msra.mxu0 %v6474_v10  ;;  %5947 = vmatpush3.bf16.msra.mxu1 %v6476_v12 }
 0x1ab   : > { %5884 = vmatprep.subr.bf16.mxu0 %v6477_v13  ;;  %5948 = vmatprep.subr.bf16.mxu1 %v6479_v16 }
 0x1ae   : > { %5885 = vmatpush3.bf16.msra.mxu0 %v6478_v15  ;;  %5949 = vmatpush3.bf16.msra.mxu1 %v6480_v17 }
 0x1af   : > { %5886 = vmatprep.subr.bf16.mxu0 %v6481_v18  ;;  %5950 = vmatprep.subr.bf16.mxu1 %v6483_v21 }
 0x1b0   : > { %2055 = vmatmul.mubr.bf16.gmra.mxu0 %v6666_v33  ;;  %2168 = vmatmul.mubr.bf16.gmra.mxu1 %v6666_v33 }
 0x1b1   : > { %2064 = vmatprep.mubr.bf16.mxu0 %v6844_v0  ;;  %2177 = vmatprep.mubr.bf16.mxu1 %v6844_v0 }
 0x1b2   : > { %5887 = vmatpush3.bf16.msra.mxu0 %v6482_v20  ;;  %5951 = vmatpush3.bf16.msra.mxu1 %v6484_v22 }
 0x1b3   : > { %5888 = vmatprep.subr.bf16.mxu0 %v6485_v27  ;;  %5952 = vmatprep.subr.bf16.mxu1 %v6487_v30 }
 0x1b6   : > { %5889 = vmatpush3.bf16.msra.mxu0 %v6486_v29  ;;  %5953 = vmatpush3.bf16.msra.mxu1 %v6488_v31 }
 0x1b7   : > { %5890 = vmatprep.subr.bf16.mxu0 %v6489_v36  ;;  %5954 = vmatprep.subr.bf16.mxu1 %v6491_v39 }
 0x1b8   : > { %2065 = vmatmul.mubr.bf16.gmra.mxu0 %v6667_v9  ;;  %2178 = vmatmul.mubr.bf16.gmra.mxu1 %v6667_v9 }
 0x1b9   : > { %2074 = vmatprep.mubr.bf16.mxu0 %v6844_v0  ;;  %2187 = vmatprep.mubr.bf16.mxu1 %v6844_v0 }
 0x1ba   : > { %5891 = vmatpush3.bf16.msra.mxu0 %v6490_v38  ;;  %5955 = vmatpush3.bf16.msra.mxu1 %v6492_v40 }
 0x1bb   : > { %5892 = vmatprep.subr.bf16.mxu0 %v6493_v41  ;;  %5956 = vmatprep.subr.bf16.mxu1 %v6495_v44  ;;  %v5502_v41 = vld [vmem:[%s7296_s18 + $0x80] sm:$0xff] }
 0x1bc   : > { %2812 = vperm.xlu0 %6335, %v5502_v41   ;;  %v5508_v41 = vld [vmem:[%s7296_s18 + $0xb0] sm:$0xff] }
 0x1be   : > { %5893 = vmatpush3.bf16.msra.mxu0 %v6494_v43  ;;  %5957 = vmatpush3.bf16.msra.mxu1 %v6496_v45 }
 0x1bf   : > { %5894 = vmatprep.subr.bf16.mxu0 %v6497_v46  ;;  %5958 = vmatprep.subr.bf16.mxu1 %v6499_v48 }
 0x1c0   : > { %2075 = vmatmul.mubr.bf16.gmra.mxu0 %v6668_v14  ;;  %2188 = vmatmul.mubr.bf16.gmra.mxu1 %v6668_v14 }
 0x1c1   : > { %2084 = vmatprep.mubr.bf16.mxu0 %v6844_v0  ;;  %2197 = vmatprep.mubr.bf16.mxu1 %v6844_v0 }
 0x1c2   : > { %5895 = vmatpush3.bf16.msra.mxu0 %v6498_v47  ;;  %5959 = vmatpush3.bf16.msra.mxu1 %v6500_v49 }
 0x1c3   : > { %5896 = vmatprep.subr.bf16.mxu0 %v6501_v50  ;;  %5960 = vmatprep.subr.bf16.mxu1 %v6503_v52 }
 0x1c6   : > { %5897 = vmatpush3.bf16.msra.mxu0 %v6502_v51  ;;  %5961 = vmatpush3.bf16.msra.mxu1 %v6504_v53 }
 0x1c7   : > { %3138 = vmatprep.subr.bf16.mxu0 %v6507_v54  ;;  %3251 = vmatprep.subr.bf16.mxu1 %v6510_v55 }
 0x1c8   : > { %2085 = vmatmul.mubr.bf16.gmra.mxu0 %v6669_v19  ;;  %2198 = vmatmul.mubr.bf16.gmra.mxu1 %v6669_v19 }
 0x1c9   : > { %2094 = vmatprep.mubr.bf16.mxu0 %v6844_v0  ;;  %2207 = vmatprep.mubr.bf16.mxu1 %v6844_v0 }
 0x1d0   : > { %2095 = vmatmul.mubr.bf16.gmra.mxu0 %v6670_v28  ;;  %2208 = vmatmul.mubr.bf16.gmra.mxu1 %v6670_v28 }
 0x1d1   : > { %2104 = vmatprep.mubr.bf16.mxu0 %v6844_v0  ;;  %2217 = vmatprep.mubr.bf16.mxu1 %v6844_v0 }
 0x1d8   : > { %2105 = vmatmul.mubr.bf16.gmra.mxu0 %v6671_v37  ;;  %2218 = vmatmul.mubr.bf16.gmra.mxu1 %v6671_v37 }
 0x1d9   : > { %2114 = vmatprep.mubr.bf16.mxu0 %v6844_v0  ;;  %2227 = vmatprep.mubr.bf16.mxu1 %v6844_v0 }
 0x1e0   : > { %2115 = vmatmul.mubr.bf16.gmra.mxu0 %v6672_v42  ;;  %2228 = vmatmul.mubr.bf16.gmra.mxu1 %v6672_v42 }
 0x228   : > { %v5770_v56 = vpop.f32.mrf.mxu0  ;;  %v5834_v57 = vpop.f32.mrf.mxu1 }
 0x22a   : > { %v5771_v59 = vpop.f32.mrf.mxu0  ;;  %v5835_v60 = vpop.f32.mrf.mxu1 }
 0x22b   : > { %v5772_v61 = vadd.f32 %v5771_v59, %v5770_v56  ;;  %v5836_v62 = vadd.f32 %v5835_v60, %v5834_v57  ;;  %v5503_v59 = vld [vmem:[%s7296_s18 + $0x88] sm:$0xff]  ;;  %v5504_v60 = vld [vmem:[%s7296_s18 + $0x90] sm:$0xff] }
 0x22c   : > { %v5773_v63 = vpop.f32.mrf.mxu0  ;;  %v5837_v1 = vpop.f32.mrf.mxu1  ;;  %2817 = vperm.xlu1 %6336, %v5503_v59   ;;  %2822 = vperm.xlu0 %6335, %v5504_v60  }
 0x22d   : > { %v1509_v2 = vadd.f32 %v5772_v61, %v7521_v58 }
 0x22e   : > { %v5774_v3 = vpop.f32.mrf.mxu0  ;;  %v5838_v4 = vpop.f32.mrf.mxu1 }
 0x22f   : > { %v5775_v5 = vadd.f32 %v5774_v3, %v5773_v63  ;;  %v7524_v34 = vadd.f32 %v5836_v62, %v1509_v2  ;;  %v5839_v32 = vadd.f32 %v5838_v4, %v5837_v1 }
 0x230   : > { %v5776_v35 = vpop.f32.mrf.mxu0  ;;  %v5840_v6 = vpop.f32.mrf.mxu1 }
 0x231   : > { %v1512_v7 = vadd.f32 %v5775_v5, %v7521_v58 }
 0x232   : > { %v5777_v33 = vpop.f32.mrf.mxu0  ;;  %v5841_v8 = vpop.f32.mrf.mxu1 }
 0x233   : > { %v5778_v9 = vadd.f32 %v5777_v33, %v5776_v35  ;;  %v5842_v10 = vadd.f32 %v5841_v8, %v5840_v6  ;;  %v7527_v11 = vadd.f32 %v5839_v32, %v1512_v7 }
 0x234   : > { %v5779_v12 = vpop.f32.mrf.mxu0  ;;  %v5843_v13 = vpop.f32.mrf.mxu1 }
 0x235   : > { %v1517_v14 = vadd.f32 %v5778_v9, %v7521_v58 }
 0x236   : > { %v5780_v15 = vpop.f32.mrf.mxu0  ;;  %v5844_v16 = vpop.f32.mrf.mxu1 }
 0x237   : > { %v5781_v17 = vadd.f32 %v5780_v15, %v5779_v12  ;;  %v7530_v18 = vadd.f32 %v5842_v10, %v1517_v14  ;;  %v5845_v22 = vadd.f32 %v5844_v16, %v5843_v13  ;;  %v5505_v12 = vld [vmem:[%s7296_s18 + $0x98] sm:$0xff]  ;;  %v5506_v13 = vld [vmem:[%s7296_s18 + $0xa0] sm:$0xff] }
 0x238   : > { %v5782_v19 = vpop.f32.mrf.mxu0  ;;  %v5846_v20 = vpop.f32.mrf.mxu1  ;;  %2827 = vperm.xlu1 %6336, %v5505_v12   ;;  %2832 = vperm.xlu0 %6335, %v5506_v13  }
 0x239   : > { %v1520_v21 = vadd.f32 %v5781_v17, %v7521_v58 }
 0x23a   : > { %v5783_v27 = vpop.f32.mrf.mxu0  ;;  %v5847_v28 = vpop.f32.mrf.mxu1 }
 0x23b   : > { %v5784_v29 = vadd.f32 %v5783_v27, %v5782_v19  ;;  %v5848_v30 = vadd.f32 %v5847_v28, %v5846_v20  ;;  %v7533_v31 = vadd.f32 %v5845_v22, %v1520_v21 }
 0x23c   : > { %v5785_v36 = vpop.f32.mrf.mxu0  ;;  %v5849_v37 = vpop.f32.mrf.mxu1  ;;  %2842 = vperm.xlu0 %6335, %v5508_v41  }
 0x23d   : > { %v1525_v38 = vadd.f32 %v5784_v29, %v7521_v58 }
 0x23e   : > { %v5786_v39 = vpop.f32.mrf.mxu0  ;;  %v5850_v40 = vpop.f32.mrf.mxu1 }
 0x23f   : > { %v5787_v42 = vadd.f32 %v5786_v39, %v5785_v36  ;;  %v7537_v43 = vadd.f32 %v5848_v30, %v1525_v38  ;;  %v5851_v47 = vadd.f32 %v5850_v40, %v5849_v37  ;;  %v5507_v40 = vld [vmem:[%s7296_s18 + $0xa8] sm:$0xff] }
 0x240   : > { %v5788_v44 = vpop.f32.mrf.mxu0  ;;  %v5852_v45 = vpop.f32.mrf.mxu1  ;;  %2837 = vperm.xlu1 %6336, %v5507_v40  }
 0x241   : > { %v1528_v46 = vadd.f32 %v5787_v42, %v7521_v58 }
 0x242   : > { %v5789_v48 = vpop.f32.mrf.mxu0  ;;  %v5853_v49 = vpop.f32.mrf.mxu1 }
 0x243   : > { %v5790_v50 = vadd.f32 %v5789_v48, %v5788_v44  ;;  %v5854_v51 = vadd.f32 %v5853_v49, %v5852_v45  ;;  %v7540_v52 = vadd.f32 %v5851_v47, %v1528_v46 }
 0x244   : > { %v5791_v53 = vpop.f32.mrf.mxu0  ;;  %v5855_v54 = vpop.f32.mrf.mxu1 }
 0x245   : > { %v1533_v55 = vadd.f32 %v5790_v50, %v7521_v58 }
 0x246   : > { %v5792_v56 = vpop.f32.mrf.mxu0  ;;  %v5856_v57 = vpop.f32.mrf.mxu1 }
 0x247   : > { %v5793_v61 = vadd.f32 %v5792_v56, %v5791_v53  ;;  %v7545_v62 = vadd.f32 %v5854_v51, %v1533_v55  ;;  %v5857_v3 = vadd.f32 %v5856_v57, %v5855_v54 }
 0x248   : > { %v5794_v63 = vpop.f32.mrf.mxu0  ;;  %v5858_v1 = vpop.f32.mrf.mxu1 }
 0x249   : > { %v1536_v2 = vadd.f32 %v5793_v61, %v7521_v58  ;;  %v5509_v61 = vld [vmem:[%s7296_s18 + $0xb8] sm:$0xff] }
 0x24a   : > { %v5795_v4 = vpop.f32.mrf.mxu0  ;;  %v5859_v5 = vpop.f32.mrf.mxu1  ;;  %2847 = vperm.xlu1 %6336, %v5509_v61  }
 0x24b   : > { %v5796_v35 = vadd.f32 %v5795_v4, %v5794_v63  ;;  %v5860_v6 = vadd.f32 %v5859_v5, %v5858_v1  ;;  %v7548_v7 = vadd.f32 %v5857_v3, %v1536_v2  ;;  %v5510_v63 = vld [vmem:[%s7296_s18 + $0xc0] sm:$0xff] }
 0x24c   : > { %v5797_v32 = vpop.f32.mrf.mxu0  ;;  %v5861_v33 = vpop.f32.mrf.mxu1  ;;  %2852 = vperm.xlu0 %6335, %v5510_v63  }
 0x24d   : > { %v1541_v8 = vadd.f32 %v5796_v35, %v7521_v58 }
 0x24e   : > { %v5798_v9 = vpop.f32.mrf.mxu0  ;;  %v5862_v10 = vpop.f32.mrf.mxu1 }
 0x24f   : > { %v5799_v14 = vadd.f32 %v5798_v9, %v5797_v32  ;;  %v7553_v15 = vadd.f32 %v5860_v6, %v1541_v8  ;;  %v5863_v20 = vadd.f32 %v5862_v10, %v5861_v33 }
 0x250   : > { %v5800_v16 = vpop.f32.mrf.mxu0  ;;  %v5864_v17 = vpop.f32.mrf.mxu1 }
 0x251   : > { %v1544_v19 = vadd.f32 %v5799_v14, %v7521_v58 }
 0x252   : > { %v5801_v21 = vpop.f32.mrf.mxu0  ;;  %v5865_v22 = vpop.f32.mrf.mxu1 }
 0x253   : > { %v5802_v27 = vadd.f32 %v5801_v21, %v5800_v16  ;;  %v5866_v28 = vadd.f32 %v5865_v22, %v5864_v17  ;;  %v7556_v29 = vadd.f32 %v5863_v20, %v1544_v19  ;;  %v5511_v17 = vld [vmem:[%s7296_s18 + $0xc8] sm:$0xff]  ;;  %v5512_v19 = vld [vmem:[%s7296_s18 + $0xd0] sm:$0xff] }
 0x254   : > { %v5803_v30 = vpop.f32.mrf.mxu0  ;;  %v5867_v36 = vpop.f32.mrf.mxu1  ;;  %v1830_v22 = vld [vmem:[#allocation5 + $0x4] sm:$0xf]  ;;  %2857 = vperm.xlu1 %6336, %v5511_v17   ;;  %2862 = vperm.xlu0 %6335, %v5512_v19   ;;  %v6505_v19 = vld [vmem:[%s8365_s1 + $0x2e0] ss:$16 sps:$4 sm:$0xff]  }
 0x255   : > { %v1549_v37 = vadd.f32 %v5802_v27, %v7521_v58  ;;  %v7590_v40 = vrot.slane %v1830_v22, %v7313_v26 }
 0x256   : > { %v5804_v38 = vpop.f32.mrf.mxu0  ;;  %v5868_v39 = vpop.f32.mrf.mxu1 }
 0x257   : > { %v5805_v42 = vadd.f32 %v5804_v38, %v5803_v30  ;;  %v7561_v44 = vadd.f32 %v5866_v28, %v1549_v37  ;;  %v5869_v48 = vadd.f32 %v5868_v39, %v5867_v36  ;;  %v7581_v36 = vrot.slane %v1830_v22, %v7307_v23 }
 0x258   : > { %v5806_v45 = vpop.f32.mrf.mxu0  ;;  %v5870_v46 = vpop.f32.mrf.mxu1  ;;  %v7584_v37 = vrot.slane %v1830_v22, %v7309_v24  ;;  %v7587_v39 = vrot.slane %v1830_v22, %v7311_v25 }
 0x259   : > { %v1552_v47 = vadd.f32 %v5805_v42, %v7521_v58 }
 0x25a   : > { %v5807_v49 = vpop.f32.mrf.mxu0  ;;  %v5871_v50 = vpop.f32.mrf.mxu1 }
 0x25b   : > { %v5808_v51 = vadd.f32 %v5807_v49, %v5806_v45  ;;  %v5872_v53 = vadd.f32 %v5871_v50, %v5870_v46  ;;  %v7564_v54 = vadd.f32 %v5869_v48, %v1552_v47 }
 0x25c   : > { %v5809_v55 = vpop.f32.mrf.mxu0  ;;  %v5873_v56 = vpop.f32.mrf.mxu1 }
 0x25d   : > { %v1557_v57 = vadd.f32 %v5808_v51, %v7521_v58 }
 0x25e   : > { %v5810_v59 = vpop.f32.mrf.mxu0  ;;  %v5874_v60 = vpop.f32.mrf.mxu1 }
 0x25f   : > { %v5811_v1 = vadd.f32 %v5810_v59, %v5809_v55  ;;  %v7569_v2 = vadd.f32 %v5872_v53, %v1557_v57  ;;  %v5875_v35 = vadd.f32 %v5874_v60, %v5873_v56  ;;  %v5513_v57 = vld [vmem:[%s7296_s18 + $0xd8] sm:$0xff]  ;;  %v5514_v59 = vld [vmem:[%s7296_s18 + $0xe0] sm:$0xff] }
 0x260   : > { %v5812_v3 = vpop.f32.mrf.mxu0  ;;  %v5876_v4 = vpop.f32.mrf.mxu1  ;;  %2867 = vperm.xlu1 %6336, %v5513_v57   ;;  %2872 = vperm.xlu0 %6335, %v5514_v59   ;;  %v6511_v57 = vld [vmem:[%s8365_s1 + $0x2c0] ss:$16 sps:$4 sm:$0xff]  }
 0x261   : > { %v1560_v5 = vadd.f32 %v5811_v1, %v7521_v58 }
 0x262   : > { %v5813_v6 = vpop.f32.mrf.mxu0  ;;  %v5877_v32 = vpop.f32.mrf.mxu1 }
 0x263   : > { %v5814_v33 = vadd.f32 %v5813_v6, %v5812_v3  ;;  %v5878_v8 = vadd.f32 %v5877_v32, %v5876_v4  ;;  %v7572_v9 = vadd.f32 %v5875_v35, %v1560_v5  ;;  %v5515_v5 = vld [vmem:[%s7296_s18 + $0xe8] sm:$0xff] }
 0x264   : > { %v5815_v10 = vpop.f32.mrf.mxu0  ;;  %v5879_v12 = vpop.f32.mrf.mxu1  ;;  %2877 = vperm.xlu1 %6336, %v5515_v5  }
 0x265   : > { %v1565_v13 = vadd.f32 %v5814_v33, %v7521_v58 }
 0x266   : > { %v5816_v14 = vpop.f32.mrf.mxu0  ;;  %v5880_v16 = vpop.f32.mrf.mxu1 }
 0x267   : > { %v5817_v20 = vadd.f32 %v5816_v14, %v5815_v10  ;;  %v7577_v21 = vadd.f32 %v5878_v8, %v1565_v13  ;;  %v5881_v38 = vadd.f32 %v5880_v16, %v5879_v12  ;;  %v5516_v8 = vld [vmem:[%s7296_s18 + $0xf0] sm:$0xff] }
 0x268   : > { %v2046_v27 = vpop.f32.mrf.mxu0  ;;  %v2159_v28 = vpop.f32.mrf.mxu1  ;;  %2882 = vperm.xlu0 %6335, %v5516_v8  }
 0x269   : > { %v1568_v30 = vadd.f32 %v5817_v20, %v7521_v58  ;;  %v2047_v51 = vadd.f32 %v2046_v27, %v7587_v39  ;;  %v2160_v53 = vadd.f32 %v2159_v28, %v7590_v40  ;;  %v6508_v20 = vld [vmem:[%s8365_s1 + $0x2e8] ss:$16 sps:$4 sm:$0xff]  }
 0x26a   : > { %v2048_v41 = vpop.f32.mrf.mxu0  ;;  %v2161_v42 = vpop.f32.mrf.mxu1 }
 0x26b   : > { %v7592_v45 = vadd.f32 %v5881_v38, %v1568_v30  ;;  %v2049_v47 = vadd.f32 %v2048_v41, %v7581_v36  ;;  %v2162_v48 = vadd.f32 %v2161_v42, %v7584_v37  ;;  %v2238_v10 = vmax.f32 %v2047_v51, 0.0  ;;  %v6513_v41 = vld [vmem:[%s8365_s1 + $0x2c4] ss:$16 sps:$4 sm:$0xff]   ;;  %v6516_v42 = vld [vmem:[%s8365_s1 + $0x2cc] ss:$16 sps:$4 sm:$0xff]  }
 0x26c   : > { %v2050_v58 = vpop.f32.mrf.mxu0  ;;  %v2163_v46 = vpop.f32.mrf.mxu1  ;;  %v2240_v12 = vmax.f32 %v2160_v53, 0.0  ;;  %v5517_v53 = vld [vmem:[%s7296_s18 + $0xf8] sm:$0xff] }
 0x26d   : > { %v2051_v49 = vadd.f32 %v2050_v58, %v7587_v39  ;;  %v2164_v50 = vadd.f32 %v2163_v46, %v7590_v40  ;;  %v2239_v35 = vmax.f32 %v2049_v47, 0.0  ;;  %v2241_v6 = vmax.f32 %v2162_v48, 0.0  ;;  %2887 = vperm.xlu1 %6336, %v5517_v53   ;;  %v6523_v53 = vld [vmem:[%s8365_s1 + $0x280] ss:$16 sps:$4 sm:$0xff]  }
 0x26e   : > { %v2052_v55 = vpop.f32.mrf.mxu0  ;;  %v2165_v56 = vpop.f32.mrf.mxu1 }
 0x26f   : > { %v2053_v60 = vadd.f32 %v2052_v55, %v7581_v36  ;;  %v2166_v61 = vadd.f32 %v2165_v56, %v7584_v37  ;;  %v2242_v63 = vmax.f32 %v2051_v49, 0.0  ;;  %v2244_v1 = vmax.f32 %v2164_v50, 0.0 }
 0x270   : > { %v2056_v3 = vpop.f32.mrf.mxu0  ;;  %v2169_v4 = vpop.f32.mrf.mxu1 }
 0x271   : > { %v2243_v32 = vmax.f32 %v2053_v60, 0.0  ;;  %v2245_v33 = vmax.f32 %v2166_v61, 0.0  ;;  %v2302_v22 = vpack.c.bf16 %v2242_v63, %v2238_v10  ;;  %v2304_v27 = vpack.c.bf16 %v2244_v1, %v2240_v12  ;;  %v6514_v1 = vld [vmem:[%s8365_s1 + $0x2c8] ss:$16 sps:$4 sm:$0xff]  }
 0x272   : > { %v2058_v13 = vpop.f32.mrf.mxu0  ;;  %v2171_v14 = vpop.f32.mrf.mxu1  ;;  %v2057_v48 = vadd.f32 %v2056_v3, %v7587_v39  ;;  %v2170_v49 = vadd.f32 %v2169_v4, %v7590_v40  ;;  %v6519_v3 = vld [vmem:[%s8365_s1 + $0x2a4] ss:$16 sps:$4 sm:$0xff]  }
 0x273   : > { %v2303_v16 = vpack.c.bf16 %v2243_v32, %v2239_v35  ;;  %v2305_v17 = vpack.c.bf16 %v2245_v33, %v2241_v6  ;;  %v2059_v28 = vadd.f32 %v2058_v13, %v7581_v36  ;;  %v2172_v58 = vadd.f32 %v2171_v14, %v7584_v37  ;;  %v6517_v14 = vld [vmem:[%s8365_s1 + $0x2a0] ss:$16 sps:$4 sm:$0xff]  }
 0x274   : > { %v2060_v30 = vpop.f32.mrf.mxu0  ;;  %v2173_v38 = vpop.f32.mrf.mxu1  ;;  %v2246_v32 = vmax.f32 %v2057_v48, 0.0  ;;  %v2248_v33 = vmax.f32 %v2170_v49, 0.0 }
 0x275   : > { %v2061_v46 = vadd.f32 %v2060_v30, %v7587_v39  ;;  %v2174_v47 = vadd.f32 %v2173_v38, %v7590_v40  ;;  %2631 = vmatprep.mubr.bf16.mxu0 %v2303_v16  ;;  %2728 = vmatprep.mubr.bf16.mxu1 %v2305_v17  ;;  %v2247_v4 = vmax.f32 %v2059_v28, 0.0  ;;  %v2249_v5 = vmax.f32 %v2172_v58, 0.0  ;;  %v6522_v16 = vld [vmem:[%s8365_s1 + $0x2ac] ss:$16 sps:$4 sm:$0xff]   ;;  %v6520_v28 = vld [vmem:[%s8365_s1 + $0x2a8] ss:$16 sps:$4 sm:$0xff]  }
 0x276   : > { %v2062_v50 = vpop.f32.mrf.mxu0  ;;  %v2175_v51 = vpop.f32.mrf.mxu1  ;;  %2632 = vmatmul.mubr.bf16.vlgmr.msra.gmra.mxu0 %v2302_v22  ;;  %2729 = vmatmul.mubr.bf16.vlgmr.msra.gmra.mxu1 %v2304_v27  ;;  %v6525_v30 = vld [vmem:[%s8365_s1 + $0x284] ss:$16 sps:$4 sm:$0xff]   ;;  %v6528_v58 = vld [vmem:[%s8365_s1 + $0x28c] ss:$16 sps:$4 sm:$0xff]  }
 0x277   : > { %v2063_v55 = vadd.f32 %v2062_v50, %v7581_v36  ;;  %v2176_v56 = vadd.f32 %v2175_v51, %v7584_v37  ;;  %3139 = vmatpush1.bf16.msra.mxu0 %v6505_v19  ;;  %3252 = vmatpush1.bf16.msra.mxu1 %v6508_v20  ;;  %v2250_v59 = vmax.f32 %v2061_v46, 0.0  ;;  %v2252_v60 = vmax.f32 %v2174_v47, 0.0 }
 0x278   : > { %v2066_v61 = vpop.f32.mrf.mxu0  ;;  %v2179_v63 = vpop.f32.mrf.mxu1  ;;  %3140 = vmatprep.subr.bf16.mxu0 %v6513_v41  ;;  %3253 = vmatprep.subr.bf16.mxu1 %v6516_v42 }
 0x279   : > { %v2251_v35 = vmax.f32 %v2063_v55, 0.0  ;;  %v2253_v6 = vmax.f32 %v2176_v56, 0.0  ;;  %v2306_v17 = vpack.c.bf16 %v2250_v59, %v2246_v32  ;;  %v2308_v19 = vpack.c.bf16 %v2252_v60, %v2248_v33  ;;  %v6526_v60 = vld [vmem:[%s8365_s1 + $0x288] ss:$16 sps:$4 sm:$0xff]  }
 0x27a   : > { %v2068_v8 = vpop.f32.mrf.mxu0  ;;  %v2181_v10 = vpop.f32.mrf.mxu1  ;;  %v2067_v46 = vadd.f32 %v2066_v61, %v7587_v39  ;;  %v2180_v47 = vadd.f32 %v2179_v63, %v7590_v40  ;;  %v6531_v61 = vld [vmem:[%s8365_s1 + $0x264] ss:$16 sps:$4 sm:$0xff]  }
 0x27b   : > { %v2307_v12 = vpack.c.bf16 %v2251_v35, %v2247_v4  ;;  %v2309_v13 = vpack.c.bf16 %v2253_v6, %v2249_v5  ;;  %3141 = vmatpush1.bf16.msra.mxu0 %v6511_v57  ;;  %v2069_v20 = vadd.f32 %v2068_v8, %v7581_v36  ;;  %3254 = vmatpush1.bf16.msra.mxu1 %v6514_v1 }
 0x27c   : > { %v2070_v22 = vpop.f32.mrf.mxu0  ;;  %v2183_v27 = vpop.f32.mrf.mxu1  ;;  %3142 = vmatprep.subr.bf16.mxu0 %v6519_v3  ;;  %v2182_v38 = vadd.f32 %v2181_v10, %v7584_v37  ;;  %3255 = vmatprep.subr.bf16.mxu1 %v6522_v16  ;;  %v2254_v5 = vmax.f32 %v2067_v46, 0.0  ;;  %v2256_v35 = vmax.f32 %v2180_v47, 0.0  ;;  %v6529_v10 = vld [vmem:[%s8365_s1 + $0x260] ss:$16 sps:$4 sm:$0xff]  }
 0x27d   : > { %v2071_v41 = vadd.f32 %v2070_v22, %v7587_v39  ;;  %v2184_v42 = vadd.f32 %v2183_v27, %v7590_v40  ;;  %2639 = vmatprep.mubr.bf16.mxu0 %v2307_v12  ;;  %2736 = vmatprep.mubr.bf16.mxu1 %v2309_v13  ;;  %v2255_v63 = vmax.f32 %v2069_v20, 0.0  ;;  %v6534_v12 = vld [vmem:[%s8365_s1 + $0x26c] ss:$16 sps:$4 sm:$0xff]   ;;  %v6532_v20 = vld [vmem:[%s8365_s1 + $0x268] ss:$16 sps:$4 sm:$0xff]  }
 0x27e   : > { %v2072_v48 = vpop.f32.mrf.mxu0  ;;  %v2185_v49 = vpop.f32.mrf.mxu1  ;;  %2640 = vmatmul.mubr.bf16.gmra.mxu0 %v2306_v17  ;;  %2737 = vmatmul.mubr.bf16.gmra.mxu1 %v2308_v19  ;;  %v2257_v1 = vmax.f32 %v2182_v38, 0.0  ;;  %v6537_v22 = vld [vmem:[%s8365_s1 + $0x244] ss:$16 sps:$4 sm:$0xff]   ;;  %v6540_v38 = vld [vmem:[%s8365_s1 + $0x24c] ss:$16 sps:$4 sm:$0xff]  }
 0x27f   : > { %v2073_v50 = vadd.f32 %v2072_v48, %v7581_v36  ;;  %v2186_v51 = vadd.f32 %v2185_v49, %v7584_v37  ;;  %3143 = vmatpush1.bf16.msra.mxu0 %v6517_v14  ;;  %v2258_v55 = vmax.f32 %v2071_v41, 0.0  ;;  %v2260_v56 = vmax.f32 %v2184_v42, 0.0  ;;  %3256 = vmatpush1.bf16.msra.mxu1 %v6520_v28  ;;  %v6535_v49 = vld [vmem:[%s8365_s1 + $0x240] ss:$16 sps:$4 sm:$0xff]  }
 0x280   : > { %v2076_v57 = vpop.f32.mrf.mxu0  ;;  %v2189_v59 = vpop.f32.mrf.mxu1  ;;  %3144 = vmatprep.subr.bf16.mxu0 %v6525_v30  ;;  %3257 = vmatprep.subr.bf16.mxu1 %v6528_v58 }
 0x281   : > { %v2259_v3 = vmax.f32 %v2073_v50, 0.0  ;;  %v2261_v4 = vmax.f32 %v2186_v51, 0.0  ;;  %v2310_v13 = vpack.c.bf16 %v2258_v55, %v2254_v5  ;;  %v2312_v14 = vpack.c.bf16 %v2260_v56, %v2256_v35  ;;  %v6538_v56 = vld [vmem:[%s8365_s1 + $0x248] ss:$16 sps:$4 sm:$0xff]  }
 0x282   : > { %v2078_v6 = vpop.f32.mrf.mxu0  ;;  %v2191_v32 = vpop.f32.mrf.mxu1  ;;  %v2077_v41 = vadd.f32 %v2076_v57, %v7587_v39  ;;  %v2190_v42 = vadd.f32 %v2189_v59, %v7590_v40  ;;  %v6543_v57 = vld [vmem:[%s8365_s1 + $0x224] ss:$16 sps:$4 sm:$0xff]  }
 0x283   : > { %v2311_v33 = vpack.c.bf16 %v2259_v3, %v2255_v63  ;;  %v2313_v8 = vpack.c.bf16 %v2261_v4, %v2257_v1  ;;  %3145 = vmatpush1.bf16.msra.mxu0 %v6523_v53  ;;  %v2079_v16 = vadd.f32 %v2078_v6, %v7581_v36  ;;  %3258 = vmatpush1.bf16.msra.mxu1 %v6526_v60 }
 0x284   : > { %v2080_v17 = vpop.f32.mrf.mxu0  ;;  %v2193_v19 = vpop.f32.mrf.mxu1  ;;  %3146 = vmatprep.subr.bf16.mxu0 %v6531_v61  ;;  %v2192_v27 = vadd.f32 %v2191_v32, %v7584_v37  ;;  %3259 = vmatprep.subr.bf16.mxu1 %v6534_v12  ;;  %v2262_v1 = vmax.f32 %v2077_v41, 0.0  ;;  %v2264_v3 = vmax.f32 %v2190_v42, 0.0  ;;  %v6541_v32 = vld [vmem:[%s8365_s1 + $0x220] ss:$16 sps:$4 sm:$0xff]  }
 0x285   : > { %v2081_v28 = vadd.f32 %v2080_v17, %v7587_v39  ;;  %v2194_v30 = vadd.f32 %v2193_v19, %v7590_v40  ;;  %2647 = vmatprep.mubr.bf16.mxu0 %v2311_v33  ;;  %2744 = vmatprep.mubr.bf16.mxu1 %v2313_v8  ;;  %v2263_v59 = vmax.f32 %v2079_v16, 0.0  ;;  %v6546_v33 = vld [vmem:[%s8365_s1 + $0x22c] ss:$16 sps:$4 sm:$0xff]   ;;  %v6544_v16 = vld [vmem:[%s8365_s1 + $0x228] ss:$16 sps:$4 sm:$0xff]  }
 0x286   : > { %v2082_v58 = vpop.f32.mrf.mxu0  ;;  %v2195_v46 = vpop.f32.mrf.mxu1  ;;  %2648 = vmatmul.mubr.bf16.gmra.mxu0 %v2310_v13  ;;  %2745 = vmatmul.mubr.bf16.gmra.mxu1 %v2312_v14  ;;  %v2265_v60 = vmax.f32 %v2192_v27, 0.0  ;;  %v6549_v17 = vld [vmem:[%s8365_s1 + $0x204] ss:$16 sps:$4 sm:$0xff]   ;;  %v6552_v27 = vld [vmem:[%s8365_s1 + $0x20c] ss:$16 sps:$4 sm:$0xff]  }
 0x287   : > { %v2083_v47 = vadd.f32 %v2082_v58, %v7581_v36  ;;  %v2196_v48 = vadd.f32 %v2195_v46, %v7584_v37  ;;  %3147 = vmatpush1.bf16.msra.mxu0 %v6529_v10  ;;  %v2266_v50 = vmax.f32 %v2081_v28, 0.0  ;;  %v2268_v51 = vmax.f32 %v2194_v30, 0.0  ;;  %3260 = vmatpush1.bf16.msra.mxu1 %v6532_v20  ;;  %v6547_v46 = vld [vmem:[%s8365_s1 + $0x200] ss:$16 sps:$4 sm:$0xff]  }
 0x288   : > { %v2086_v53 = vpop.f32.mrf.mxu0  ;;  %v2199_v55 = vpop.f32.mrf.mxu1  ;;  %3148 = vmatprep.subr.bf16.mxu0 %v6537_v22  ;;  %3261 = vmatprep.subr.bf16.mxu1 %v6540_v38 }
 0x289   : > { %v2267_v61 = vmax.f32 %v2083_v47, 0.0  ;;  %v2269_v63 = vmax.f32 %v2196_v48, 0.0  ;;  %v2314_v8 = vpack.c.bf16 %v2266_v50, %v2262_v1  ;;  %v2316_v10 = vpack.c.bf16 %v2268_v51, %v2264_v3  ;;  %v6550_v51 = vld [vmem:[%s8365_s1 + $0x208] ss:$16 sps:$4 sm:$0xff]  }
 0x28a   : > { %v2088_v4 = vpop.f32.mrf.mxu0  ;;  %v2201_v5 = vpop.f32.mrf.mxu1  ;;  %v2087_v28 = vadd.f32 %v2086_v53, %v7587_v39  ;;  %v2200_v30 = vadd.f32 %v2199_v55, %v7590_v40 }
 0x28b   : > { %v2315_v35 = vpack.c.bf16 %v2267_v61, %v2263_v59  ;;  %v2317_v6 = vpack.c.bf16 %v2269_v63, %v2265_v60  ;;  %3149 = vmatpush1.bf16.msra.mxu0 %v6535_v49  ;;  %v2089_v12 = vadd.f32 %v2088_v4, %v7581_v36  ;;  %3262 = vmatpush1.bf16.msra.mxu1 %v6538_v56 }
 0x28c   : > { %v2090_v13 = vpop.f32.mrf.mxu0  ;;  %v2203_v14 = vpop.f32.mrf.mxu1  ;;  %3150 = vmatprep.subr.bf16.mxu0 %v6543_v57  ;;  %v2202_v19 = vadd.f32 %v2201_v5, %v7584_v37  ;;  %3263 = vmatprep.subr.bf16.mxu1 %v6546_v33  ;;  %v2270_v59 = vmax.f32 %v2087_v28, 0.0  ;;  %v2272_v60 = vmax.f32 %v2200_v30, 0.0 }
 0x28d   : > { %v2091_v20 = vadd.f32 %v2090_v13, %v7587_v39  ;;  %v2204_v22 = vadd.f32 %v2203_v14, %v7590_v40  ;;  %2655 = vmatprep.mubr.bf16.mxu0 %v2315_v35  ;;  %2752 = vmatprep.mubr.bf16.mxu1 %v2317_v6  ;;  %v2271_v53 = vmax.f32 %v2089_v12, 0.0 }
 0x28e   : > { %v2092_v38 = vpop.f32.mrf.mxu0  ;;  %v2205_v41 = vpop.f32.mrf.mxu1  ;;  %2656 = vmatmul.mubr.bf16.gmra.mxu0 %v2314_v8  ;;  %2753 = vmatmul.mubr.bf16.gmra.mxu1 %v2316_v10  ;;  %v2273_v55 = vmax.f32 %v2202_v19, 0.0 }
 0x28f   : > { %v2093_v42 = vadd.f32 %v2092_v38, %v7581_v36  ;;  %v2206_v58 = vadd.f32 %v2205_v41, %v7584_v37  ;;  %3151 = vmatpush1.bf16.msra.mxu0 %v6541_v32  ;;  %v2274_v47 = vmax.f32 %v2091_v20, 0.0  ;;  %v2276_v48 = vmax.f32 %v2204_v22, 0.0  ;;  %3264 = vmatpush1.bf16.msra.mxu1 %v6544_v16 }
 0x290   : > { %v2096_v49 = vpop.f32.mrf.mxu0  ;;  %v2209_v50 = vpop.f32.mrf.mxu1  ;;  %3152 = vmatprep.subr.bf16.mxu0 %v6549_v17  ;;  %3265 = vmatprep.subr.bf16.mxu1 %v6552_v27 }
 0x291   : > { %v2275_v56 = vmax.f32 %v2093_v42, 0.0  ;;  %v2277_v57 = vmax.f32 %v2206_v58, 0.0  ;;  %v2318_v4 = vpack.c.bf16 %v2274_v47, %v2270_v59  ;;  %v2320_v5 = vpack.c.bf16 %v2276_v48, %v2272_v60 }
 0x292   : > { %v2098_v61 = vpop.f32.mrf.mxu0  ;;  %v2211_v63 = vpop.f32.mrf.mxu1  ;;  %v2097_v12 = vadd.f32 %v2096_v49, %v7587_v39  ;;  %v2210_v13 = vadd.f32 %v2209_v50, %v7590_v40 }
 0x293   : > { %v2319_v1 = vpack.c.bf16 %v2275_v56, %v2271_v53  ;;  %v2321_v3 = vpack.c.bf16 %v2277_v57, %v2273_v55  ;;  %3153 = vmatpush1.bf16.msra.mxu0 %v6547_v46  ;;  %v2099_v35 = vadd.f32 %v2098_v61, %v7581_v36  ;;  %3266 = vmatpush1.bf16.msra.mxu1 %v6550_v51 }
 0x294   : > { %v2100_v6 = vpop.f32.mrf.mxu0  ;;  %v2213_v32 = vpop.f32.mrf.mxu1  ;;  %v2212_v33 = vadd.f32 %v2211_v63, %v7584_v37  ;;  %v2278_v58 = vmax.f32 %v2097_v12, 0.0  ;;  %v2280_v46 = vmax.f32 %v2210_v13, 0.0 }
 0x295   : > { %v2101_v8 = vadd.f32 %v2100_v6, %v7587_v39  ;;  %v2214_v10 = vadd.f32 %v2213_v32, %v7590_v40  ;;  %2663 = vmatprep.mubr.bf16.mxu0 %v2319_v1  ;;  %2760 = vmatprep.mubr.bf16.mxu1 %v2321_v3  ;;  %v2279_v30 = vmax.f32 %v2099_v35, 0.0 }
 0x296   : > { %v2102_v14 = vpop.f32.mrf.mxu0  ;;  %v2215_v16 = vpop.f32.mrf.mxu1  ;;  %2664 = vmatmul.mubr.bf16.gmra.mxu0 %v2318_v4  ;;  %2761 = vmatmul.mubr.bf16.gmra.mxu1 %v2320_v5  ;;  %v2281_v38 = vmax.f32 %v2212_v33, 0.0 }
 0x297   : > { %v2103_v17 = vadd.f32 %v2102_v14, %v7581_v36  ;;  %v2216_v19 = vadd.f32 %v2215_v16, %v7584_v37  ;;  %v2282_v20 = vmax.f32 %v2101_v8, 0.0  ;;  %v2284_v22 = vmax.f32 %v2214_v10, 0.0 }
 0x298   : > { %v2106_v27 = vpop.f32.mrf.mxu0  ;;  %v2219_v28 = vpop.f32.mrf.mxu1 }
 0x299   : > { %v2283_v41 = vmax.f32 %v2103_v17, 0.0  ;;  %v2285_v42 = vmax.f32 %v2216_v19, 0.0  ;;  %v2322_v51 = vpack.c.bf16 %v2282_v20, %v2278_v58  ;;  %v2324_v53 = vpack.c.bf16 %v2284_v22, %v2280_v46 }
 0x29a   : > { %v2108_v47 = vpop.f32.mrf.mxu0  ;;  %v2221_v48 = vpop.f32.mrf.mxu1  ;;  %v2107_v63 = vadd.f32 %v2106_v27, %v7587_v39  ;;  %v2220_v1 = vadd.f32 %v2219_v28, %v7590_v40 }
 0x29b   : > { %v2323_v49 = vpack.c.bf16 %v2283_v41, %v2279_v30  ;;  %v2325_v50 = vpack.c.bf16 %v2285_v42, %v2281_v38  ;;  %v2109_v55 = vadd.f32 %v2108_v47, %v7581_v36  ;;  %v2222_v59 = vadd.f32 %v2221_v48, %v7584_v37 }
 0x29c   : > { %v2110_v56 = vpop.f32.mrf.mxu0  ;;  %v2223_v57 = vpop.f32.mrf.mxu1  ;;  %v2286_v16 = vmax.f32 %v2107_v63, 0.0  ;;  %v2288_v17 = vmax.f32 %v2220_v1, 0.0 }
 0x29d   : > { %v2111_v60 = vadd.f32 %v2110_v56, %v7587_v39  ;;  %v2224_v61 = vadd.f32 %v2223_v57, %v7590_v40  ;;  %2671 = vmatprep.mubr.bf16.mxu0 %v2323_v49  ;;  %2768 = vmatprep.mubr.bf16.mxu1 %v2325_v50  ;;  %v2287_v10 = vmax.f32 %v2109_v55, 0.0  ;;  %v2289_v12 = vmax.f32 %v2222_v59, 0.0 }
 0x29e   : > { %v2112_v3 = vpop.f32.mrf.mxu0  ;;  %v2225_v4 = vpop.f32.mrf.mxu1  ;;  %2672 = vmatmul.mubr.bf16.gmra.mxu0 %v2322_v51  ;;  %2769 = vmatmul.mubr.bf16.gmra.mxu1 %v2324_v53 }
 0x29f   : > { %v2113_v5 = vadd.f32 %v2112_v3, %v7581_v36  ;;  %v2226_v35 = vadd.f32 %v2225_v4, %v7584_v37  ;;  %v2290_v6 = vmax.f32 %v2111_v60, 0.0  ;;  %v2292_v32 = vmax.f32 %v2224_v61, 0.0 }
 0x2a0   : > { %v2116_v33 = vpop.f32.mrf.mxu0  ;;  %v2229_v8 = vpop.f32.mrf.mxu1 }
 0x2a1   : > { %v2291_v13 = vmax.f32 %v2113_v5, 0.0  ;;  %v2293_v14 = vmax.f32 %v2226_v35, 0.0  ;;  %v2326_v28 = vpack.c.bf16 %v2290_v6, %v2286_v16  ;;  %v2328_v30 = vpack.c.bf16 %v2292_v32, %v2288_v17  ;;  %v6553_v35 = vld [vmem:[#allocation7 + $0x278] sm:$0xff]   ;;  %v6675_v6 = vld [vmem:[%s7157_s19 + $0x10] sm:$0xff]   ;;  %v6560_v16 = vld [vmem:[#allocation7 + $0x2b0] sm:$0xff]  }
 0x2a2   : > { %v2118_v19 = vpop.f32.mrf.mxu0  ;;  %v2231_v20 = vpop.f32.mrf.mxu1  ;;  %v2117_v48 = vadd.f32 %v2116_v33, %v7587_v39  ;;  %v2230_v49 = vadd.f32 %v2229_v8, %v7590_v40  ;;  %v6554_v32 = vld [vmem:[#allocation7 + $0x238] sm:$0xff]   ;;  %6010 = vmatprep.subr.bf16.mxu0 %v6553_v35  ;;  %v6561_v17 = vld [vmem:[#allocation7 + $0x268] sm:$0xff]  }
 0x2a3   : > { %v2327_v22 = vpack.c.bf16 %v2291_v13, %v2287_v10  ;;  %v2329_v27 = vpack.c.bf16 %v2293_v14, %v2289_v12  ;;  %v2119_v38 = vadd.f32 %v2118_v19, %v7581_v36  ;;  %v2232_v58 = vadd.f32 %v2231_v20, %v7584_v37  ;;  %v6555_v33 = vld [vmem:[#allocation7 + $0x2f8] sm:$0xff]   ;;  %v6557_v10 = vld [vmem:[#allocation7 + $0x270] sm:$0xff]   ;;  %v6676_v12 = vld [vmem:[%s7157_s19 + $0x18] sm:$0xff]  }
 0x2a4   : > { %v2120_v41 = vpop.f32.mrf.mxu0  ;;  %v2233_v42 = vpop.f32.mrf.mxu1  ;;  %v2294_v1 = vmax.f32 %v2117_v48, 0.0  ;;  %v2296_v3 = vmax.f32 %v2230_v49, 0.0  ;;  %6074 = vmatprep.subr.bf16.mxu1 %v6555_v33  ;;  %v6556_v8 = vld [vmem:[#allocation7 + $0x2b8] sm:$0xff]   ;;  %v6558_v13 = vld [vmem:[#allocation7 + $0x230] sm:$0xff]   ;;  %v6562_v20 = vld [vmem:[#allocation7 + $0x228] sm:$0xff]  }
 0x2a5   : > { %v2121_v46 = vadd.f32 %v2120_v41, %v7587_v39  ;;  %v2234_v47 = vadd.f32 %v2233_v42, %v7590_v40  ;;  %2679 = vmatprep.mubr.bf16.mxu0 %v2327_v22  ;;  %2776 = vmatprep.mubr.bf16.mxu1 %v2329_v27  ;;  %v2295_v59 = vmax.f32 %v2119_v38, 0.0  ;;  %v2297_v60 = vmax.f32 %v2232_v58, 0.0  ;;  %v6559_v14 = vld [vmem:[#allocation7 + $0x2f0] sm:$0xff]   ;;  %v6563_v22 = vld [vmem:[#allocation7 + $0x2e8] sm:$0xff]   ;;  %v6566_v38 = vld [vmem:[#allocation7 + $0x220] sm:$0xff]  }
 0x2a6   : > { %v2122_v50 = vpop.f32.mrf.mxu0  ;;  %v2235_v51 = vpop.f32.mrf.mxu1  ;;  %2680 = vmatmul.mubr.bf16.gmra.mxu0 %v2326_v28  ;;  %2777 = vmatmul.mubr.bf16.gmra.mxu1 %v2328_v30  ;;  %v6677_v19 = vld [vmem:[%s7157_s19 + $0x20] sm:$0xff]   ;;  %v6564_v27 = vld [vmem:[#allocation7 + $0x2a8] sm:$0xff]   ;;  %v6565_v28 = vld [vmem:[#allocation7 + $0x260] sm:$0xff]  }
 0x2a7   : > { %v2123_v53 = vadd.f32 %v2122_v50, %v7581_v36  ;;  %v2236_v55 = vadd.f32 %v2235_v51, %v7584_v37  ;;  %v2298_v56 = vmax.f32 %v2121_v46, 0.0  ;;  %v2300_v57 = vmax.f32 %v2234_v47, 0.0  ;;  %v6673_v36 = vld [vmem:[%s7157_s19] sm:$0xff]   ;;  %v6674_v37 = vld [vmem:[%s7157_s19 + $0x8] sm:$0xff]   ;;  %v6567_v41 = vld [vmem:[#allocation7 + $0x2e0] sm:$0xff]  }
 0x2a8   : > { %v6678_v30 = vld [vmem:[%s7157_s19 + $0x28] sm:$0xff]   ;;  %v6568_v42 = vld [vmem:[#allocation7 + $0x2a0] sm:$0xff]   ;;  %v6573_v50 = vld [vmem:[#allocation7 + $0x250] sm:$0xff]  }
 0x2a9   : > { %v2299_v61 = vmax.f32 %v2123_v53, 0.0  ;;  %v2301_v63 = vmax.f32 %v2236_v55, 0.0  ;;  %v2330_v4 = vpack.c.bf16 %v2298_v56, %v2294_v1  ;;  %v2332_v5 = vpack.c.bf16 %v2300_v57, %v2296_v3  ;;  %v6569_v58 = vld [vmem:[#allocation7 + $0x258] sm:$0xff]   ;;  %v6679_v46 = vld [vmem:[%s7157_s19 + $0x30] sm:$0xff]   ;;  %v6680_v51 = vld [vmem:[%s7157_s19 + $0x38] sm:$0xff]  }
 0x2aa   : > { %v6570_v47 = vld [vmem:[#allocation7 + $0x218] sm:$0xff]   ;;  %v6574_v53 = vld [vmem:[#allocation7 + $0x210] sm:$0xff]   ;;  %v6577_v57 = vld [vmem:[#allocation7 + $0x248] sm:$0xff]  }
 0x2ab   : > { %v2331_v39 = vpack.c.bf16 %v2299_v61, %v2295_v59  ;;  %v2333_v40 = vpack.c.bf16 %v2301_v63, %v2297_v60  ;;  %v6571_v48 = vld [vmem:[#allocation7 + $0x2d8] sm:$0xff]   ;;  %v6575_v55 = vld [vmem:[#allocation7 + $0x2d0] sm:$0xff]   ;;  %v6578_v59 = vld [vmem:[#allocation7 + $0x208] sm:$0xff]  }
 0x2ac   : > { %v6572_v49 = vld [vmem:[#allocation7 + $0x298] sm:$0xff]   ;;  %v6576_v56 = vld [vmem:[#allocation7 + $0x290] sm:$0xff]   ;;  %v6579_v60 = vld [vmem:[#allocation7 + $0x2c8] sm:$0xff]  }
 0x2ad   : > { %2687 = vmatprep.mubr.bf16.mxu0 %v2331_v39  ;;  %2784 = vmatprep.mubr.bf16.mxu1 %v2333_v40  ;;  %v6580_v61 = vld [vmem:[#allocation7 + $0x288] sm:$0xff]   ;;  %v6581_v63 = vld [vmem:[#allocation7 + $0x240] sm:$0xff]  }
 0x2ae   : > { %2688 = vmatmul.mubr.bf16.gmra.mxu0 %v2330_v4  ;;  %2785 = vmatmul.mubr.bf16.gmra.mxu1 %v2332_v5  ;;  %v6582_v1 = vld [vmem:[#allocation7 + $0x200] sm:$0xff]   ;;  %v6590_v4 = vld [vmem:[%s8365_s1 + $0x3ec] ss:$16 sps:$4 sm:$0xff]   ;;  %v1687_v5 = vpop.permute.xlu0 %1686 }
 0x2af   : > { %3170 = vmatprep.mubr.bf16.mxu0 %v6844_v0  ;;  %3283 = vmatprep.mubr.bf16.mxu1 %v6844_v0  ;;  %v6583_v3 = vld [vmem:[#allocation7 + $0x2c0] sm:$0xff]  }
 0x2b0   : > { %v6584_v39 = vld [vmem:[#allocation7 + $0x280] sm:$0xff]  }
 0x2b1   : > { %v6587_v40 = vld [vmem:[%s8365_s1 + $0x3e4] ss:$16 sps:$4 sm:$0xff]  }
 0x2b6   : > { %3171 = vmatmul.mubr.bf16.vlgmr.msra.gmra.mxu0 %v6673_v36  ;;  %3284 = vmatmul.mubr.bf16.vlgmr.msra.gmra.mxu1 %v6673_v36  ;;  %v1697_v36 = vpop.permute.xlu1 %1696 }
 0x2b7   : > { %3180 = vmatprep.mubr.bf16.mxu0 %v6844_v0  ;;  %3293 = vmatprep.mubr.bf16.mxu1 %v6844_v0 }
 0x2b8   : > { %6011 = vmatpush3.bf16.msra.mxu0 %v6554_v32  ;;  %6075 = vmatpush3.bf16.msra.mxu1 %v6556_v8 }
 0x2b9   : > { %6012 = vmatprep.subr.bf16.mxu0 %v6557_v10  ;;  %6076 = vmatprep.subr.bf16.mxu1 %v6559_v14 }
 0x2ba   : > { %v7783_v35 = vpop.permute.xlu1 %1701 }
 0x2bc   : > { %6013 = vmatpush3.bf16.msra.mxu0 %v6558_v13  ;;  %6077 = vmatpush3.bf16.msra.mxu1 %v6560_v16 }
 0x2bd   : > { %6014 = vmatprep.subr.bf16.mxu0 %v6561_v17  ;;  %6078 = vmatprep.subr.bf16.mxu1 %v6563_v22 }
 0x2be   : > { %3181 = vmatmul.mubr.bf16.gmra.mxu0 %v6674_v37  ;;  %3294 = vmatmul.mubr.bf16.gmra.mxu1 %v6674_v37  ;;  %v1692_v37 = vpop.permute.xlu0 %1691  ;;  %v7787_v32 = vpop.permute.xlu1 %1711 }
 0x2bf   : > { %3190 = vmatprep.mubr.bf16.mxu0 %v6844_v0  ;;  %3303 = vmatprep.mubr.bf16.mxu1 %v6844_v0 }
 0x2c0   : > { %6015 = vmatpush3.bf16.msra.mxu0 %v6562_v20  ;;  %6079 = vmatpush3.bf16.msra.mxu1 %v6564_v27  ;;  %v7810_v27 = vld [vmem:[%s8368_s4 + $0x1] ss:$0 sm:$0xff] }
 0x2c1   : > { %6016 = vmatprep.subr.bf16.mxu0 %v6565_v28  ;;  %6080 = vmatprep.subr.bf16.mxu1 %v6567_v41 }
 0x2c2   : > { %v7791_v8 = vpop.permute.xlu1 %1721 }
 0x2c4   : > { %6017 = vmatpush3.bf16.msra.mxu0 %v6566_v38  ;;  %6081 = vmatpush3.bf16.msra.mxu1 %v6568_v42 }
 0x2c5   : > { %6018 = vmatprep.subr.bf16.mxu0 %v6569_v58  ;;  %6082 = vmatprep.subr.bf16.mxu1 %v6571_v48 }
 0x2c6   : > { %3191 = vmatmul.mubr.bf16.gmra.mxu0 %v6675_v6  ;;  %3304 = vmatmul.mubr.bf16.gmra.mxu1 %v6675_v6  ;;  %v7785_v6 = vpop.permute.xlu0 %1706 }
 0x2c7   : > { %3200 = vmatprep.mubr.bf16.mxu0 %v6844_v0  ;;  %3313 = vmatprep.mubr.bf16.mxu1 %v6844_v0 }
 0x2c8   : > { %6019 = vmatpush3.bf16.msra.mxu0 %v6570_v47  ;;  %6083 = vmatpush3.bf16.msra.mxu1 %v6572_v49 }
 0x2c9   : > { %6020 = vmatprep.subr.bf16.mxu0 %v6573_v50  ;;  %6084 = vmatprep.subr.bf16.mxu1 %v6575_v55 }
 0x2ca   : > { %v7789_v33 = vpop.permute.xlu0 %1716 }
 0x2cc   : > { %6021 = vmatpush3.bf16.msra.mxu0 %v6574_v53  ;;  %6085 = vmatpush3.bf16.msra.mxu1 %v6576_v56 }
 0x2cd   : > { %6022 = vmatprep.subr.bf16.mxu0 %v6577_v57  ;;  %6086 = vmatprep.subr.bf16.mxu1 %v6579_v60  ;;  %v1764_v57 = vmul.f32 %v1687_v5, %v7524_v34 }
 0x2ce   : > { %3201 = vmatmul.mubr.bf16.gmra.mxu0 %v6676_v12  ;;  %3314 = vmatmul.mubr.bf16.gmra.mxu1 %v6676_v12  ;;  %v7793_v10 = vpop.permute.xlu0 %1726  ;;  %v7795_v12 = vpop.permute.xlu1 %1731 }
 0x2cf   : > { %3210 = vmatprep.mubr.bf16.mxu0 %v6844_v0  ;;  %3323 = vmatprep.mubr.bf16.mxu1 %v6844_v0 }
 0x2d0   : > { %6023 = vmatpush3.bf16.msra.mxu0 %v6578_v59  ;;  %6087 = vmatpush3.bf16.msra.mxu1 %v6580_v61 }
 0x2d1   : > { %6024 = vmatprep.subr.bf16.mxu0 %v6581_v63  ;;  %6088 = vmatprep.subr.bf16.mxu1 %v6583_v3 }
 0x2d2   : > { %v7797_v13 = vpop.permute.xlu0 %1736  ;;  %v7799_v14 = vpop.permute.xlu1 %1741 }
 0x2d4   : > { %6025 = vmatpush3.bf16.msra.mxu0 %v6582_v1  ;;  %6089 = vmatpush3.bf16.msra.mxu1 %v6584_v39 }
 0x2d5   : > { %4264 = vmatprep.subr.bf16.mxu0 %v6587_v40  ;;  %4377 = vmatprep.subr.bf16.mxu1 %v6590_v4 }
 0x2d6   : > { %3211 = vmatmul.mubr.bf16.gmra.mxu0 %v6677_v19  ;;  %3324 = vmatmul.mubr.bf16.gmra.mxu1 %v6677_v19  ;;  %v7801_v16 = vpop.permute.xlu0 %1746  ;;  %v7803_v20 = vpop.permute.xlu1 %1751 }
 0x2d7   : > { %3220 = vmatprep.mubr.bf16.mxu0 %v6844_v0  ;;  %3333 = vmatprep.mubr.bf16.mxu1 %v6844_v0 }
 0x2da   : > { %v7805_v22 = vpop.permute.xlu0 %1756 }
 0x2de   : > { %3221 = vmatmul.mubr.bf16.gmra.mxu0 %v6678_v30  ;;  %3334 = vmatmul.mubr.bf16.gmra.mxu1 %v6678_v30  ;;  %v2813_v48 = vpop.permute.xlu0 %2812 }
 0x2df   : > { %3230 = vmatprep.mubr.bf16.mxu0 %v6844_v0  ;;  %3343 = vmatprep.mubr.bf16.mxu1 %v6844_v0 }
 0x2e2   : > { %v2823_v34 = vpop.permute.xlu0 %2822 }
 0x2e6   : > { %3231 = vmatmul.mubr.bf16.gmra.mxu0 %v6679_v46  ;;  %3344 = vmatmul.mubr.bf16.gmra.mxu1 %v6679_v46  ;;  %v7812_v46 = vpop.permute.xlu1 %1761 }
 0x2e7   : > { %3240 = vmatprep.mubr.bf16.mxu0 %v6844_v0  ;;  %3353 = vmatprep.mubr.bf16.mxu1 %v6844_v0 }
 0x2ea   : > { %v2818_v63 = vpop.permute.xlu1 %2817 }
 0x2ee   : > { %3241 = vmatmul.mubr.bf16.gmra.mxu0 %v6680_v51  ;;  %3354 = vmatmul.mubr.bf16.gmra.mxu1 %v6680_v51 }
 0x336   : > { %v5898_v17 = vpop.f32.mrf.mxu0  ;;  %v5962_v19 = vpop.f32.mrf.mxu1 }
 0x338   : > { %v5899_v28 = vpop.f32.mrf.mxu0  ;;  %v5963_v30 = vpop.f32.mrf.mxu1 }
 0x339   : > { %v5900_v38 = vadd.f32 %v5899_v28, %v5898_v17  ;;  %v5964_v41 = vadd.f32 %v5963_v30, %v5962_v19  ;;  %v1765_v30 = vmul.f32 %v1692_v37, %v7527_v11  ;;  %v2828_v11 = vpop.permute.xlu1 %2827 }
 0x33a   : > { %v5901_v42 = vpop.f32.mrf.mxu0  ;;  %v5965_v58 = vpop.f32.mrf.mxu1 }
 0x33b   : > { %v2634_v47 = vadd.f32 %v5900_v38, %v7810_v27 }
 0x33c   : > { %v5902_v49 = vpop.f32.mrf.mxu0  ;;  %v5966_v50 = vpop.f32.mrf.mxu1 }
 0x33d   : > { %v5903_v51 = vadd.f32 %v5902_v49, %v5901_v42  ;;  %v2731_v53 = vadd.f32 %v5964_v41, %v2634_v47  ;;  %v5967_v60 = vadd.f32 %v5966_v50, %v5965_v58 }
 0x33e   : > { %v5904_v55 = vpop.f32.mrf.mxu0  ;;  %v5968_v56 = vpop.f32.mrf.mxu1 }
 0x33f   : > { %v2637_v59 = vadd.f32 %v5903_v51, %v7810_v27  ;;  %v2890_v61 = vmul.f32 %v2813_v48, %v2731_v53  ;;  %v1766_v51 = vmul.f32 %v1697_v36, %v7530_v18 }
 0x340   : > { %v5905_v1 = vpop.f32.mrf.mxu0  ;;  %v5969_v3 = vpop.f32.mrf.mxu1 }
 0x341   : > { %v7817_v39 = vadd.f32 %v2890_v61, %v1764_v57  ;;  %v5906_v40 = vadd.f32 %v5905_v1, %v5904_v55  ;;  %v5970_v4 = vadd.f32 %v5969_v3, %v5968_v56  ;;  %v2734_v17 = vadd.f32 %v5967_v60, %v2637_v59 }
 0x342   : > { %v5907_v19 = vpop.f32.mrf.mxu0  ;;  %v5971_v28 = vpop.f32.mrf.mxu1 }
 0x343   : > { %v2642_v38 = vadd.f32 %v5906_v40, %v7810_v27  ;;  %v2891_v41 = vmul.f32 %v2818_v63, %v2734_v17  ;;  %v1767_v40 = vmul.f32 %v7783_v35, %v7533_v31 }
 0x344   : > { %v5908_v5 = vpop.f32.mrf.mxu0  ;;  %v5972_v42 = vpop.f32.mrf.mxu1 }
 0x345   : > { %v7821_v58 = vadd.f32 %v2891_v41, %v1765_v30  ;;  %v5909_v47 = vadd.f32 %v5908_v5, %v5907_v19  ;;  %v2739_v48 = vadd.f32 %v5970_v4, %v2642_v38  ;;  %v5973_v55 = vadd.f32 %v5972_v42, %v5971_v28  ;;  %v2833_v4 = vpop.permute.xlu0 %2832  ;;  %v5616_v28 = vld [vmem:[%s7296_s18 + $0x100] sm:$0xff] }
 0x346   : > { %v5910_v49 = vpop.f32.mrf.mxu0  ;;  %v5974_v50 = vpop.f32.mrf.mxu1  ;;  %3938 = vperm.xlu0 %6335, %v5616_v28   ;;  %v1768_v42 = vmul.f32 %v7785_v6, %v7537_v43 }
 0x347   : > { %v2645_v53 = vadd.f32 %v5909_v47, %v7810_v27  ;;  %v2892_v56 = vmul.f32 %v2823_v34, %v2739_v48  ;;  %v2838_v48 = vpop.permute.xlu1 %2837 }
 0x348   : > { %v5911_v37 = vpop.f32.mrf.mxu0  ;;  %v5975_v57 = vpop.f32.mrf.mxu1 }
 0x349   : > { %v7825_v59 = vadd.f32 %v2892_v56, %v1766_v51  ;;  %v5912_v60 = vadd.f32 %v5911_v37, %v5910_v49  ;;  %v5976_v61 = vadd.f32 %v5975_v57, %v5974_v50  ;;  %v2742_v63 = vadd.f32 %v5973_v55, %v2645_v53 }
 0x34a   : > { %v5913_v1 = vpop.f32.mrf.mxu0  ;;  %v5977_v3 = vpop.f32.mrf.mxu1  ;;  %v1769_v57 = vmul.f32 %v7787_v32, %v7540_v52 }
 0x34b   : > { %v2650_v18 = vadd.f32 %v5912_v60, %v7810_v27  ;;  %v2893_v36 = vmul.f32 %v2828_v11, %v2742_v63  ;;  %v2843_v60 = vpop.permute.xlu0 %2842 }
 0x34c   : > { %v5914_v17 = vpop.f32.mrf.mxu0  ;;  %v5978_v19 = vpop.f32.mrf.mxu1 }
 0x34d   : > { %v7831_v30 = vadd.f32 %v2893_v36, %v1767_v40  ;;  %v5915_v38 = vadd.f32 %v5914_v17, %v5913_v1  ;;  %v2747_v41 = vadd.f32 %v5976_v61, %v2650_v18  ;;  %v5979_v31 = vadd.f32 %v5978_v19, %v5977_v3  ;;  %v5617_v1 = vld [vmem:[%s7296_s18 + $0x108] sm:$0xff]  ;;  %v5618_v3 = vld [vmem:[%s7296_s18 + $0x110] sm:$0xff] }
 0x34e   : > { %v5916_v34 = vpop.f32.mrf.mxu0  ;;  %v5980_v5 = vpop.f32.mrf.mxu1  ;;  %3943 = vperm.xlu1 %6336, %v5617_v1   ;;  %3948 = vperm.xlu0 %6335, %v5618_v3   ;;  %v1770_v19 = vmul.f32 %v7789_v33, %v7545_v62 }
 0x34f   : > { %v2653_v47 = vadd.f32 %v5915_v38, %v7810_v27  ;;  %v2894_v35 = vmul.f32 %v2833_v4, %v2747_v41  ;;  %v2848_v38 = vpop.permute.xlu1 %2847 }
 0x350   : > { %v5917_v49 = vpop.f32.mrf.mxu0  ;;  %v5981_v50 = vpop.f32.mrf.mxu1 }
 0x351   : > { %v7836_v51 = vadd.f32 %v2894_v35, %v1768_v42  ;;  %v5918_v53 = vadd.f32 %v5917_v49, %v5916_v34  ;;  %v5982_v55 = vadd.f32 %v5981_v50, %v5980_v5  ;;  %v2750_v56 = vadd.f32 %v5979_v31, %v2653_v47  ;;  %v2853_v50 = vpop.permute.xlu0 %2852 }
 0x352   : > { %v5919_v11 = vpop.f32.mrf.mxu0  ;;  %v5983_v37 = vpop.f32.mrf.mxu1  ;;  %v1771_v49 = vmul.f32 %v7791_v8, %v7548_v7 }
 0x353   : > { %v2658_v43 = vadd.f32 %v5918_v53, %v7810_v27  ;;  %v2895_v6 = vmul.f32 %v2838_v48, %v2750_v56  ;;  %v5619_v56 = vld [vmem:[%s7296_s18 + $0x118] sm:$0xff]  ;;  %v2858_v1 = vpop.permute.xlu1 %2857 }
 0x354   : > { %v5920_v61 = vpop.f32.mrf.mxu0  ;;  %v5984_v63 = vpop.f32.mrf.mxu1  ;;  %3953 = vperm.xlu1 %6336, %v5619_v56  }
 0x355   : > { %v7843_v40 = vadd.f32 %v2895_v6, %v1769_v57  ;;  %v5921_v18 = vadd.f32 %v5920_v61, %v5919_v11  ;;  %v2755_v36 = vadd.f32 %v5982_v55, %v2658_v43  ;;  %v5985_v32 = vadd.f32 %v5984_v63, %v5983_v37  ;;  %v5620_v11 = vld [vmem:[%s7296_s18 + $0x120] sm:$0xff] }
 0x356   : > { %v5922_v4 = vpop.f32.mrf.mxu0  ;;  %v5986_v17 = vpop.f32.mrf.mxu1  ;;  %3958 = vperm.xlu0 %6335, %v5620_v11   ;;  %v1772_v61 = vmul.f32 %v7793_v10, %v7553_v15 }
 0x357   : > { %v2661_v52 = vadd.f32 %v5921_v18, %v7810_v27  ;;  %v2896_v28 = vmul.f32 %v2843_v60, %v2755_v36 }
 0x358   : > { %v5923_v41 = vpop.f32.mrf.mxu0  ;;  %v5987_v34 = vpop.f32.mrf.mxu1 }
 0x359   : > { %v7848_v5 = vadd.f32 %v2896_v28, %v1770_v19  ;;  %v5924_v42 = vadd.f32 %v5923_v41, %v5922_v4  ;;  %v5988_v47 = vadd.f32 %v5987_v34, %v5986_v17  ;;  %v2758_v31 = vadd.f32 %v5985_v32, %v2661_v52 }
 0x35a   : > { %v5925_v35 = vpop.f32.mrf.mxu0  ;;  %v5989_v48 = vpop.f32.mrf.mxu1  ;;  %v1773_v28 = vmul.f32 %v7795_v12, %v7556_v29 }
 0x35b   : > { %v2666_v62 = vadd.f32 %v5924_v42, %v7810_v27  ;;  %v2897_v33 = vmul.f32 %v2848_v38, %v2758_v31  ;;  %v2863_v38 = vpop.permute.xlu0 %2862  ;;  %v5621_v42 = vld [vmem:[%s7296_s18 + $0x128] sm:$0xff] }
 0x35c   : > { %v5926_v53 = vpop.f32.mrf.mxu0  ;;  %v5990_v55 = vpop.f32.mrf.mxu1  ;;  %3963 = vperm.xlu1 %6336, %v5621_v42  }
 0x35d   : > { %v7855_v37 = vadd.f32 %v2897_v33, %v1771_v49  ;;  %v5927_v57 = vadd.f32 %v5926_v53, %v5925_v35  ;;  %v2763_v43 = vadd.f32 %v5988_v47, %v2666_v62  ;;  %v5991_v8 = vadd.f32 %v5990_v55, %v5989_v48  ;;  %v5622_v47 = vld [vmem:[%s7296_s18 + $0x130] sm:$0xff]  ;;  %v2868_v53 = vpop.permute.xlu1 %2867 }
 0x35e   : > { %v5928_v6 = vpop.f32.mrf.mxu0  ;;  %v5992_v60 = vpop.f32.mrf.mxu1  ;;  %3968 = vperm.xlu0 %6335, %v5622_v47   ;;  %v1774_v33 = vmul.f32 %v7797_v13, %v7561_v44 }
 0x35f   : > { %v2669_v7 = vadd.f32 %v5927_v57, %v7810_v27  ;;  %v2898_v63 = vmul.f32 %v2853_v50, %v2763_v43 }
 0x360   : > { %v5929_v3 = vpop.f32.mrf.mxu0  ;;  %v5993_v18 = vpop.f32.mrf.mxu1 }
 0x361   : > { %v7860_v36 = vadd.f32 %v2898_v63, %v1772_v61  ;;  %v5930_v4 = vadd.f32 %v5929_v3, %v5928_v6  ;;  %v5994_v17 = vadd.f32 %v5993_v18, %v5992_v60  ;;  %v2766_v19 = vadd.f32 %v5991_v8, %v2669_v7  ;;  %v2873_v8 = vpop.permute.xlu0 %2872  ;;  %v5623_v3 = vld [vmem:[%s7296_s18 + $0x138] sm:$0xff]  ;;  %v5624_v18 = vld [vmem:[%s7296_s18 + $0x140] sm:$0xff] }
 0x362   : > { %v5931_v52 = vpop.f32.mrf.mxu0  ;;  %v5995_v32 = vpop.f32.mrf.mxu1  ;;  %v1775_v7 = vmul.f32 %v7799_v14, %v7564_v54  ;;  %3973 = vperm.xlu1 %6336, %v5623_v3   ;;  %3978 = vperm.xlu0 %6335, %v5624_v18  }
 0x363   : > { %v2674_v15 = vadd.f32 %v5930_v4, %v7810_v27  ;;  %v2899_v10 = vmul.f32 %v2858_v1, %v2766_v19 }
 0x364   : > { %v5932_v41 = vpop.f32.mrf.mxu0  ;;  %v5996_v34 = vpop.f32.mrf.mxu1 }
 0x365   : > { %v7867_v31 = vadd.f32 %v2899_v10, %v1773_v28  ;;  %v5933_v35 = vadd.f32 %v5932_v41, %v5931_v52  ;;  %v2771_v48 = vadd.f32 %v5994_v17, %v2674_v15  ;;  %v5997_v12 = vadd.f32 %v5996_v34, %v5995_v32  ;;  %v2878_v10 = vpop.permute.xlu1 %2877 }
 0x366   : > { %v5934_v49 = vpop.f32.mrf.mxu0  ;;  %v5998_v62 = vpop.f32.mrf.mxu1  ;;  %v1776_v28 = vmul.f32 %v7801_v16, %v7569_v2 }
 0x367   : > { %v2677_v29 = vadd.f32 %v5933_v35, %v7810_v27  ;;  %v2900_v50 = vmul.f32 %v2863_v38, %v2771_v48 }
 0x368   : > { %v5935_v55 = vpop.f32.mrf.mxu0  ;;  %v5999_v56 = vpop.f32.mrf.mxu1 }
 0x369   : > { %v7872_v11 = vadd.f32 %v2900_v50, %v1774_v33  ;;  %v5936_v57 = vadd.f32 %v5935_v55, %v5934_v49  ;;  %v6000_v43 = vadd.f32 %v5999_v56, %v5998_v62  ;;  %v2774_v6 = vadd.f32 %v5997_v12, %v2677_v29  ;;  %v2883_v33 = vpop.permute.xlu0 %2882  ;;  %v5625_v50 = vld [vmem:[%s7296_s18 + $0x148] sm:$0xff] }
 0x36a   : > { %v5937_v60 = vpop.f32.mrf.mxu0  ;;  %v6001_v61 = vpop.f32.mrf.mxu1  ;;  %v1777_v62 = vmul.f32 %v7803_v20, %v7572_v9  ;;  %3983 = vperm.xlu1 %6336, %v5625_v50  }
 0x36b   : > { %v2682_v44 = vadd.f32 %v5936_v57, %v7810_v27  ;;  %v2901_v13 = vmul.f32 %v2868_v53, %v2774_v6  ;;  %v5626_v53 = vld [vmem:[%s7296_s18 + $0x150] sm:$0xff]  ;;  %v1778_v6 = vmul.f32 %v7805_v22, %v7577_v21 }
 0x36c   : > { %v5938_v63 = vpop.f32.mrf.mxu0  ;;  %v6002_v1 = vpop.f32.mrf.mxu1  ;;  %3988 = vperm.xlu0 %6335, %v5626_v53   ;;  %v5630_v53 = vld [vmem:[%s7296_s18 + $0x170] sm:$0xff] }
 0x36d   : > { %v7879_v4 = vadd.f32 %v2901_v13, %v1775_v7  ;;  %v5939_v17 = vadd.f32 %v5938_v63, %v5937_v60  ;;  %v2779_v19 = vadd.f32 %v6000_v43, %v2682_v44  ;;  %v6003_v14 = vadd.f32 %v6002_v1, %v6001_v61  ;;  %v2956_v43 = vld [vmem:[#allocation5 + $0x8] sm:$0xf] }
 0x36e   : > { %v5940_v52 = vpop.f32.mrf.mxu0  ;;  %v6004_v32 = vpop.f32.mrf.mxu1  ;;  %v7897_v7 = vrot.slane %v2956_v43, %v7307_v23  ;;  %v7900_v44 = vrot.slane %v2956_v43, %v7309_v24  ;;  %v7906_v63 = vrot.slane %v2956_v43, %v7313_v26 }
 0x36f   : > { %v2685_v54 = vadd.f32 %v5939_v17, %v7810_v27  ;;  %v2902_v15 = vmul.f32 %v2873_v8, %v2779_v19  ;;  %v7903_v8 = vrot.slane %v2956_v43, %v7311_v25 }
 0x370   : > { %v5941_v38 = vpop.f32.mrf.mxu0  ;;  %v6005_v41 = vpop.f32.mrf.mxu1 }
 0x371   : > { %v7884_v34 = vadd.f32 %v2902_v15, %v1776_v28  ;;  %v5942_v42 = vadd.f32 %v5941_v38, %v5940_v52  ;;  %v6006_v47 = vadd.f32 %v6005_v41, %v6004_v32  ;;  %v2782_v35 = vadd.f32 %v6003_v14, %v2685_v54 }
 0x372   : > { %v5943_v48 = vpop.f32.mrf.mxu0  ;;  %v6007_v49 = vpop.f32.mrf.mxu1  ;;  %v1779_v54 = vmul.f32 %v7812_v46, %v7592_v45 }
 0x373   : > { %v2690_v2 = vadd.f32 %v5942_v42, %v7810_v27  ;;  %v2903_v16 = vmul.f32 %v2878_v10, %v2782_v35  ;;  %v5627_v42 = vld [vmem:[%s7296_s18 + $0x158] sm:$0xff] }
 0x374   : > { %v5944_v29 = vpop.f32.mrf.mxu0  ;;  %v6008_v12 = vpop.f32.mrf.mxu1  ;;  %3993 = vperm.xlu1 %6336, %v5627_v42   ;;  %v6591_v42 = vld [vmem:[%s8365_s1 + $0x3c0] ss:$16 sps:$4 sm:$0xff]  }
 0x375   : > { %v7891_v55 = vadd.f32 %v2903_v16, %v1777_v62  ;;  %v5945_v56 = vadd.f32 %v5944_v29, %v5943_v48  ;;  %v2787_v57 = vadd.f32 %v6006_v47, %v2690_v2  ;;  %v6009_v13 = vadd.f32 %v6008_v12, %v6007_v49  ;;  %v5628_v47 = vld [vmem:[%s7296_s18 + $0x160] sm:$0xff]  ;;  %v5629_v16 = vld [vmem:[%s7296_s18 + $0x168] sm:$0xff] }
 0x376   : > { %v3172_v60 = vpop.f32.mrf.mxu0  ;;  %v3285_v61 = vpop.f32.mrf.mxu1  ;;  %3998 = vperm.xlu0 %6335, %v5628_v47  }
 0x377   : > { %v2693_v9 = vadd.f32 %v5945_v56, %v7810_v27  ;;  %v2904_v20 = vmul.f32 %v2883_v33, %v2787_v57  ;;  %v2888_v27 = vpop.permute.xlu1 %2887  ;;  %v3173_v14 = vadd.f32 %v3172_v60, %v7903_v8  ;;  %v3286_v15 = vadd.f32 %v3285_v61, %v7906_v63 }
 0x378   : > { %v3174_v21 = vpop.f32.mrf.mxu0  ;;  %v3287_v22 = vpop.f32.mrf.mxu1  ;;  %4003 = vperm.xlu1 %6336, %v5629_v16  }
 0x379   : > { %v7908_v1 = vadd.f32 %v2904_v20, %v1778_v6  ;;  %v2790_v3 = vadd.f32 %v6009_v13, %v2693_v9  ;;  %v3175_v19 = vadd.f32 %v3174_v21, %v7897_v7  ;;  %v3288_v52 = vadd.f32 %v3287_v22, %v7900_v44  ;;  %v6585_v9 = vld [vmem:[%s8365_s1 + $0x3e0] ss:$16 sps:$4 sm:$0xff]   ;;  %v6588_v20 = vld [vmem:[%s8365_s1 + $0x3e8] ss:$16 sps:$4 sm:$0xff]  }
 0x37a   : > { %v3176_v18 = vpop.f32.mrf.mxu0  ;;  %v3289_v17 = vpop.f32.mrf.mxu1  ;;  %v3364_v56 = vmax.f32 %v3173_v14, 0.0  ;;  %v3366_v57 = vmax.f32 %v3286_v15, 0.0  ;;  %4008 = vperm.xlu0 %6335, %v5630_v53  }
 0x37b   : > { %v3177_v32 = vadd.f32 %v3176_v18, %v7903_v8  ;;  %v3290_v28 = vadd.f32 %v3289_v17, %v7906_v63  ;;  %v2905_v10 = vmul.f32 %v2888_v27, %v2790_v3  ;;  %v3365_v33 = vmax.f32 %v3175_v19, 0.0  ;;  %v6593_v18 = vld [vmem:[%s8365_s1 + $0x3c4] ss:$16 sps:$4 sm:$0xff]   ;;  %v6596_v17 = vld [vmem:[%s8365_s1 + $0x3cc] ss:$16 sps:$4 sm:$0xff]  }
 0x37c   : > { %v3178_v38 = vpop.f32.mrf.mxu0  ;;  %v3291_v41 = vpop.f32.mrf.mxu1  ;;  %v3367_v29 = vmax.f32 %v3288_v52, 0.0 }
 0x37d   : > { %v3179_v35 = vadd.f32 %v3178_v38, %v7897_v7  ;;  %v3292_v48 = vadd.f32 %v3291_v41, %v7900_v44  ;;  %v7922_v49 = vadd.f32 %v2905_v10, %v1779_v54  ;;  %v3368_v45 = vmax.f32 %v3177_v32, 0.0  ;;  %v5631_v10 = vld [vmem:[%s7296_s18 + $0x178] sm:$0xff] }
 0x37e   : > { %v3370_v46 = vmax.f32 %v3290_v28, 0.0  ;;  %v3182_v62 = vpop.f32.mrf.mxu0  ;;  %v3295_v2 = vpop.f32.mrf.mxu1  ;;  %4013 = vperm.xlu1 %6336, %v5631_v10   ;;  %v6603_v10 = vld [vmem:[%s8365_s1 + $0x380] ss:$16 sps:$4 sm:$0xff]  }
 0x37f   : > { %v3369_v12 = vmax.f32 %v3179_v35, 0.0  ;;  %v3371_v50 = vmax.f32 %v3292_v48, 0.0  ;;  %v3428_v13 = vpack.c.bf16 %v3368_v45, %v3364_v56  ;;  %v3183_v28 = vadd.f32 %v3182_v62, %v7903_v8  ;;  %v6599_v62 = vld [vmem:[%s8365_s1 + $0x3a4] ss:$16 sps:$4 sm:$0xff]  }
 0x380   : > { %v3184_v43 = vpop.f32.mrf.mxu0  ;;  %v3297_v6 = vpop.f32.mrf.mxu1  ;;  %v3430_v21 = vpack.c.bf16 %v3370_v46, %v3366_v57  ;;  %v3296_v54 = vadd.f32 %v3295_v2, %v7906_v63  ;;  %v6594_v46 = vld [vmem:[%s8365_s1 + $0x3c8] ss:$16 sps:$4 sm:$0xff]  }
 0x381   : > { %v3429_v60 = vpack.c.bf16 %v3369_v12, %v3365_v33  ;;  %v3431_v61 = vpack.c.bf16 %v3371_v50, %v3367_v29  ;;  %v3185_v22 = vadd.f32 %v3184_v43, %v7897_v7  ;;  %v3298_v19 = vadd.f32 %v3297_v6, %v7900_v44  ;;  %v6597_v6 = vld [vmem:[%s8365_s1 + $0x3a0] ss:$16 sps:$4 sm:$0xff]  }
 0x382   : > { %v3186_v27 = vpop.f32.mrf.mxu0  ;;  %v3299_v3 = vpop.f32.mrf.mxu1  ;;  %v3372_v12 = vmax.f32 %v3183_v28, 0.0  ;;  %v3374_v50 = vmax.f32 %v3296_v54, 0.0 }
 0x383   : > { %v3187_v52 = vadd.f32 %v3186_v27, %v7903_v8  ;;  %v3300_v32 = vadd.f32 %v3299_v3, %v7906_v63  ;;  %3757 = vmatprep.mubr.bf16.mxu0 %v3429_v60  ;;  %3854 = vmatprep.mubr.bf16.mxu1 %v3431_v61  ;;  %v3373_v2 = vmax.f32 %v3185_v22, 0.0  ;;  %v3375_v16 = vmax.f32 %v3298_v19, 0.0  ;;  %v6602_v60 = vld [vmem:[%s8365_s1 + $0x3ac] ss:$16 sps:$4 sm:$0xff]   ;;  %v6600_v22 = vld [vmem:[%s8365_s1 + $0x3a8] ss:$16 sps:$4 sm:$0xff]  }
 0x384   : > { %v3188_v14 = vpop.f32.mrf.mxu0  ;;  %v3301_v15 = vpop.f32.mrf.mxu1  ;;  %3758 = vmatmul.mubr.bf16.vlgmr.msra.gmra.mxu0 %v3428_v13  ;;  %3855 = vmatmul.mubr.bf16.vlgmr.msra.gmra.mxu1 %v3430_v21  ;;  %v6605_v27 = vld [vmem:[%s8365_s1 + $0x384] ss:$16 sps:$4 sm:$0xff]   ;;  %v6608_v19 = vld [vmem:[%s8365_s1 + $0x38c] ss:$16 sps:$4 sm:$0xff]  }
 0x385   : > { %v3189_v38 = vadd.f32 %v3188_v14, %v7897_v7  ;;  %v3302_v41 = vadd.f32 %v3301_v15, %v7900_v44  ;;  %4265 = vmatpush1.bf16.msra.mxu0 %v6585_v9  ;;  %4378 = vmatpush1.bf16.msra.mxu1 %v6588_v20  ;;  %v3376_v47 = vmax.f32 %v3187_v52, 0.0  ;;  %v3378_v35 = vmax.f32 %v3300_v32, 0.0 }
 0x386   : > { %v3192_v48 = vpop.f32.mrf.mxu0  ;;  %v3305_v45 = vpop.f32.mrf.mxu1  ;;  %4266 = vmatprep.subr.bf16.mxu0 %v6593_v18  ;;  %4379 = vmatprep.subr.bf16.mxu1 %v6596_v17 }
 0x387   : > { %v3377_v33 = vmax.f32 %v3189_v38, 0.0  ;;  %v3379_v29 = vmax.f32 %v3302_v41, 0.0  ;;  %v3432_v61 = vpack.c.bf16 %v3376_v47, %v3372_v12  ;;  %v3434_v9 = vpack.c.bf16 %v3378_v35, %v3374_v50  ;;  %v6606_v35 = vld [vmem:[%s8365_s1 + $0x388] ss:$16 sps:$4 sm:$0xff]  }
 0x388   : > { %v3194_v53 = vpop.f32.mrf.mxu0  ;;  %v3307_v56 = vpop.f32.mrf.mxu1  ;;  %v3193_v52 = vadd.f32 %v3192_v48, %v7903_v8  ;;  %v3306_v32 = vadd.f32 %v3305_v45, %v7906_v63  ;;  %v6611_v48 = vld [vmem:[%s8365_s1 + $0x364] ss:$16 sps:$4 sm:$0xff]  }
 0x389   : > { %v3433_v57 = vpack.c.bf16 %v3377_v33, %v3373_v2  ;;  %v3435_v43 = vpack.c.bf16 %v3379_v29, %v3375_v16  ;;  %4267 = vmatpush1.bf16.msra.mxu0 %v6591_v42  ;;  %v3195_v20 = vadd.f32 %v3194_v53, %v7897_v7  ;;  %4380 = vmatpush1.bf16.msra.mxu1 %v6594_v46 }
 0x38a   : > { %v3196_v13 = vpop.f32.mrf.mxu0  ;;  %v3309_v21 = vpop.f32.mrf.mxu1  ;;  %4268 = vmatprep.subr.bf16.mxu0 %v6599_v62  ;;  %v3308_v3 = vadd.f32 %v3307_v56, %v7900_v44  ;;  %4381 = vmatprep.subr.bf16.mxu1 %v6602_v60  ;;  %v3380_v16 = vmax.f32 %v3193_v52, 0.0  ;;  %v3382_v33 = vmax.f32 %v3306_v32, 0.0  ;;  %v6609_v56 = vld [vmem:[%s8365_s1 + $0x360] ss:$16 sps:$4 sm:$0xff]  }
 0x38b   : > { %v3197_v18 = vadd.f32 %v3196_v13, %v7903_v8  ;;  %v3310_v17 = vadd.f32 %v3309_v21, %v7906_v63  ;;  %3765 = vmatprep.mubr.bf16.mxu0 %v3433_v57  ;;  %3862 = vmatprep.mubr.bf16.mxu1 %v3435_v43  ;;  %v3381_v45 = vmax.f32 %v3195_v20, 0.0  ;;  %v6614_v57 = vld [vmem:[%s8365_s1 + $0x36c] ss:$16 sps:$4 sm:$0xff]   ;;  %v6612_v20 = vld [vmem:[%s8365_s1 + $0x368] ss:$16 sps:$4 sm:$0xff]  }
 0x38c   : > { %v3198_v28 = vpop.f32.mrf.mxu0  ;;  %v3311_v54 = vpop.f32.mrf.mxu1  ;;  %3766 = vmatmul.mubr.bf16.gmra.mxu0 %v3432_v61  ;;  %3863 = vmatmul.mubr.bf16.gmra.mxu1 %v3434_v9  ;;  %v3383_v46 = vmax.f32 %v3308_v3, 0.0  ;;  %v6617_v13 = vld [vmem:[%s8365_s1 + $0x344] ss:$16 sps:$4 sm:$0xff]   ;;  %v6620_v3 = vld [vmem:[%s8365_s1 + $0x34c] ss:$16 sps:$4 sm:$0xff]  }
 0x38d   : > { %v3199_v14 = vadd.f32 %v3198_v28, %v7897_v7  ;;  %v3312_v15 = vadd.f32 %v3311_v54, %v7900_v44  ;;  %4269 = vmatpush1.bf16.msra.mxu0 %v6597_v6  ;;  %v3384_v38 = vmax.f32 %v3197_v18, 0.0  ;;  %v3386_v41 = vmax.f32 %v3310_v17, 0.0  ;;  %4382 = vmatpush1.bf16.msra.mxu1 %v6600_v22  ;;  %v6615_v54 = vld [vmem:[%s8365_s1 + $0x340] ss:$16 sps:$4 sm:$0xff]  }
 0x38e   : > { %v3202_v42 = vpop.f32.mrf.mxu0  ;;  %v3315_v47 = vpop.f32.mrf.mxu1  ;;  %4270 = vmatprep.subr.bf16.mxu0 %v6605_v27  ;;  %4383 = vmatprep.subr.bf16.mxu1 %v6608_v19 }
 0x38f   : > { %v3385_v62 = vmax.f32 %v3199_v14, 0.0  ;;  %v3387_v2 = vmax.f32 %v3312_v15, 0.0  ;;  %v3436_v43 = vpack.c.bf16 %v3384_v38, %v3380_v16  ;;  %v3438_v6 = vpack.c.bf16 %v3386_v41, %v3382_v33  ;;  %v6618_v41 = vld [vmem:[%s8365_s1 + $0x348] ss:$16 sps:$4 sm:$0xff]  }
 0x390   : > { %v3204_v29 = vpop.f32.mrf.mxu0  ;;  %v3317_v12 = vpop.f32.mrf.mxu1  ;;  %v3203_v18 = vadd.f32 %v3202_v42, %v7903_v8  ;;  %v3316_v17 = vadd.f32 %v3315_v47, %v7906_v63  ;;  %v6623_v42 = vld [vmem:[%s8365_s1 + $0x324] ss:$16 sps:$4 sm:$0xff]  }
 0x391   : > { %v3437_v50 = vpack.c.bf16 %v3385_v62, %v3381_v45  ;;  %v3439_v53 = vpack.c.bf16 %v3387_v2, %v3383_v46  ;;  %4271 = vmatpush1.bf16.msra.mxu0 %v6603_v10  ;;  %v3205_v60 = vadd.f32 %v3204_v29, %v7897_v7  ;;  %4384 = vmatpush1.bf16.msra.mxu1 %v6606_v35 }
 0x392   : > { %v3206_v61 = vpop.f32.mrf.mxu0  ;;  %v3319_v9 = vpop.f32.mrf.mxu1  ;;  %4272 = vmatprep.subr.bf16.mxu0 %v6611_v48  ;;  %v3318_v21 = vadd.f32 %v3317_v12, %v7900_v44  ;;  %4385 = vmatprep.subr.bf16.mxu1 %v6614_v57  ;;  %v3388_v46 = vmax.f32 %v3203_v18, 0.0  ;;  %v3390_v62 = vmax.f32 %v3316_v17, 0.0  ;;  %v6621_v12 = vld [vmem:[%s8365_s1 + $0x320] ss:$16 sps:$4 sm:$0xff]  }
 0x393   : > { %v3207_v22 = vadd.f32 %v3206_v61, %v7903_v8  ;;  %v3320_v27 = vadd.f32 %v3319_v9, %v7906_v63  ;;  %3773 = vmatprep.mubr.bf16.mxu0 %v3437_v50  ;;  %3870 = vmatprep.mubr.bf16.mxu1 %v3439_v53  ;;  %v3389_v47 = vmax.f32 %v3205_v60, 0.0  ;;  %v6626_v50 = vld [vmem:[%s8365_s1 + $0x32c] ss:$16 sps:$4 sm:$0xff]   ;;  %v6624_v60 = vld [vmem:[%s8365_s1 + $0x328] ss:$16 sps:$4 sm:$0xff]  }
 0x394   : > { %v3208_v19 = vpop.f32.mrf.mxu0  ;;  %v3321_v52 = vpop.f32.mrf.mxu1  ;;  %3774 = vmatmul.mubr.bf16.gmra.mxu0 %v3436_v43  ;;  %3871 = vmatmul.mubr.bf16.gmra.mxu1 %v3438_v6  ;;  %v3391_v35 = vmax.f32 %v3318_v21, 0.0  ;;  %v6629_v61 = vld [vmem:[%s8365_s1 + $0x304] ss:$16 sps:$4 sm:$0xff]   ;;  %v6632_v21 = vld [vmem:[%s8365_s1 + $0x30c] ss:$16 sps:$4 sm:$0xff]  }
 0x395   : > { %v3209_v32 = vadd.f32 %v3208_v19, %v7897_v7  ;;  %v3322_v28 = vadd.f32 %v3321_v52, %v7900_v44  ;;  %4273 = vmatpush1.bf16.msra.mxu0 %v6609_v56  ;;  %v3392_v14 = vmax.f32 %v3207_v22, 0.0  ;;  %v3394_v15 = vmax.f32 %v3320_v27, 0.0  ;;  %4386 = vmatpush1.bf16.msra.mxu1 %v6612_v20  ;;  %v6627_v52 = vld [vmem:[%s8365_s1 + $0x300] ss:$16 sps:$4 sm:$0xff]  }
 0x396   : > { %v3212_v10 = vpop.f32.mrf.mxu0  ;;  %v3325_v38 = vpop.f32.mrf.mxu1  ;;  %4274 = vmatprep.subr.bf16.mxu0 %v6617_v13  ;;  %4387 = vmatprep.subr.bf16.mxu1 %v6620_v3 }
 0x397   : > { %v3393_v48 = vmax.f32 %v3209_v32, 0.0  ;;  %v3395_v45 = vmax.f32 %v3322_v28, 0.0  ;;  %v3440_v53 = vpack.c.bf16 %v3392_v14, %v3388_v46  ;;  %v3442_v56 = vpack.c.bf16 %v3394_v15, %v3390_v62  ;;  %v6630_v15 = vld [vmem:[%s8365_s1 + $0x308] ss:$16 sps:$4 sm:$0xff]  }
 0x398   : > { %v3214_v2 = vpop.f32.mrf.mxu0  ;;  %v3327_v16 = vpop.f32.mrf.mxu1  ;;  %v3213_v22 = vadd.f32 %v3212_v10, %v7903_v8  ;;  %v3326_v27 = vadd.f32 %v3325_v38, %v7906_v63 }
 0x399   : > { %v3441_v33 = vpack.c.bf16 %v3393_v48, %v3389_v47  ;;  %v3443_v29 = vpack.c.bf16 %v3395_v45, %v3391_v35  ;;  %4275 = vmatpush1.bf16.msra.mxu0 %v6615_v54  ;;  %v3215_v57 = vadd.f32 %v3214_v2, %v7897_v7  ;;  %4388 = vmatpush1.bf16.msra.mxu1 %v6618_v41 }
 0x39a   : > { %v3216_v43 = vpop.f32.mrf.mxu0  ;;  %v3329_v6 = vpop.f32.mrf.mxu1  ;;  %4276 = vmatprep.subr.bf16.mxu0 %v6623_v42  ;;  %v3328_v9 = vadd.f32 %v3327_v16, %v7900_v44  ;;  %4389 = vmatprep.subr.bf16.mxu1 %v6626_v50  ;;  %v3396_v47 = vmax.f32 %v3213_v22, 0.0  ;;  %v3398_v35 = vmax.f32 %v3326_v27, 0.0 }
 0x39b   : > { %v3217_v20 = vadd.f32 %v3216_v43, %v7903_v8  ;;  %v3330_v13 = vadd.f32 %v3329_v6, %v7906_v63  ;;  %3781 = vmatprep.mubr.bf16.mxu0 %v3441_v33  ;;  %3878 = vmatprep.mubr.bf16.mxu1 %v3443_v29  ;;  %v3397_v10 = vmax.f32 %v3215_v57, 0.0 }
 0x39c   : > { %v3218_v3 = vpop.f32.mrf.mxu0  ;;  %v3331_v18 = vpop.f32.mrf.mxu1  ;;  %3782 = vmatmul.mubr.bf16.gmra.mxu0 %v3440_v53  ;;  %3879 = vmatmul.mubr.bf16.gmra.mxu1 %v3442_v56  ;;  %v3399_v38 = vmax.f32 %v3328_v9, 0.0 }
 0x39d   : > { %v3219_v17 = vadd.f32 %v3218_v3, %v7897_v7  ;;  %v3332_v19 = vadd.f32 %v3331_v18, %v7900_v44  ;;  %4277 = vmatpush1.bf16.msra.mxu0 %v6621_v12  ;;  %v3400_v32 = vmax.f32 %v3217_v20, 0.0  ;;  %v3402_v28 = vmax.f32 %v3330_v13, 0.0  ;;  %4390 = vmatpush1.bf16.msra.mxu1 %v6624_v60 }
 0x39e   : > { %v3222_v54 = vpop.f32.mrf.mxu0  ;;  %v3335_v14 = vpop.f32.mrf.mxu1  ;;  %4278 = vmatprep.subr.bf16.mxu0 %v6629_v61  ;;  %4391 = vmatprep.subr.bf16.mxu1 %v6632_v21 }
 0x39f   : > { %v3401_v41 = vmax.f32 %v3219_v17, 0.0  ;;  %v3403_v42 = vmax.f32 %v3332_v19, 0.0  ;;  %v3444_v2 = vpack.c.bf16 %v3400_v32, %v3396_v47  ;;  %v3446_v16 = vpack.c.bf16 %v3402_v28, %v3398_v35 }
 0x3a0   : > { %v3224_v48 = vpop.f32.mrf.mxu0  ;;  %v3337_v45 = vpop.f32.mrf.mxu1  ;;  %v3223_v57 = vadd.f32 %v3222_v54, %v7903_v8  ;;  %v3336_v43 = vadd.f32 %v3335_v14, %v7906_v63 }
 0x3a1   : > { %v3445_v46 = vpack.c.bf16 %v3401_v41, %v3397_v10  ;;  %v3447_v62 = vpack.c.bf16 %v3403_v42, %v3399_v38  ;;  %4279 = vmatpush1.bf16.msra.mxu0 %v6627_v52  ;;  %v3225_v33 = vadd.f32 %v3224_v48, %v7897_v7  ;;  %4392 = vmatpush1.bf16.msra.mxu1 %v6630_v15 }
 0x3a2   : > { %v3226_v29 = vpop.f32.mrf.mxu0  ;;  %v3339_v12 = vpop.f32.mrf.mxu1  ;;  %v3338_v50 = vadd.f32 %v3337_v45, %v7900_v44  ;;  %v3404_v19 = vmax.f32 %v3223_v57, 0.0  ;;  %v3406_v52 = vmax.f32 %v3336_v43, 0.0 }
 0x3a3   : > { %v3227_v53 = vadd.f32 %v3226_v29, %v7903_v8  ;;  %v3340_v56 = vadd.f32 %v3339_v12, %v7906_v63  ;;  %3789 = vmatprep.mubr.bf16.mxu0 %v3445_v46  ;;  %3886 = vmatprep.mubr.bf16.mxu1 %v3447_v62  ;;  %v3405_v27 = vmax.f32 %v3225_v33, 0.0 }
 0x3a4   : > { %v3228_v6 = vpop.f32.mrf.mxu0  ;;  %v3341_v60 = vpop.f32.mrf.mxu1  ;;  %3790 = vmatmul.mubr.bf16.gmra.mxu0 %v3444_v2  ;;  %3887 = vmatmul.mubr.bf16.gmra.mxu1 %v3446_v16  ;;  %v3407_v3 = vmax.f32 %v3338_v50, 0.0 }
 0x3a5   : > { %v3229_v61 = vadd.f32 %v3228_v6, %v7897_v7  ;;  %v3342_v9 = vadd.f32 %v3341_v60, %v7900_v44  ;;  %v3408_v20 = vmax.f32 %v3227_v53, 0.0  ;;  %v3410_v13 = vmax.f32 %v3340_v56, 0.0 }
 0x3a6   : > { %v3232_v21 = vpop.f32.mrf.mxu0  ;;  %v3345_v22 = vpop.f32.mrf.mxu1 }
 0x3a7   : > { %v3409_v18 = vmax.f32 %v3229_v61, 0.0  ;;  %v3411_v17 = vmax.f32 %v3342_v9, 0.0  ;;  %v3448_v15 = vpack.c.bf16 %v3408_v20, %v3404_v19  ;;  %v3450_v10 = vpack.c.bf16 %v3410_v13, %v3406_v52 }
 0x3a8   : > { %v3234_v32 = vpop.f32.mrf.mxu0  ;;  %v3347_v28 = vpop.f32.mrf.mxu1  ;;  %v3233_v45 = vadd.f32 %v3232_v21, %v7903_v8  ;;  %v3346_v46 = vadd.f32 %v3345_v22, %v7906_v63 }
 0x3a9   : > { %v3449_v54 = vpack.c.bf16 %v3409_v18, %v3405_v27  ;;  %v3451_v14 = vpack.c.bf16 %v3411_v17, %v3407_v3  ;;  %v3235_v38 = vadd.f32 %v3234_v32, %v7897_v7  ;;  %v3348_v47 = vadd.f32 %v3347_v28, %v7900_v44 }
 0x3aa   : > { %v3236_v41 = vpop.f32.mrf.mxu0  ;;  %v3349_v42 = vpop.f32.mrf.mxu1  ;;  %v3412_v60 = vmax.f32 %v3233_v45, 0.0  ;;  %v3414_v61 = vmax.f32 %v3346_v46, 0.0 }
 0x3ab   : > { %v3237_v35 = vadd.f32 %v3236_v41, %v7903_v8  ;;  %v3350_v48 = vadd.f32 %v3349_v42, %v7906_v63  ;;  %3797 = vmatprep.mubr.bf16.mxu0 %v3449_v54  ;;  %3894 = vmatprep.mubr.bf16.mxu1 %v3451_v14  ;;  %v3413_v56 = vmax.f32 %v3235_v38, 0.0  ;;  %v3415_v57 = vmax.f32 %v3348_v47, 0.0 }
 0x3ac   : > { %v3238_v62 = vpop.f32.mrf.mxu0  ;;  %v3351_v2 = vpop.f32.mrf.mxu1  ;;  %3798 = vmatmul.mubr.bf16.gmra.mxu0 %v3448_v15  ;;  %3895 = vmatmul.mubr.bf16.gmra.mxu1 %v3450_v10 }
 0x3ad   : > { %v3239_v16 = vadd.f32 %v3238_v62, %v7897_v7  ;;  %v3352_v33 = vadd.f32 %v3351_v2, %v7900_v44  ;;  %v3416_v29 = vmax.f32 %v3237_v35, 0.0  ;;  %v3418_v12 = vmax.f32 %v3350_v48, 0.0 }
 0x3ae   : > { %v3242_v50 = vpop.f32.mrf.mxu0  ;;  %v3355_v53 = vpop.f32.mrf.mxu1 }
 0x3af   : > { %v3417_v43 = vmax.f32 %v3239_v16, 0.0  ;;  %v3419_v6 = vmax.f32 %v3352_v33, 0.0  ;;  %v3452_v22 = vpack.c.bf16 %v3416_v29, %v3412_v60  ;;  %v3454_v27 = vpack.c.bf16 %v3418_v12, %v3414_v61  ;;  %v6633_v33 = vld [vmem:[#allocation7 + $0x378] sm:$0xff]   ;;  %v6683_v29 = vld [vmem:[%s7157_s19 + $0x10] sm:$0xff]   ;;  %v6640_v60 = vld [vmem:[#allocation7 + $0x3b0] sm:$0xff]  }
 0x3b0   : > { %v3244_v9 = vpop.f32.mrf.mxu0  ;;  %v3357_v20 = vpop.f32.mrf.mxu1  ;;  %v3243_v28 = vadd.f32 %v3242_v50, %v7903_v8  ;;  %v3356_v54 = vadd.f32 %v3355_v53, %v7906_v63  ;;  %v6634_v12 = vld [vmem:[#allocation7 + $0x338] sm:$0xff]   ;;  %6138 = vmatprep.subr.bf16.mxu0 %v6633_v33  ;;  %v6641_v61 = vld [vmem:[#allocation7 + $0x368] sm:$0xff]  }
 0x3b1   : > { %v3453_v13 = vpack.c.bf16 %v3417_v43, %v3413_v56  ;;  %v3455_v21 = vpack.c.bf16 %v3419_v6, %v3415_v57  ;;  %v3245_v3 = vadd.f32 %v3244_v9, %v7897_v7  ;;  %v3358_v19 = vadd.f32 %v3357_v20, %v7900_v44  ;;  %v6635_v50 = vld [vmem:[#allocation7 + $0x3f8] sm:$0xff]   ;;  %v6637_v56 = vld [vmem:[#allocation7 + $0x370] sm:$0xff]   ;;  %v6684_v57 = vld [vmem:[%s7157_s19 + $0x18] sm:$0xff]  }
 0x3b2   : > { %v3246_v18 = vpop.f32.mrf.mxu0  ;;  %v3359_v17 = vpop.f32.mrf.mxu1  ;;  %v3420_v46 = vmax.f32 %v3243_v28, 0.0  ;;  %v3422_v62 = vmax.f32 %v3356_v54, 0.0  ;;  %6202 = vmatprep.subr.bf16.mxu1 %v6635_v50  ;;  %v6636_v53 = vld [vmem:[#allocation7 + $0x3b8] sm:$0xff]   ;;  %v6638_v43 = vld [vmem:[#allocation7 + $0x330] sm:$0xff]   ;;  %v6642_v20 = vld [vmem:[#allocation7 + $0x328] sm:$0xff]  }
 0x3b3   : > { %v3247_v52 = vadd.f32 %v3246_v18, %v7903_v8  ;;  %v3360_v32 = vadd.f32 %v3359_v17, %v7906_v63  ;;  %3805 = vmatprep.mubr.bf16.mxu0 %v3453_v13  ;;  %3902 = vmatprep.mubr.bf16.mxu1 %v3455_v21  ;;  %v3421_v47 = vmax.f32 %v3245_v3, 0.0  ;;  %v3423_v35 = vmax.f32 %v3358_v19, 0.0  ;;  %v6639_v6 = vld [vmem:[#allocation7 + $0x3f0] sm:$0xff]   ;;  %v6643_v13 = vld [vmem:[#allocation7 + $0x3e8] sm:$0xff]   ;;  %v6646_v3 = vld [vmem:[#allocation7 + $0x320] sm:$0xff]  }
 0x3b4   : > { %v3248_v14 = vpop.f32.mrf.mxu0  ;;  %v3361_v15 = vpop.f32.mrf.mxu1  ;;  %3806 = vmatmul.mubr.bf16.gmra.mxu0 %v3452_v22  ;;  %3903 = vmatmul.mubr.bf16.gmra.mxu1 %v3454_v27  ;;  %v6685_v9 = vld [vmem:[%s7157_s19 + $0x20] sm:$0xff]   ;;  %v6644_v21 = vld [vmem:[#allocation7 + $0x3a8] sm:$0xff]   ;;  %v6645_v22 = vld [vmem:[#allocation7 + $0x360] sm:$0xff]  }
 0x3b5   : > { %v3249_v10 = vadd.f32 %v3248_v14, %v7897_v7  ;;  %v3362_v38 = vadd.f32 %v3361_v15, %v7900_v44  ;;  %v3424_v41 = vmax.f32 %v3247_v52, 0.0  ;;  %v3426_v42 = vmax.f32 %v3360_v32, 0.0  ;;  %v6681_v7 = vld [vmem:[%s7157_s19] sm:$0xff]   ;;  %v6682_v44 = vld [vmem:[%s7157_s19 + $0x8] sm:$0xff]   ;;  %v6647_v18 = vld [vmem:[#allocation7 + $0x3e0] sm:$0xff]  }
 0x3b6   : > { %v6686_v27 = vld [vmem:[%s7157_s19 + $0x28] sm:$0xff]   ;;  %v6648_v17 = vld [vmem:[#allocation7 + $0x3a0] sm:$0xff]   ;;  %v6653_v14 = vld [vmem:[#allocation7 + $0x350] sm:$0xff]  }
 0x3b7   : > { %v3425_v48 = vmax.f32 %v3249_v10, 0.0  ;;  %v3427_v45 = vmax.f32 %v3362_v38, 0.0  ;;  %v3456_v2 = vpack.c.bf16 %v3424_v41, %v3420_v46  ;;  %v3458_v16 = vpack.c.bf16 %v3426_v42, %v3422_v62  ;;  %v6649_v19 = vld [vmem:[#allocation7 + $0x358] sm:$0xff]   ;;  %v6687_v52 = vld [vmem:[%s7157_s19 + $0x30] sm:$0xff]   ;;  %v6688_v15 = vld [vmem:[%s7157_s19 + $0x38] sm:$0xff]  }
 0x3b8   : > { %v6650_v32 = vld [vmem:[#allocation7 + $0x318] sm:$0xff]   ;;  %v6654_v10 = vld [vmem:[#allocation7 + $0x310] sm:$0xff]   ;;  %v6657_v41 = vld [vmem:[#allocation7 + $0x348] sm:$0xff]  }
 0x3b9   : > { %v3457_v8 = vpack.c.bf16 %v3425_v48, %v3421_v47  ;;  %v3459_v63 = vpack.c.bf16 %v3427_v45, %v3423_v35  ;;  %v6651_v28 = vld [vmem:[#allocation7 + $0x3d8] sm:$0xff]   ;;  %v6655_v38 = vld [vmem:[#allocation7 + $0x3d0] sm:$0xff]   ;;  %v5731_v42 = vld [vmem:[%s7296_s18 + $0x188] sm:$0xff] }
 0x3ba   : > { %v6652_v54 = vld [vmem:[#allocation7 + $0x398] sm:$0xff]   ;;  %v5730_v47 = vld [vmem:[%s7296_s18 + $0x180] sm:$0xff]  ;;  %5069 = vperm.xlu1 %6336, %v5731_v42   ;;  %v6658_v35 = vld [vmem:[#allocation7 + $0x308] sm:$0xff]  }
 0x3bb   : > { %3813 = vmatprep.mubr.bf16.mxu0 %v3457_v8  ;;  %3910 = vmatprep.mubr.bf16.mxu1 %v3459_v63  ;;  %v6659_v48 = vld [vmem:[#allocation7 + $0x3c8] sm:$0xff]   ;;  %v5733_v46 = vld [vmem:[%s7296_s18 + $0x198] sm:$0xff]  ;;  %v5732_v62 = vld [vmem:[%s7296_s18 + $0x190] sm:$0xff] }
 0x3bc   : > { %3814 = vmatmul.mubr.bf16.gmra.mxu0 %v3456_v2  ;;  %3911 = vmatmul.mubr.bf16.gmra.mxu1 %v3458_v16  ;;  %v6660_v45 = vld [vmem:[#allocation7 + $0x388] sm:$0xff]   ;;  %v5734_v63 = vld [vmem:[%s7296_s18 + $0x1a0] sm:$0xff]  ;;  %v5737_v33 = vld [vmem:[%s7296_s18 + $0x1b8] sm:$0xff] }
 0x3bd   : > { %4296 = vmatprep.mubr.bf16.mxu0 %v6844_v0  ;;  %4409 = vmatprep.mubr.bf16.mxu1 %v6844_v0  ;;  %v5735_v8 = vld [vmem:[%s7296_s18 + $0x1a8] sm:$0xff]  ;;  %v6661_v2 = vld [vmem:[#allocation7 + $0x340] sm:$0xff]  }
 0x3be   : > { %5064 = vperm.xlu0 %6335, %v5730_v47   ;;  %5079 = vperm.xlu1 %6336, %v5733_v46   ;;  %v6663_v16 = vld [vmem:[#allocation7 + $0x3c0] sm:$0xff]  }
 0x3bf   : > { %v5738_v50 = vld [vmem:[%s7296_s18 + $0x1c0] sm:$0xff] }
 0x3c2   : > { %5074 = vperm.xlu0 %6335, %v5732_v62   ;;  %5089 = vperm.xlu1 %6336, %v5735_v8  }
 0x3c4   : > { %4297 = vmatmul.mubr.bf16.vlgmr.msra.gmra.mxu0 %v6681_v7  ;;  %4410 = vmatmul.mubr.bf16.vlgmr.msra.gmra.mxu1 %v6681_v7  ;;  %v6662_v7 = vld [vmem:[#allocation7 + $0x300] sm:$0xff]  }
 0x3c5   : > { %4306 = vmatprep.mubr.bf16.mxu0 %v6844_v0  ;;  %4419 = vmatprep.mubr.bf16.mxu1 %v6844_v0 }
 0x3c6   : > { %6139 = vmatpush3.bf16.msra.mxu0 %v6634_v12  ;;  %6203 = vmatpush3.bf16.msra.mxu1 %v6636_v53  ;;  %v5739_v12 = vld [vmem:[%s7296_s18 + $0x1c8] sm:$0xff]  ;;  %v5741_v53 = vld [vmem:[%s7296_s18 + $0x1d8] sm:$0xff] }
 0x3c7   : > { %6140 = vmatprep.subr.bf16.mxu0 %v6637_v56  ;;  %6204 = vmatprep.subr.bf16.mxu1 %v6639_v6  ;;  %v5740_v56 = vld [vmem:[%s7296_s18 + $0x1d0] sm:$0xff]  ;;  %v5745_v6 = vld [vmem:[%s7296_s18 + $0x1f8] sm:$0xff] }
 0x3c8   : > { %5084 = vperm.xlu0 %6335, %v5734_v63   ;;  %5099 = vperm.xlu1 %6336, %v5737_v33  }
 0x3ca   : > { %6141 = vmatpush3.bf16.msra.mxu0 %v6638_v43  ;;  %6205 = vmatpush3.bf16.msra.mxu1 %v6640_v60  ;;  %v5742_v43 = vld [vmem:[%s7296_s18 + $0x1e0] sm:$0xff]  ;;  %v5744_v60 = vld [vmem:[%s7296_s18 + $0x1f0] sm:$0xff] }
 0x3cb   : > { %6142 = vmatprep.subr.bf16.mxu0 %v6641_v61  ;;  %6206 = vmatprep.subr.bf16.mxu1 %v6643_v13 }
 0x3cc   : > { %4307 = vmatmul.mubr.bf16.gmra.mxu0 %v6682_v44  ;;  %4420 = vmatmul.mubr.bf16.gmra.mxu1 %v6682_v44  ;;  %v6664_v44 = vld [vmem:[#allocation7 + $0x380] sm:$0xff]  }
 0x3cd   : > { %4316 = vmatprep.mubr.bf16.mxu0 %v6844_v0  ;;  %4429 = vmatprep.mubr.bf16.mxu1 %v6844_v0 }
 0x3ce   : > { %6143 = vmatpush3.bf16.msra.mxu0 %v6642_v20  ;;  %6207 = vmatpush3.bf16.msra.mxu1 %v6644_v21  ;;  %v8116_v20 = vld [vmem:[%s8368_s4 + $0x2] ss:$0 sm:$0xff] }
 0x3cf   : > { %6144 = vmatprep.subr.bf16.mxu0 %v6645_v22  ;;  %6208 = vmatprep.subr.bf16.mxu1 %v6647_v18 }
 0x3d0   : > { %5109 = vperm.xlu1 %6336, %v5739_v12  }
 0x3d2   : > { %6145 = vmatpush3.bf16.msra.mxu0 %v6646_v3  ;;  %6209 = vmatpush3.bf16.msra.mxu1 %v6648_v17 }
 0x3d3   : > { %6146 = vmatprep.subr.bf16.mxu0 %v6649_v19  ;;  %6210 = vmatprep.subr.bf16.mxu1 %v6651_v28  ;;  %v3939_v19 = vpop.permute.xlu0 %3938 }
 0x3d4   : > { %4317 = vmatmul.mubr.bf16.gmra.mxu0 %v6683_v29  ;;  %4430 = vmatmul.mubr.bf16.gmra.mxu1 %v6683_v29  ;;  %v5736_v29 = vld [vmem:[%s7296_s18 + $0x1b0] sm:$0xff] }
 0x3d5   : > { %4326 = vmatprep.mubr.bf16.mxu0 %v6844_v0  ;;  %4439 = vmatprep.mubr.bf16.mxu1 %v6844_v0 }
 0x3d6   : > { %6147 = vmatpush3.bf16.msra.mxu0 %v6650_v32  ;;  %6211 = vmatpush3.bf16.msra.mxu1 %v6652_v54 }
 0x3d7   : > { %6148 = vmatprep.subr.bf16.mxu0 %v6653_v14  ;;  %6212 = vmatprep.subr.bf16.mxu1 %v6655_v38 }
 0x3d8   : > { %5094 = vperm.xlu0 %6335, %v5736_v29   ;;  %5119 = vperm.xlu1 %6336, %v5741_v53  }
 0x3da   : > { %6149 = vmatpush3.bf16.msra.mxu0 %v6654_v10 }
 0x3db   : > { %6150 = vmatprep.subr.bf16.mxu0 %v6657_v41  ;;  %v3944_v41 = vpop.permute.xlu1 %3943 }
 0x3dc   : > { %4327 = vmatmul.mubr.bf16.gmra.mxu0 %v6684_v57  ;;  %4440 = vmatmul.mubr.bf16.gmra.mxu1 %v6684_v57  ;;  %v5743_v57 = vld [vmem:[%s7296_s18 + $0x1e8] sm:$0xff] }
 0x3dd   : > { %4336 = vmatprep.mubr.bf16.mxu0 %v6844_v0  ;;  %4449 = vmatprep.mubr.bf16.mxu1 %v6844_v0 }
 0x3de   : > { %6151 = vmatpush3.bf16.msra.mxu0 %v6658_v35  ;;  %5104 = vperm.xlu0 %6335, %v5738_v50  }
 0x3df   : > { %6152 = vmatprep.subr.bf16.mxu0 %v6661_v2  ;;  %5129 = vperm.xlu1 %6336, %v5743_v57  }
 0x3e2   : > { %6153 = vmatpush3.bf16.msra.mxu0 %v6662_v7  ;;  %5114 = vperm.xlu0 %6335, %v5740_v56  }
 0x3e3   : > { %5139 = vperm.xlu1 %6336, %v5745_v6  }
 0x3e4   : > { %4337 = vmatmul.mubr.bf16.gmra.mxu0 %v6685_v9  ;;  %4450 = vmatmul.mubr.bf16.gmra.mxu1 %v6685_v9 }
 0x3e5   : > { %4346 = vmatprep.mubr.bf16.mxu0 %v6844_v0  ;;  %4459 = vmatprep.mubr.bf16.mxu1 %v6844_v0 }
 0x3e6   : > { %5124 = vperm.xlu0 %6335, %v5742_v43   ;;  %v3954_v43 = vpop.permute.xlu1 %3953 }
 0x3ea   : > { %5134 = vperm.xlu0 %6335, %v5744_v60  }
 0x3ec   : > { %4347 = vmatmul.mubr.bf16.gmra.mxu0 %v6686_v27  ;;  %4460 = vmatmul.mubr.bf16.gmra.mxu1 %v6686_v27 }
 0x3ed   : > { %4356 = vmatprep.mubr.bf16.mxu0 %v6844_v0  ;;  %4469 = vmatprep.mubr.bf16.mxu1 %v6844_v0 }
 0x3f4   : > { %4357 = vmatmul.mubr.bf16.gmra.mxu0 %v6687_v52  ;;  %4470 = vmatmul.mubr.bf16.gmra.mxu1 %v6687_v52 }
 0x3f5   : > { %4366 = vmatprep.mubr.bf16.mxu0 %v6844_v0  ;;  %4479 = vmatprep.mubr.bf16.mxu1 %v6844_v0  ;;  %v6656_v0 = vld [vmem:[#allocation7 + $0x390] sm:$0xff]  }
 0x3f6   : > { %6213 = vmatpush3.bf16.msra.mxu1 %v6656_v0 }
 0x3f7   : > { %6214 = vmatprep.subr.bf16.mxu1 %v6659_v48 }
 0x3fa   : > { %6215 = vmatpush3.bf16.msra.mxu1 %v6660_v45 }
 0x3fb   : > { %6216 = vmatprep.subr.bf16.mxu1 %v6663_v16  ;;  %v3949_v16 = vpop.permute.xlu0 %3948 }
 0x3fc   : > { %4367 = vmatmul.mubr.bf16.gmra.mxu0 %v6688_v15  ;;  %4480 = vmatmul.mubr.bf16.gmra.mxu1 %v6688_v15 }
 0x3fe   : > { %6217 = vmatpush3.bf16.msra.mxu1 %v6664_v44 }
 0x444   : > { %v6026_v61 = vpop.f32.mrf.mxu0  ;;  %v6090_v9 = vpop.f32.mrf.mxu1 }
 0x446   : > { %v6027_v13 = vpop.f32.mrf.mxu0  ;;  %v6091_v21 = vpop.f32.mrf.mxu1 }
 0x447   : > { %v6028_v22 = vadd.f32 %v6027_v13, %v6026_v61  ;;  %v6092_v27 = vadd.f32 %v6091_v21, %v6090_v9 }
 0x448   : > { %v6029_v3 = vpop.f32.mrf.mxu0  ;;  %v6093_v18 = vpop.f32.mrf.mxu1 }
 0x449   : > { %v3760_v17 = vadd.f32 %v6028_v22, %v8116_v20 }
 0x44a   : > { %v6030_v52 = vpop.f32.mrf.mxu0  ;;  %v6094_v32 = vpop.f32.mrf.mxu1 }
 0x44b   : > { %v6031_v28 = vadd.f32 %v6030_v52, %v6029_v3  ;;  %v6095_v54 = vadd.f32 %v6094_v32, %v6093_v18  ;;  %v3857_v14 = vadd.f32 %v6092_v27, %v3760_v17  ;;  %v3959_v18 = vpop.permute.xlu0 %3958 }
 0x44c   : > { %v6032_v15 = vpop.f32.mrf.mxu0  ;;  %v6096_v10 = vpop.f32.mrf.mxu1 }
 0x44d   : > { %v3763_v38 = vadd.f32 %v6031_v28, %v8116_v20  ;;  %v4016_v0 = vmul.f32 %v3939_v19, %v3857_v14 }
 0x44e   : > { %v6033_v42 = vpop.f32.mrf.mxu0  ;;  %v6097_v47 = vpop.f32.mrf.mxu1 }
 0x44f   : > { %v8121_v35 = vadd.f32 %v4016_v0, %v7817_v39  ;;  %v6034_v48 = vadd.f32 %v6033_v42, %v6032_v15  ;;  %v6098_v45 = vadd.f32 %v6097_v47, %v6096_v10  ;;  %v3860_v46 = vadd.f32 %v6095_v54, %v3763_v38  ;;  %v3964_v38 = vpop.permute.xlu1 %3963 }
 0x450   : > { %v6035_v62 = vpop.f32.mrf.mxu0  ;;  %v6099_v8 = vpop.f32.mrf.mxu1 }
 0x451   : > { %v3768_v63 = vadd.f32 %v6034_v48, %v8116_v20  ;;  %v4017_v2 = vmul.f32 %v3944_v41, %v3860_v46 }
 0x452   : > { %v6036_v7 = vpop.f32.mrf.mxu0  ;;  %v6100_v44 = vpop.f32.mrf.mxu1 }
 0x453   : > { %v8125_v33 = vadd.f32 %v4017_v2, %v7821_v58  ;;  %v6037_v29 = vadd.f32 %v6036_v7, %v6035_v62  ;;  %v6101_v12 = vadd.f32 %v6100_v44, %v6099_v8  ;;  %v3865_v50 = vadd.f32 %v6098_v45, %v3768_v63  ;;  %v3969_v63 = vpop.permute.xlu0 %3968 }
 0x454   : > { %v6038_v53 = vpop.f32.mrf.mxu0  ;;  %v6102_v39 = vpop.f32.mrf.mxu1 }
 0x455   : > { %v3771_v56 = vadd.f32 %v6037_v29, %v8116_v20  ;;  %v4018_v57 = vmul.f32 %v3949_v16, %v3865_v50 }
 0x456   : > { %v6039_v6 = vpop.f32.mrf.mxu0  ;;  %v6103_v60 = vpop.f32.mrf.mxu1 }
 0x457   : > { %v8129_v61 = vadd.f32 %v4018_v57, %v7825_v59  ;;  %v6040_v9 = vadd.f32 %v6039_v6, %v6038_v53  ;;  %v6104_v13 = vadd.f32 %v6103_v60, %v6102_v39  ;;  %v3868_v21 = vadd.f32 %v6101_v12, %v3771_v56  ;;  %v3974_v56 = vpop.permute.xlu1 %3973 }
 0x458   : > { %v6041_v22 = vpop.f32.mrf.mxu0  ;;  %v6105_v58 = vpop.f32.mrf.mxu1 }
 0x459   : > { %v3776_v27 = vadd.f32 %v6040_v9, %v8116_v20  ;;  %v4019_v3 = vmul.f32 %v3954_v43, %v3868_v21 }
 0x45a   : > { %v6042_v17 = vpop.f32.mrf.mxu0  ;;  %v6106_v19 = vpop.f32.mrf.mxu1 }
 0x45b   : > { %v8133_v52 = vadd.f32 %v4019_v3, %v7831_v30  ;;  %v6043_v32 = vadd.f32 %v6042_v17, %v6041_v22  ;;  %v6107_v28 = vadd.f32 %v6106_v19, %v6105_v58  ;;  %v3873_v54 = vadd.f32 %v6104_v13, %v3776_v27  ;;  %v3979_v27 = vpop.permute.xlu0 %3978 }
 0x45c   : > { %v6044_v14 = vpop.f32.mrf.mxu0  ;;  %v6108_v59 = vpop.f32.mrf.mxu1 }
 0x45d   : > { %v3779_v15 = vadd.f32 %v6043_v32, %v8116_v20  ;;  %v4020_v10 = vmul.f32 %v3959_v18, %v3873_v54 }
 0x45e   : > { %v6045_v0 = vpop.f32.mrf.mxu0  ;;  %v6109_v41 = vpop.f32.mrf.mxu1 }
 0x45f   : > { %v8137_v42 = vadd.f32 %v4020_v10, %v7836_v51  ;;  %v6046_v47 = vadd.f32 %v6045_v0, %v6044_v14  ;;  %v6110_v48 = vadd.f32 %v6109_v41, %v6108_v59  ;;  %v3876_v45 = vadd.f32 %v6107_v28, %v3779_v15  ;;  %v3984_v15 = vpop.permute.xlu1 %3983 }
 0x460   : > { %v6047_v46 = vpop.f32.mrf.mxu0  ;;  %v6111_v30 = vpop.f32.mrf.mxu1 }
 0x461   : > { %v3784_v62 = vadd.f32 %v6046_v47, %v8116_v20  ;;  %v4021_v8 = vmul.f32 %v3964_v38, %v3876_v45 }
 0x462   : > { %v6048_v2 = vpop.f32.mrf.mxu0  ;;  %v6112_v16 = vpop.f32.mrf.mxu1 }
 0x463   : > { %v8141_v7 = vadd.f32 %v4021_v8, %v7843_v40  ;;  %v6049_v44 = vadd.f32 %v6048_v2, %v6047_v46  ;;  %v6113_v29 = vadd.f32 %v6112_v16, %v6111_v30  ;;  %v3881_v12 = vadd.f32 %v6110_v48, %v3784_v62  ;;  %v3989_v62 = vpop.permute.xlu0 %3988 }
 0x464   : > { %v6050_v50 = vpop.f32.mrf.mxu0  ;;  %v6114_v51 = vpop.f32.mrf.mxu1 }
 0x465   : > { %v3787_v53 = vadd.f32 %v6049_v44, %v8116_v20  ;;  %v4022_v39 = vmul.f32 %v3969_v63, %v3881_v12 }
 0x466   : > { %v6051_v57 = vpop.f32.mrf.mxu0  ;;  %v6115_v43 = vpop.f32.mrf.mxu1 }
 0x467   : > { %v8145_v6 = vadd.f32 %v4022_v39, %v7848_v5  ;;  %v6052_v60 = vadd.f32 %v6051_v57, %v6050_v50  ;;  %v6116_v9 = vadd.f32 %v6115_v43, %v6114_v51  ;;  %v3884_v13 = vadd.f32 %v6113_v29, %v3787_v53  ;;  %v3994_v53 = vpop.permute.xlu1 %3993 }
 0x468   : > { %v6053_v21 = vpop.f32.mrf.mxu0  ;;  %v6117_v40 = vpop.f32.mrf.mxu1 }
 0x469   : > { %v3792_v22 = vadd.f32 %v6052_v60, %v8116_v20  ;;  %v4023_v58 = vmul.f32 %v3974_v56, %v3884_v13 }
 0x46a   : > { %v6054_v3 = vpop.f32.mrf.mxu0  ;;  %v6118_v18 = vpop.f32.mrf.mxu1 }
 0x46b   : > { %v8149_v17 = vadd.f32 %v4023_v58, %v7855_v37  ;;  %v6055_v19 = vadd.f32 %v6054_v3, %v6053_v21  ;;  %v6119_v32 = vadd.f32 %v6118_v18, %v6117_v40  ;;  %v3889_v28 = vadd.f32 %v6116_v9, %v3792_v22  ;;  %v3999_v22 = vpop.permute.xlu0 %3998 }
 0x46c   : > { %v6056_v54 = vpop.f32.mrf.mxu0  ;;  %v6120_v5 = vpop.f32.mrf.mxu1 }
 0x46d   : > { %v3795_v14 = vadd.f32 %v6055_v19, %v8116_v20  ;;  %v4024_v59 = vmul.f32 %v3979_v27, %v3889_v28 }
 0x46e   : > { %v6057_v10 = vpop.f32.mrf.mxu0  ;;  %v6121_v38 = vpop.f32.mrf.mxu1 }
 0x46f   : > { %v8153_v0 = vadd.f32 %v4024_v59, %v7860_v36  ;;  %v6058_v41 = vadd.f32 %v6057_v10, %v6056_v54  ;;  %v6122_v47 = vadd.f32 %v6121_v38, %v6120_v5  ;;  %v3892_v48 = vadd.f32 %v6119_v32, %v3795_v14  ;;  %v4004_v14 = vpop.permute.xlu1 %4003 }
 0x470   : > { %v6059_v45 = vpop.f32.mrf.mxu0  ;;  %v6123_v37 = vpop.f32.mrf.mxu1 }
 0x471   : > { %v3800_v46 = vadd.f32 %v6058_v41, %v8116_v20  ;;  %v4025_v30 = vmul.f32 %v3984_v15, %v3892_v48 }
 0x472   : > { %v6060_v8 = vpop.f32.mrf.mxu0  ;;  %v6124_v63 = vpop.f32.mrf.mxu1 }
 0x473   : > { %v8157_v2 = vadd.f32 %v4025_v30, %v7867_v31  ;;  %v6061_v16 = vadd.f32 %v6060_v8, %v6059_v45  ;;  %v6125_v44 = vadd.f32 %v6124_v63, %v6123_v37  ;;  %v3897_v29 = vadd.f32 %v6122_v47, %v3800_v46  ;;  %v4009_v46 = vpop.permute.xlu0 %4008 }
 0x474   : > { %v6062_v12 = vpop.f32.mrf.mxu0  ;;  %v6126_v36 = vpop.f32.mrf.mxu1 }
 0x475   : > { %v3803_v50 = vadd.f32 %v6061_v16, %v8116_v20  ;;  %v4026_v51 = vmul.f32 %v3989_v62, %v3897_v29  ;;  %v4082_v29 = vld [vmem:[#allocation5 + $0xc] sm:$0xf] }
 0x476   : > { %v6063_v39 = vpop.f32.mrf.mxu0  ;;  %v6127_v56 = vpop.f32.mrf.mxu1 }
 0x477   : > { %v8161_v57 = vadd.f32 %v4026_v51, %v7872_v11  ;;  %v6064_v43 = vadd.f32 %v6063_v39, %v6062_v12  ;;  %v6128_v60 = vadd.f32 %v6127_v56, %v6126_v36  ;;  %v3900_v9 = vadd.f32 %v6125_v44, %v3803_v50 }
 0x478   : > { %v6065_v13 = vpop.f32.mrf.mxu0  ;;  %v6129_v31 = vpop.f32.mrf.mxu1  ;;  %v8177_v51 = vrot.slane %v4082_v29, %v7307_v23  ;;  %v8183_v39 = vrot.slane %v4082_v29, %v7311_v25 }
 0x479   : > { %v3808_v21 = vadd.f32 %v6064_v43, %v8116_v20  ;;  %v4027_v40 = vmul.f32 %v3994_v53, %v3900_v9  ;;  %v8180_v53 = vrot.slane %v4082_v29, %v7309_v24  ;;  %v4014_v9 = vpop.permute.xlu1 %4013 }
 0x47a   : > { %v6066_v58 = vpop.f32.mrf.mxu0  ;;  %v6130_v27 = vpop.f32.mrf.mxu1 }
 0x47b   : > { %v8165_v3 = vadd.f32 %v4027_v40, %v7879_v4  ;;  %v6067_v18 = vadd.f32 %v6066_v58, %v6065_v13  ;;  %v6131_v19 = vadd.f32 %v6130_v27, %v6129_v31  ;;  %v3905_v32 = vadd.f32 %v6128_v60, %v3808_v21 }
 0x47c   : > { %v6068_v28 = vpop.f32.mrf.mxu0  ;;  %v6132_v11 = vpop.f32.mrf.mxu1 }
 0x47d   : > { %v3811_v54 = vadd.f32 %v6067_v18, %v8116_v20  ;;  %v4028_v5 = vmul.f32 %v3999_v22, %v3905_v32 }
 0x47e   : > { %v6069_v59 = vpop.f32.mrf.mxu0  ;;  %v6133_v15 = vpop.f32.mrf.mxu1 }
 0x47f   : > { %v8169_v10 = vadd.f32 %v4028_v5, %v7884_v34  ;;  %v6070_v38 = vadd.f32 %v6069_v59, %v6068_v28  ;;  %v6134_v41 = vadd.f32 %v6133_v15, %v6132_v11  ;;  %v3908_v47 = vadd.f32 %v6131_v19, %v3811_v54 }
 0x480   : > { %v6071_v48 = vpop.f32.mrf.mxu0  ;;  %v6135_v4 = vpop.f32.mrf.mxu1 }
 0x481   : > { %v3816_v45 = vadd.f32 %v6070_v38, %v8116_v20  ;;  %v4029_v37 = vmul.f32 %v4004_v14, %v3908_v47 }
 0x482   : > { %v6072_v30 = vpop.f32.mrf.mxu0  ;;  %v6136_v62 = vpop.f32.mrf.mxu1 }
 0x483   : > { %v8173_v8 = vadd.f32 %v4029_v37, %v7891_v55  ;;  %v6073_v63 = vadd.f32 %v6072_v30, %v6071_v48  ;;  %v6137_v16 = vadd.f32 %v6136_v62, %v6135_v4  ;;  %v3913_v44 = vadd.f32 %v6134_v41, %v3816_v45 }
 0x484   : > { %v4298_v34 = vpop.f32.mrf.mxu0  ;;  %v4411_v12 = vpop.f32.mrf.mxu1  ;;  %v8186_v55 = vrot.slane %v4082_v29, %v7313_v26 }
 0x485   : > { %v3819_v36 = vadd.f32 %v6073_v63, %v8116_v20  ;;  %v4030_v50 = vmul.f32 %v4009_v46, %v3913_v44  ;;  %v4299_v26 = vadd.f32 %v4298_v34, %v8183_v39 }
 0x486   : > { %v4300_v56 = vpop.f32.mrf.mxu0  ;;  %v4413_v43 = vpop.f32.mrf.mxu1  ;;  %v4412_v40 = vadd.f32 %v4411_v12, %v8186_v55 }
 0x487   : > { %v8189_v60 = vadd.f32 %v4030_v50, %v7908_v1  ;;  %v3916_v20 = vadd.f32 %v6137_v16, %v3819_v36  ;;  %v4301_v23 = vadd.f32 %v4300_v56, %v8177_v51  ;;  %v4414_v24 = vadd.f32 %v4413_v43, %v8180_v53 }
 0x488   : > { %v4302_v13 = vpop.f32.mrf.mxu0  ;;  %v4415_v31 = vpop.f32.mrf.mxu1  ;;  %v4490_v38 = vmax.f32 %v4299_v26, 0.0  ;;  %v4492_v41 = vmax.f32 %v4412_v40, 0.0 }
 0x489   : > { %v4303_v21 = vadd.f32 %v4302_v13, %v8183_v39  ;;  %v4416_v25 = vadd.f32 %v4415_v31, %v8186_v55  ;;  %v4031_v22 = vmul.f32 %v4014_v9, %v3916_v20  ;;  %v4491_v5 = vmax.f32 %v4301_v23, 0.0 }
 0x48a   : > { %v4304_v58 = vpop.f32.mrf.mxu0  ;;  %v4417_v1 = vpop.f32.mrf.mxu1  ;;  %v4493_v14 = vmax.f32 %v4414_v24, 0.0 }
 0x48b   : > { %v4305_v27 = vadd.f32 %v4304_v58, %v8177_v51  ;;  %v4418_v18 = vadd.f32 %v4417_v1, %v8180_v53  ;;  %v8200_v19 = vadd.f32 %v4031_v22, %v7922_v49  ;;  %v4494_v32 = vmax.f32 %v4303_v21, 0.0 }
 0x48c   : > { %v4496_v28 = vmax.f32 %v4416_v25, 0.0  ;;  %v4308_v11 = vpop.f32.mrf.mxu0  ;;  %v4421_v54 = vpop.f32.mrf.mxu1 }
 0x48d   : > { %v4495_v59 = vmax.f32 %v4305_v27, 0.0  ;;  %v4497_v15 = vmax.f32 %v4418_v18, 0.0  ;;  %v4554_v37 = vpack.c.bf16 %v4494_v32, %v4490_v38  ;;  %v4309_v29 = vadd.f32 %v4308_v11, %v8183_v39 }
 0x48e   : > { %v4310_v47 = vpop.f32.mrf.mxu0  ;;  %v4423_v48 = vpop.f32.mrf.mxu1  ;;  %v4556_v46 = vpack.c.bf16 %v4496_v28, %v4492_v41  ;;  %v4422_v34 = vadd.f32 %v4421_v54, %v8186_v55 }
 0x48f   : > { %v4555_v4 = vpack.c.bf16 %v4495_v59, %v4491_v5  ;;  %v4557_v45 = vpack.c.bf16 %v4497_v15, %v4493_v14  ;;  %v4311_v30 = vadd.f32 %v4310_v47, %v8177_v51  ;;  %v4424_v63 = vadd.f32 %v4423_v48, %v8180_v53 }
 0x490   : > { %v4312_v49 = vpop.f32.mrf.mxu0  ;;  %v4425_v62 = vpop.f32.mrf.mxu1  ;;  %v4498_v25 = vmax.f32 %v4309_v29, 0.0  ;;  %v4500_v26 = vmax.f32 %v4422_v34, 0.0 }
 0x491   : > { %v4313_v16 = vadd.f32 %v4312_v49, %v8183_v39  ;;  %v4426_v44 = vadd.f32 %v4425_v62, %v8186_v55  ;;  %4883 = vmatprep.mubr.bf16.mxu0 %v4555_v4  ;;  %4980 = vmatprep.mubr.bf16.mxu1 %v4557_v45  ;;  %v4499_v31 = vmax.f32 %v4311_v30, 0.0  ;;  %v4501_v23 = vmax.f32 %v4424_v63, 0.0 }
 0x492   : > { %v4314_v12 = vpop.f32.mrf.mxu0  ;;  %v4427_v36 = vpop.f32.mrf.mxu1  ;;  %4884 = vmatmul.mubr.bf16.vlgmr.msra.gmra.mxu0 %v4554_v37  ;;  %4981 = vmatmul.mubr.bf16.vlgmr.msra.gmra.mxu1 %v4556_v46 }
 0x493   : > { %v4315_v50 = vadd.f32 %v4314_v12, %v8177_v51  ;;  %v4428_v56 = vadd.f32 %v4427_v36, %v8180_v53  ;;  %v4502_v43 = vmax.f32 %v4313_v16, 0.0  ;;  %v4504_v9 = vmax.f32 %v4426_v44, 0.0 }
 0x494   : > { %v4318_v20 = vpop.f32.mrf.mxu0  ;;  %v4431_v13 = vpop.f32.mrf.mxu1 }
 0x495   : > { %v4503_v24 = vmax.f32 %v4315_v50, 0.0  ;;  %v4505_v21 = vmax.f32 %v4428_v56, 0.0  ;;  %v4558_v27 = vpack.c.bf16 %v4502_v43, %v4498_v25  ;;  %v4560_v18 = vpack.c.bf16 %v4504_v9, %v4500_v26 }
 0x496   : > { %v4320_v40 = vpop.f32.mrf.mxu0  ;;  %v4433_v22 = vpop.f32.mrf.mxu1  ;;  %v4319_v59 = vadd.f32 %v4318_v20, %v8183_v39  ;;  %v4432_v15 = vadd.f32 %v4431_v13, %v8186_v55 }
 0x497   : > { %v4559_v58 = vpack.c.bf16 %v4503_v24, %v4499_v31  ;;  %v4561_v1 = vpack.c.bf16 %v4505_v21, %v4501_v23  ;;  %v4321_v32 = vadd.f32 %v4320_v40, %v8177_v51  ;;  %v4434_v54 = vadd.f32 %v4433_v22, %v8180_v53 }
 0x498   : > { %v4322_v28 = vpop.f32.mrf.mxu0  ;;  %v4435_v11 = vpop.f32.mrf.mxu1  ;;  %v4506_v16 = vmax.f32 %v4319_v59, 0.0  ;;  %v4508_v44 = vmax.f32 %v4432_v15, 0.0 }
 0x499   : > { %v4323_v5 = vadd.f32 %v4322_v28, %v8183_v39  ;;  %v4436_v14 = vadd.f32 %v4435_v11, %v8186_v55  ;;  %4891 = vmatprep.mubr.bf16.mxu0 %v4559_v58  ;;  %4988 = vmatprep.mubr.bf16.mxu1 %v4561_v1  ;;  %v4507_v30 = vmax.f32 %v4321_v32, 0.0  ;;  %v4509_v49 = vmax.f32 %v4434_v54, 0.0 }
 0x49a   : > { %v4324_v38 = vpop.f32.mrf.mxu0  ;;  %v4437_v41 = vpop.f32.mrf.mxu1  ;;  %4892 = vmatmul.mubr.bf16.gmra.mxu0 %v4558_v27  ;;  %4989 = vmatmul.mubr.bf16.gmra.mxu1 %v4560_v18 }
 0x49b   : > { %v4325_v47 = vadd.f32 %v4324_v38, %v8177_v51  ;;  %v4438_v48 = vadd.f32 %v4437_v41, %v8180_v53  ;;  %v4510_v4 = vmax.f32 %v4323_v5, 0.0  ;;  %v4512_v45 = vmax.f32 %v4436_v14, 0.0 }
 0x49c   : > { %v4328_v37 = vpop.f32.mrf.mxu0  ;;  %v4441_v46 = vpop.f32.mrf.mxu1 }
 0x49d   : > { %v4511_v62 = vmax.f32 %v4325_v47, 0.0  ;;  %v4513_v63 = vmax.f32 %v4438_v48, 0.0  ;;  %v4562_v50 = vpack.c.bf16 %v4510_v4, %v4506_v16  ;;  %v4564_v56 = vpack.c.bf16 %v4512_v45, %v4508_v44 }
 0x49e   : > { %v4330_v29 = vpop.f32.mrf.mxu0  ;;  %v4443_v34 = vpop.f32.mrf.mxu1  ;;  %v4329_v24 = vadd.f32 %v4328_v37, %v8183_v39  ;;  %v4442_v21 = vadd.f32 %v4441_v46, %v8186_v55 }
 0x49f   : > { %v4563_v12 = vpack.c.bf16 %v4511_v62, %v4507_v30  ;;  %v4565_v36 = vpack.c.bf16 %v4513_v63, %v4509_v49  ;;  %v4331_v43 = vadd.f32 %v4330_v29, %v8177_v51  ;;  %v4444_v13 = vadd.f32 %v4443_v34, %v8180_v53 }
 0x4a0   : > { %v4332_v9 = vpop.f32.mrf.mxu0  ;;  %v4445_v20 = vpop.f32.mrf.mxu1  ;;  %v4514_v5 = vmax.f32 %v4329_v24, 0.0  ;;  %v4516_v14 = vmax.f32 %v4442_v21, 0.0 }
 0x4a1   : > { %v4333_v31 = vadd.f32 %v4332_v9, %v8183_v39  ;;  %v4446_v23 = vadd.f32 %v4445_v20, %v8186_v55  ;;  %4899 = vmatprep.mubr.bf16.mxu0 %v4563_v12  ;;  %4996 = vmatprep.mubr.bf16.mxu1 %v4565_v36  ;;  %v4515_v32 = vmax.f32 %v4331_v43, 0.0  ;;  %v4517_v28 = vmax.f32 %v4444_v13, 0.0 }
 0x4a2   : > { %v4334_v25 = vpop.f32.mrf.mxu0  ;;  %v4447_v26 = vpop.f32.mrf.mxu1  ;;  %4900 = vmatmul.mubr.bf16.gmra.mxu0 %v4562_v50  ;;  %4997 = vmatmul.mubr.bf16.gmra.mxu1 %v4564_v56 }
 0x4a3   : > { %v4335_v40 = vadd.f32 %v4334_v25, %v8177_v51  ;;  %v4448_v22 = vadd.f32 %v4447_v26, %v8180_v53  ;;  %v4518_v58 = vmax.f32 %v4333_v31, 0.0  ;;  %v4520_v1 = vmax.f32 %v4446_v23, 0.0 }
 0x4a4   : > { %v4338_v27 = vpop.f32.mrf.mxu0  ;;  %v4451_v18 = vpop.f32.mrf.mxu1 }
 0x4a5   : > { %v4519_v11 = vmax.f32 %v4335_v40, 0.0  ;;  %v4521_v54 = vmax.f32 %v4448_v22, 0.0  ;;  %v4566_v47 = vpack.c.bf16 %v4518_v58, %v4514_v5  ;;  %v4568_v48 = vpack.c.bf16 %v4520_v1, %v4516_v14 }
 0x4a6   : > { %v4340_v59 = vpop.f32.mrf.mxu0  ;;  %v4453_v15 = vpop.f32.mrf.mxu1  ;;  %v4339_v62 = vadd.f32 %v4338_v27, %v8183_v39  ;;  %v4452_v63 = vadd.f32 %v4451_v18, %v8186_v55 }
 0x4a7   : > { %v4567_v38 = vpack.c.bf16 %v4519_v11, %v4515_v32  ;;  %v4569_v41 = vpack.c.bf16 %v4521_v54, %v4517_v28  ;;  %v4341_v4 = vadd.f32 %v4340_v59, %v8177_v51  ;;  %v4454_v46 = vadd.f32 %v4453_v15, %v8180_v53 }
 0x4a8   : > { %v4342_v45 = vpop.f32.mrf.mxu0  ;;  %v4455_v37 = vpop.f32.mrf.mxu1  ;;  %v4522_v31 = vmax.f32 %v4339_v62, 0.0  ;;  %v4524_v23 = vmax.f32 %v4452_v63, 0.0 }
 0x4a9   : > { %v4343_v30 = vadd.f32 %v4342_v45, %v8183_v39  ;;  %v4456_v49 = vadd.f32 %v4455_v37, %v8186_v55  ;;  %4907 = vmatprep.mubr.bf16.mxu0 %v4567_v38  ;;  %5004 = vmatprep.mubr.bf16.mxu1 %v4569_v41  ;;  %v4523_v43 = vmax.f32 %v4341_v4, 0.0  ;;  %v4525_v9 = vmax.f32 %v4454_v46, 0.0 }
 0x4aa   : > { %v4344_v16 = vpop.f32.mrf.mxu0  ;;  %v4457_v44 = vpop.f32.mrf.mxu1  ;;  %4908 = vmatmul.mubr.bf16.gmra.mxu0 %v4566_v47  ;;  %5005 = vmatmul.mubr.bf16.gmra.mxu1 %v4568_v48 }
 0x4ab   : > { %v4345_v29 = vadd.f32 %v4344_v16, %v8177_v51  ;;  %v4458_v34 = vadd.f32 %v4457_v44, %v8180_v53  ;;  %v4526_v12 = vmax.f32 %v4343_v30, 0.0  ;;  %v4528_v36 = vmax.f32 %v4456_v49, 0.0 }
 0x4ac   : > { %v4348_v50 = vpop.f32.mrf.mxu0  ;;  %v4461_v56 = vpop.f32.mrf.mxu1 }
 0x4ad   : > { %v4527_v20 = vmax.f32 %v4345_v29, 0.0  ;;  %v4529_v13 = vmax.f32 %v4458_v34, 0.0  ;;  %v4570_v40 = vpack.c.bf16 %v4526_v12, %v4522_v31  ;;  %v4572_v22 = vpack.c.bf16 %v4528_v36, %v4524_v23 }
 0x4ae   : > { %v4350_v24 = vpop.f32.mrf.mxu0  ;;  %v4463_v21 = vpop.f32.mrf.mxu1  ;;  %v4349_v11 = vadd.f32 %v4348_v50, %v8183_v39  ;;  %v4462_v54 = vadd.f32 %v4461_v56, %v8186_v55 }
 0x4af   : > { %v4571_v25 = vpack.c.bf16 %v4527_v20, %v4523_v43  ;;  %v4573_v26 = vpack.c.bf16 %v4529_v13, %v4525_v9  ;;  %v4351_v58 = vadd.f32 %v4350_v24, %v8177_v51  ;;  %v4464_v18 = vadd.f32 %v4463_v21, %v8180_v53 }
 0x4b0   : > { %v4352_v1 = vpop.f32.mrf.mxu0  ;;  %v4465_v27 = vpop.f32.mrf.mxu1  ;;  %v4530_v30 = vmax.f32 %v4349_v11, 0.0  ;;  %v4532_v49 = vmax.f32 %v4462_v54, 0.0 }
 0x4b1   : > { %v4353_v32 = vadd.f32 %v4352_v1, %v8183_v39  ;;  %v4466_v28 = vadd.f32 %v4465_v27, %v8186_v55  ;;  %4915 = vmatprep.mubr.bf16.mxu0 %v4571_v25  ;;  %5012 = vmatprep.mubr.bf16.mxu1 %v4573_v26  ;;  %v4531_v4 = vmax.f32 %v4351_v58, 0.0  ;;  %v4533_v45 = vmax.f32 %v4464_v18, 0.0 }
 0x4b2   : > { %v4354_v5 = vpop.f32.mrf.mxu0  ;;  %v4467_v14 = vpop.f32.mrf.mxu1  ;;  %4916 = vmatmul.mubr.bf16.gmra.mxu0 %v4570_v40  ;;  %5013 = vmatmul.mubr.bf16.gmra.mxu1 %v4572_v22 }
 0x4b3   : > { %v4355_v59 = vadd.f32 %v4354_v5, %v8177_v51  ;;  %v4468_v15 = vadd.f32 %v4467_v14, %v8180_v53  ;;  %v4534_v38 = vmax.f32 %v4353_v32, 0.0  ;;  %v4536_v41 = vmax.f32 %v4466_v28, 0.0 }
 0x4b4   : > { %v4358_v47 = vpop.f32.mrf.mxu0  ;;  %v4471_v48 = vpop.f32.mrf.mxu1 }
 0x4b5   : > { %v4535_v37 = vmax.f32 %v4355_v59, 0.0  ;;  %v4537_v46 = vmax.f32 %v4468_v15, 0.0  ;;  %v4574_v29 = vpack.c.bf16 %v4534_v38, %v4530_v30  ;;  %v4576_v34 = vpack.c.bf16 %v4536_v41, %v4532_v49 }
 0x4b6   : > { %v4360_v62 = vpop.f32.mrf.mxu0  ;;  %v4473_v63 = vpop.f32.mrf.mxu1  ;;  %v4359_v20 = vadd.f32 %v4358_v47, %v8183_v39  ;;  %v4472_v13 = vadd.f32 %v4471_v48, %v8186_v55 }
 0x4b7   : > { %v4575_v16 = vpack.c.bf16 %v4535_v37, %v4531_v4  ;;  %v4577_v44 = vpack.c.bf16 %v4537_v46, %v4533_v45  ;;  %v4361_v12 = vadd.f32 %v4360_v62, %v8177_v51  ;;  %v4474_v56 = vadd.f32 %v4473_v63, %v8180_v53 }
 0x4b8   : > { %v4362_v36 = vpop.f32.mrf.mxu0  ;;  %v4475_v50 = vpop.f32.mrf.mxu1  ;;  %v4538_v32 = vmax.f32 %v4359_v20, 0.0  ;;  %v4540_v28 = vmax.f32 %v4472_v13, 0.0 }
 0x4b9   : > { %v4363_v43 = vadd.f32 %v4362_v36, %v8183_v39  ;;  %v4476_v9 = vadd.f32 %v4475_v50, %v8186_v55  ;;  %4923 = vmatprep.mubr.bf16.mxu0 %v4575_v16  ;;  %5020 = vmatprep.mubr.bf16.mxu1 %v4577_v44  ;;  %v4539_v58 = vmax.f32 %v4361_v12, 0.0  ;;  %v4541_v1 = vmax.f32 %v4474_v56, 0.0 }
 0x4ba   : > { %v4364_v31 = vpop.f32.mrf.mxu0  ;;  %v4477_v23 = vpop.f32.mrf.mxu1  ;;  %4924 = vmatmul.mubr.bf16.gmra.mxu0 %v4574_v29  ;;  %5021 = vmatmul.mubr.bf16.gmra.mxu1 %v4576_v34 }
 0x4bb   : > { %v4365_v24 = vadd.f32 %v4364_v31, %v8177_v51  ;;  %v4478_v21 = vadd.f32 %v4477_v23, %v8180_v53  ;;  %v4542_v25 = vmax.f32 %v4363_v43, 0.0  ;;  %v4544_v26 = vmax.f32 %v4476_v9, 0.0 }
 0x4bc   : > { %v4368_v40 = vpop.f32.mrf.mxu0  ;;  %v4481_v22 = vpop.f32.mrf.mxu1 }
 0x4bd   : > { %v4543_v27 = vmax.f32 %v4365_v24, 0.0  ;;  %v4545_v18 = vmax.f32 %v4478_v21, 0.0  ;;  %v4578_v59 = vpack.c.bf16 %v4542_v25, %v4538_v32  ;;  %v4580_v15 = vpack.c.bf16 %v4544_v26, %v4540_v28 }
 0x4be   : > { %v4370_v11 = vpop.f32.mrf.mxu0  ;;  %v4483_v54 = vpop.f32.mrf.mxu1  ;;  %v4369_v37 = vadd.f32 %v4368_v40, %v8183_v39  ;;  %v4482_v46 = vadd.f32 %v4481_v22, %v8186_v55 }
 0x4bf   : > { %v4579_v5 = vpack.c.bf16 %v4543_v27, %v4539_v58  ;;  %v4581_v14 = vpack.c.bf16 %v4545_v18, %v4541_v1  ;;  %v4371_v38 = vadd.f32 %v4370_v11, %v8177_v51  ;;  %v4484_v48 = vadd.f32 %v4483_v54, %v8180_v53  ;;  %v5065_v58 = vpop.permute.xlu0 %5064 }
 0x4c0   : > { %v4372_v41 = vpop.f32.mrf.mxu0  ;;  %v4485_v47 = vpop.f32.mrf.mxu1  ;;  %v4546_v50 = vmax.f32 %v4369_v37, 0.0  ;;  %v4548_v56 = vmax.f32 %v4482_v46, 0.0 }
 0x4c1   : > { %v4373_v4 = vadd.f32 %v4372_v41, %v8183_v39  ;;  %v4486_v45 = vadd.f32 %v4485_v47, %v8186_v55  ;;  %4931 = vmatprep.mubr.bf16.mxu0 %v4579_v5  ;;  %5028 = vmatprep.mubr.bf16.mxu1 %v4581_v14  ;;  %v4547_v29 = vmax.f32 %v4371_v38, 0.0  ;;  %v4549_v34 = vmax.f32 %v4484_v48, 0.0 }
 0x4c2   : > { %v4374_v30 = vpop.f32.mrf.mxu0  ;;  %v4487_v49 = vpop.f32.mrf.mxu1  ;;  %4932 = vmatmul.mubr.bf16.gmra.mxu0 %v4578_v59  ;;  %5029 = vmatmul.mubr.bf16.gmra.mxu1 %v4580_v15 }
 0x4c3   : > { %v4375_v62 = vadd.f32 %v4374_v30, %v8177_v51  ;;  %v4488_v63 = vadd.f32 %v4487_v49, %v8180_v53  ;;  %v4550_v16 = vmax.f32 %v4373_v4, 0.0  ;;  %v4552_v44 = vmax.f32 %v4486_v45, 0.0  ;;  %v8261_v53 = vld [vmem:[%s8368_s4 + $0x3] ss:$0 sm:$0xff]  ;;  %v5070_v59 = vpop.permute.xlu1 %5069  ;;  %v5075_v49 = vpop.permute.xlu0 %5074 }
 0x4c5   : > { %v4551_v12 = vmax.f32 %v4375_v62, 0.0  ;;  %v4553_v36 = vmax.f32 %v4488_v63, 0.0  ;;  %v4582_v9 = vpack.c.bf16 %v4550_v16, %v4546_v50  ;;  %v4584_v55 = vpack.c.bf16 %v4552_v44, %v4548_v56 }
 0x4c7   : > { %v4583_v43 = vpack.c.bf16 %v4551_v12, %v4547_v29  ;;  %v4585_v39 = vpack.c.bf16 %v4553_v36, %v4549_v34  ;;  %v5080_v56 = vpop.permute.xlu1 %5079 }
 0x4c9   : > { %4939 = vmatprep.mubr.bf16.mxu0 %v4583_v43  ;;  %5036 = vmatprep.mubr.bf16.mxu1 %v4585_v39 }
 0x4ca   : > { %4940 = vmatmul.mubr.bf16.gmra.mxu0 %v4582_v9  ;;  %5037 = vmatmul.mubr.bf16.gmra.mxu1 %v4584_v55 }
 0x552   : > { %v6154_v51 = vpop.f32.mrf.mxu0  ;;  %v6218_v20 = vpop.f32.mrf.mxu1 }
 0x554   : > { %v6155_v13 = vpop.f32.mrf.mxu0  ;;  %v6219_v31 = vpop.f32.mrf.mxu1 }
 0x555   : > { %v6156_v23 = vadd.f32 %v6155_v13, %v6154_v51  ;;  %v6220_v26 = vadd.f32 %v6219_v31, %v6218_v20 }
 0x556   : > { %v6157_v24 = vpop.f32.mrf.mxu0  ;;  %v6221_v21 = vpop.f32.mrf.mxu1 }
 0x557   : > { %v4886_v25 = vadd.f32 %v6156_v23, %v8261_v53 }
 0x558   : > { %v6158_v40 = vpop.f32.mrf.mxu0  ;;  %v6222_v22 = vpop.f32.mrf.mxu1 }
 0x559   : > { %v4983_v1 = vadd.f32 %v6220_v26, %v4886_v25  ;;  %v6159_v27 = vadd.f32 %v6158_v40, %v6157_v24  ;;  %v6223_v54 = vadd.f32 %v6222_v22, %v6221_v21  ;;  %v5085_v24 = vpop.permute.xlu0 %5084 }
 0x55a   : > { %v6160_v18 = vpop.f32.mrf.mxu0  ;;  %v6224_v32 = vpop.f32.mrf.mxu1 }
 0x55b   : > { %v5142_v28 = vmul.f32 %v5065_v58, %v4983_v1  ;;  %v4889_v11 = vadd.f32 %v6159_v27, %v8261_v53 }
 0x55c   : > { %v6161_v5 = vpop.f32.mrf.mxu0  ;;  %v6225_v14 = vpop.f32.mrf.mxu1 }
 0x55d   : > { %v5158_v15 = vadd.f32 %v5142_v28, %v8121_v35  ;;  %v4986_v38 = vadd.f32 %v6223_v54, %v4889_v11  ;;  %v6162_v41 = vadd.f32 %v6161_v5, %v6160_v18  ;;  %v6226_v37 = vadd.f32 %v6225_v14, %v6224_v32  ;;  %v5090_v32 = vpop.permute.xlu1 %5089 }
 0x55e   : > { %v6163_v47 = vpop.f32.mrf.mxu0  ;;  %v6227_v48 = vpop.f32.mrf.mxu1 }
 0x55f   : > { %5174 = vst [vmem:[%s8267_s11] sm:$0xff] %v5158_v15  ;;  %v5143_v4 = vmul.f32 %v5070_v59, %v4986_v38  ;;  %v4894_v45 = vadd.f32 %v6162_v41, %v8261_v53 }
 0x560   : > { %v6164_v46 = vpop.f32.mrf.mxu0  ;;  %v6228_v30 = vpop.f32.mrf.mxu1 }
 0x561   : > { %v5159_v62 = vadd.f32 %v5143_v4, %v8125_v33  ;;  %v4991_v63 = vadd.f32 %v6226_v37, %v4894_v45  ;;  %v6165_v35 = vadd.f32 %v6164_v46, %v6163_v47  ;;  %v6229_v12 = vadd.f32 %v6228_v30, %v6227_v48  ;;  %v5095_v47 = vpop.permute.xlu0 %5094 }
 0x562   : > { %v6166_v16 = vpop.f32.mrf.mxu0  ;;  %v6230_v44 = vpop.f32.mrf.mxu1 }
 0x563   : > { %5175 = vst [vmem:[%s8267_s11 + $0x8] sm:$0xff] %v5159_v62  ;;  %v5144_v29 = vmul.f32 %v5075_v49, %v4991_v63  ;;  %v4897_v34 = vadd.f32 %v6165_v35, %v8261_v53  ;;  %v5100_v35 = vpop.permute.xlu1 %5099 }
 0x564   : > { %v6167_v36 = vpop.f32.mrf.mxu0  ;;  %v6231_v50 = vpop.f32.mrf.mxu1 }
 0x565   : > { %v5160_v43 = vadd.f32 %v5144_v29, %v8129_v61  ;;  %v4994_v39 = vadd.f32 %v6229_v12, %v4897_v34  ;;  %v6168_v9 = vadd.f32 %v6167_v36, %v6166_v16  ;;  %v6232_v13 = vadd.f32 %v6231_v50, %v6230_v44 }
 0x566   : > { %v6169_v55 = vpop.f32.mrf.mxu0  ;;  %v6233_v33 = vpop.f32.mrf.mxu1 }
 0x567   : > { %5176 = vst [vmem:[%s8267_s11 + $0x10] sm:$0xff] %v5160_v43  ;;  %v5145_v51 = vmul.f32 %v5080_v56, %v4994_v39  ;;  %v4902_v20 = vadd.f32 %v6168_v9, %v8261_v53  ;;  %v5105_v39 = vpop.permute.xlu0 %5104 }
 0x568   : > { %v6170_v31 = vpop.f32.mrf.mxu0  ;;  %v6234_v23 = vpop.f32.mrf.mxu1 }
 0x569   : > { %v5161_v21 = vadd.f32 %v5145_v51, %v8133_v52  ;;  %v4999_v25 = vadd.f32 %v6232_v13, %v4902_v20  ;;  %v6171_v26 = vadd.f32 %v6170_v31, %v6169_v55  ;;  %v6235_v1 = vadd.f32 %v6234_v23, %v6233_v33 }
 0x56a   : > { %v6172_v40 = vpop.f32.mrf.mxu0  ;;  %v6236_v61 = vpop.f32.mrf.mxu1 }
 0x56b   : > { %5177 = vst [vmem:[%s8267_s11 + $0x18] sm:$0xff] %v5161_v21  ;;  %v5146_v22 = vmul.f32 %v5085_v24, %v4999_v25  ;;  %v4905_v58 = vadd.f32 %v6171_v26, %v8261_v53  ;;  %v5110_v21 = vpop.permute.xlu1 %5109 }
 0x56c   : > { %v6173_v27 = vpop.f32.mrf.mxu0  ;;  %v6237_v18 = vpop.f32.mrf.mxu1 }
 0x56d   : > { %v5162_v28 = vadd.f32 %v5146_v22, %v8137_v42  ;;  %v5002_v11 = vadd.f32 %v6235_v1, %v4905_v58  ;;  %v6174_v54 = vadd.f32 %v6173_v27, %v6172_v40  ;;  %v6238_v15 = vadd.f32 %v6237_v18, %v6236_v61 }
 0x56e   : > { %v6175_v5 = vpop.f32.mrf.mxu0  ;;  %v6239_v52 = vpop.f32.mrf.mxu1 }
 0x56f   : > { %5178 = vst [vmem:[%s8267_s11 + $0x20] sm:$0xff] %v5162_v28  ;;  %v5147_v14 = vmul.f32 %v5090_v32, %v5002_v11  ;;  %v4910_v59 = vadd.f32 %v6174_v54, %v8261_v53  ;;  %v5115_v32 = vpop.permute.xlu0 %5114 }
 0x570   : > { %v6176_v38 = vpop.f32.mrf.mxu0  ;;  %v6240_v41 = vpop.f32.mrf.mxu1 }
 0x571   : > { %v5163_v48 = vadd.f32 %v5147_v14, %v8141_v7  ;;  %v5007_v4 = vadd.f32 %v6238_v15, %v4910_v59  ;;  %v6177_v45 = vadd.f32 %v6176_v38, %v6175_v5  ;;  %v6241_v49 = vadd.f32 %v6240_v41, %v6239_v52  ;;  %v5120_v41 = vpop.permute.xlu1 %5119 }
 0x572   : > { %v6178_v37 = vpop.f32.mrf.mxu0  ;;  %v6242_v42 = vpop.f32.mrf.mxu1 }
 0x573   : > { %5179 = vst [vmem:[%s8267_s11 + $0x28] sm:$0xff] %v5163_v48  ;;  %v5148_v46 = vmul.f32 %v5095_v47, %v5007_v4  ;;  %v4913_v30 = vadd.f32 %v6177_v45, %v8261_v53 }
 0x574   : > { %v6179_v62 = vpop.f32.mrf.mxu0  ;;  %v6243_v63 = vpop.f32.mrf.mxu1 }
 0x575   : > { %v5164_v16 = vadd.f32 %v5148_v46, %v8145_v6  ;;  %v5010_v44 = vadd.f32 %v6241_v49, %v4913_v30  ;;  %v6180_v29 = vadd.f32 %v6179_v62, %v6178_v37  ;;  %v6244_v50 = vadd.f32 %v6243_v63, %v6242_v42  ;;  %v5125_v62 = vpop.permute.xlu0 %5124 }
 0x576   : > { %v6181_v34 = vpop.f32.mrf.mxu0  ;;  %v6245_v7 = vpop.f32.mrf.mxu1 }
 0x577   : > { %5180 = vst [vmem:[%s8267_s11 + $0x30] sm:$0xff] %v5164_v16  ;;  %v5149_v12 = vmul.f32 %v5100_v35, %v5010_v44  ;;  %v4918_v36 = vadd.f32 %v6180_v29, %v8261_v53 }
 0x578   : > { %v6182_v56 = vpop.f32.mrf.mxu0  ;;  %v6246_v43 = vpop.f32.mrf.mxu1 }
 0x579   : > { %v5165_v9 = vadd.f32 %v5149_v12, %v8149_v17  ;;  %v5015_v55 = vadd.f32 %v6244_v50, %v4918_v36  ;;  %v6183_v33 = vadd.f32 %v6182_v56, %v6181_v34  ;;  %v6247_v31 = vadd.f32 %v6246_v43, %v6245_v7  ;;  %v5130_v50 = vpop.permute.xlu1 %5129 }
 0x57a   : > { %v6184_v51 = vpop.f32.mrf.mxu0  ;;  %v6248_v6 = vpop.f32.mrf.mxu1 }
 0x57b   : > { %5181 = vst [vmem:[%s8267_s11 + $0x38] sm:$0xff] %v5165_v9  ;;  %v5150_v20 = vmul.f32 %v5105_v39, %v5015_v55  ;;  %v4921_v13 = vadd.f32 %v6183_v33, %v8261_v53 }
 0x57c   : > { %v6185_v23 = vpop.f32.mrf.mxu0  ;;  %v6249_v24 = vpop.f32.mrf.mxu1 }
 0x57d   : > { %v5166_v25 = vadd.f32 %v5150_v20, %v8153_v0  ;;  %v5018_v26 = vadd.f32 %v6247_v31, %v4921_v13  ;;  %v6186_v40 = vadd.f32 %v6185_v23, %v6184_v51  ;;  %v6250_v1 = vadd.f32 %v6249_v24, %v6248_v6 }
 0x57e   : > { %v6187_v61 = vpop.f32.mrf.mxu0  ;;  %v6251_v17 = vpop.f32.mrf.mxu1 }
 0x57f   : > { %5182 = vst [vmem:[%s8267_s11 + $0x40] sm:$0xff] %v5166_v25  ;;  %v5151_v22 = vmul.f32 %v5110_v21, %v5018_v26  ;;  %v4926_v58 = vadd.f32 %v6186_v40, %v8261_v53 }
 0x580   : > { %v6188_v27 = vpop.f32.mrf.mxu0  ;;  %v6252_v18 = vpop.f32.mrf.mxu1 }
 0x581   : > { %v5167_v28 = vadd.f32 %v5151_v22, %v8157_v2  ;;  %v5023_v11 = vadd.f32 %v6250_v1, %v4926_v58  ;;  %v6189_v54 = vadd.f32 %v6188_v27, %v6187_v61  ;;  %v6253_v59 = vadd.f32 %v6252_v18, %v6251_v17  ;;  %v5140_v61 = vpop.permute.xlu1 %5139 }
 0x582   : > { %v6190_v5 = vpop.f32.mrf.mxu0  ;;  %v6254_v0 = vpop.f32.mrf.mxu1 }
 0x583   : > { %5183 = vst [vmem:[%s8267_s11 + $0x48] sm:$0xff] %v5167_v28  ;;  %v5152_v52 = vmul.f32 %v5115_v32, %v5023_v11  ;;  %v4929_v14 = vadd.f32 %v6189_v54, %v8261_v53 }
 0x584   : > { %v6191_v15 = vpop.f32.mrf.mxu0  ;;  %v6255_v38 = vpop.f32.mrf.mxu1 }
 0x585   : > { %v5168_v47 = vadd.f32 %v5152_v52, %v8161_v57  ;;  %v5026_v48 = vadd.f32 %v6253_v59, %v4929_v14  ;;  %v6192_v4 = vadd.f32 %v6191_v15, %v6190_v5  ;;  %v6256_v46 = vadd.f32 %v6255_v38, %v6254_v0 }
 0x586   : > { %v6193_v45 = vpop.f32.mrf.mxu0  ;;  %v6257_v2 = vpop.f32.mrf.mxu1 }
 0x587   : > { %5184 = vst [vmem:[%s8267_s11 + $0x50] sm:$0xff] %v5168_v47  ;;  %v5153_v37 = vmul.f32 %v5120_v41, %v5026_v48  ;;  %v4934_v42 = vadd.f32 %v6192_v4, %v8261_v53 }
 0x588   : > { %v6194_v30 = vpop.f32.mrf.mxu0  ;;  %v6258_v49 = vpop.f32.mrf.mxu1 }
 0x589   : > { %v5169_v63 = vadd.f32 %v5153_v37, %v8165_v3  ;;  %v5031_v35 = vadd.f32 %v6256_v46, %v4934_v42  ;;  %v6195_v16 = vadd.f32 %v6194_v30, %v6193_v45  ;;  %v6259_v7 = vadd.f32 %v6258_v49, %v6257_v2 }
 0x58a   : > { %v6196_v44 = vpop.f32.mrf.mxu0  ;;  %v6260_v57 = vpop.f32.mrf.mxu1 }
 0x58b   : > { %5185 = vst [vmem:[%s8267_s11 + $0x58] sm:$0xff] %v5169_v63  ;;  %v5154_v29 = vmul.f32 %v5125_v62, %v5031_v35  ;;  %v4937_v34 = vadd.f32 %v6195_v16, %v8261_v53 }
 0x58c   : > { %v6197_v12 = vpop.f32.mrf.mxu0  ;;  %v6261_v36 = vpop.f32.mrf.mxu1 }
 0x58d   : > { %v5170_v56 = vadd.f32 %v5154_v29, %v8169_v10  ;;  %v5034_v43 = vadd.f32 %v6259_v7, %v4937_v34  ;;  %v6198_v39 = vadd.f32 %v6197_v12, %v6196_v44  ;;  %v6262_v51 = vadd.f32 %v6261_v36, %v6260_v57  ;;  %v5135_v10 = vpop.permute.xlu0 %5134 }
 0x58e   : > { %v6199_v9 = vpop.f32.mrf.mxu0  ;;  %v6263_v3 = vpop.f32.mrf.mxu1 }
 0x58f   : > { %5186 = vst [vmem:[%s8267_s11 + $0x60] sm:$0xff] %v5170_v56  ;;  %v5155_v55 = vmul.f32 %v5130_v50, %v5034_v43  ;;  %v4942_v33 = vadd.f32 %v6198_v39, %v8261_v53 }
 0x590   : > { %v6200_v6 = vpop.f32.mrf.mxu0  ;;  %v6264_v20 = vpop.f32.mrf.mxu1 }
 0x591   : > { %v5171_v13 = vadd.f32 %v5155_v55, %v8173_v8  ;;  %v5039_v31 = vadd.f32 %v6262_v51, %v4942_v33  ;;  %v6201_v23 = vadd.f32 %v6200_v6, %v6199_v9  ;;  %v6265_v25 = vadd.f32 %v6264_v20, %v6263_v3 }
 0x593   : > { %5187 = vst [vmem:[%s8267_s11 + $0x68] sm:$0xff] %v5171_v13  ;;  %v5156_v24 = vmul.f32 %v5135_v10, %v5039_v31  ;;  %v4945_v21 = vadd.f32 %v6201_v23, %v8261_v53 }
 0x595   : > { %v5172_v26 = vadd.f32 %v5156_v24, %v8189_v60  ;;  %v5042_v40 = vadd.f32 %v6265_v25, %v4945_v21 }
 0x597   : > { %5188 = vst [vmem:[%s8267_s11 + $0x70] sm:$0xff] %v5172_v26  ;;  %v5157_v17 = vmul.f32 %v5140_v61, %v5042_v40 }
 0x599   : > { %v5173_v8 = vadd.f32 %v5157_v17, %v8200_v19 }
 0x59b   : > { %5189 = vst [vmem:[%s8267_s11 + $0x78] sm:$0xff] %v5173_v8 }
 0x59c   : > { %6780 = shalt.err (!%p6777_p9)
}
 0x59d   : > { %s6781_s19 = scalar_lea.hbm %s8317_s28, 2048  ;;  %s6785_s7 = scalar_lea.hbm %s8370_s6, 4096 }
 0x59e   : > { %p6782_p12 = scmp.ne.s32.totalorder %s8317_s28, %s6781_s19  ;;  %p6786_p5 = scmp.lt.s32.totalorder %s8317_s28, %s8370_s6 }
 0x59f   : > { %p6787_p8 = scmp.lt.s32.totalorder %s6785_s7, %s6781_s19 }
 0x5a0   : > { %p6783_p4 = pnand %p6782_p12, %p8386_p2 }
 0x5a1   : > { %p6788_p13 = por %p6787_p8, %p6786_p5 }
 0x5a2   : > { %p6784_p6 = pneg %p6783_p4 }
 0x5a4   : > { %p6789_p11 = pnand %p6788_p13, %p6784_p6 }
 0x5a6   : > { %6792 = shalt.err (!%p6789_p11)
}
 0x5a7   : > { %s6846_s16 = smov 128   ;;  %s6847_s29 = smov 8  }
 0x5a8   : > { %6276 = dma.vmem_to_hbm [thread:$0]  (%p8386_p2), %s8319_s8, 2048, %s8317_s28, %s5191_s12, %s6846_s16, %s6846_s16, %s6847_s29  }
 0x5a9 PF: > { %s5219_s2 = sand.u32 1, %s6823_s21   ;;  %p8387_p0 = scmp.ne.s32.totalorder %s8379_s10, 0 }
 0x5aa   : > { %p8388_p10 = scmp.ge.s32.totalorder %s6835_s24, 2  ;;  %s5220_s20 = scalar_lea.sflag [#allocation4], %s5219_s2 }
 0x5ac   : > { %p6286_p1 = pnand %p8388_p10, %p8387_p0 }
 0x5ae   : > { %p6287_p3 = pneg %p6286_p1 }
 0x5b0   : > { %6818 = dma.done.wait (%p6287_p3), %s5220_s20, 2048  }
 0x5b1   : > { %6820 = vsyncadd (%p6287_p3), %s5220_s20, 4294965248  ;;  %p20_p7 = scmp.ge.s32.totalorder %s6908_s27, 4   ;;  %s8389_s21 = smov %s6827_s22 }
 0x5b2   : > { %s8390_s22 = smov %s6831_s23  ;;  %s8391_s23 = smov %s6920_s30 }
 0x5b3   : > { %s8392_s24 = smov %s6908_s27  ;;  %22 = sbr.rel (!%p20_p7) target bundleno = 8 (0x8), region = 158 }
 0x5b8   :  { %5225 = vsyncpa [#allocation3], 1 }
 0x5b9   :  { %5227 = vsyncpa [#allocation3 + $0x1], 1 }
 0x5ba   :  { %5228 = vsyncpa [#allocation6], 1 }
 0x5bb   :  { %5229 = vsyncpa [#allocation4], 1 }
 0x5bc   :  { %5231 = vsyncpa [#allocation4 + $0x1], 1 }

</bundles_post_ra>
